<compile_context>
chip_gen: v7x
topology: tpu7x:2x2x1
jax: 0.10.0
libtpu: 0.0.40
codegen_flags: <defaults>
</compile_context>

<pallas_src>
import functools
import math

import jax
import jax.numpy as jnp
from jax.experimental import pallas as pl
from jax.experimental.pallas import tpu as pltpu

LN_EPS = 1e-5                     # PyTorch LayerNorm default
MAX_IMAGE_FEAT_SEQ_LENGTH = 3000
LANE = 128
VMEM_LIMIT_BYTES = 48 * 1024 * 1024   # > 16/32 MiB defaults, < v7x 64 MiB phys


def _row(v):
    """Reshape a 1-D parameter to a [1, N] slab for clean VMEM layout."""
    return v.reshape(1, -1)


def _pad_lanes(n):
    return ((n + LANE - 1) // LANE) * LANE


def _exact(cd):
    """Use exact softmax math (PyTorch parity) on the f32 path."""
    return jnp.dtype(cd) == jnp.dtype(jnp.float32)


# ----------------------------------------------------------------------------
# In-kernel helpers (traced inside the Pallas kernels below)
# ----------------------------------------------------------------------------
def _proj(x, w, b, cd):
    """x @ w + b; optional low-precision MXU inputs, f32 accumulation."""
    y = jnp.dot(x.astype(cd), w.astype(cd), preferred_element_type=jnp.float32)
    return y + b


def _ln(x2d, g, b, eps):
    mean = jnp.mean(x2d, axis=-1, keepdims=True)
    var = jnp.mean(jnp.square(x2d - mean), axis=-1, keepdims=True)
    return (x2d - mean) * jax.lax.rsqrt(var + eps) * g + b


def _mha(q2d, k2d, v2d, wo, bo, merge_ref, n_heads, cd, exact):
    """Head-batched multi-head attention on already-projected 2-D slabs.

    q2d: [Lq, E], k2d/v2d: [Lk, E]  ->  [Lq, E] (after one Wo matmul).
    Per-head outputs are written into lane slices of `merge_ref` ([Lq, E]
    VMEM scratch) so the out-projection runs at full contraction depth E.
    """
    Lq, E = q2d.shape
    Dh = E // n_heads
    scale = 1.0 / math.sqrt(Dh)

    # Head-major [H, L, Dh] built from lane slices stacked along a new
    # leading axis (leading-dim concat only; no in-kernel transposes).
    q3 = jnp.stack([q2d[:, h * Dh:(h + 1) * Dh] for h in range(n_heads)],
                   axis=0).astype(cd)
    k3 = jnp.stack([k2d[:, h * Dh:(h + 1) * Dh] for h in range(n_heads)],
                   axis=0).astype(cd)
    v3 = jnp.stack([v2d[:, h * Dh:(h + 1) * Dh] for h in range(n_heads)],
                   axis=0).astype(cd)

    s = jnp.einsum("hqd,hkd->hqk", q3, k3,
                   preferred_element_type=jnp.float32) * scale
    m = jnp.max(s, axis=-1, keepdims=True)
    p = jnp.exp(s - m)
    denom = jnp.sum(p, axis=-1, keepdims=True)
    if exact:
        p = p / denom
    else:
        p = p * pl.reciprocal(denom, approx=True)
    o = jnp.einsum("hqk,hkd->hqd", p.astype(cd), v3,
                   preferred_element_type=jnp.float32)

    # Merge heads -> [Lq, E] slab, then ONE full-depth out-projection.
    for h in range(n_heads):
        merge_ref[:, h * Dh:(h + 1) * Dh] = o[h]
    o2 = merge_ref[...]
    return jnp.dot(o2.astype(cd), wo.astype(cd),
                   preferred_element_type=jnp.float32) + bo


def _encoder_core(x, wqkv, bqkv, wo, bo, n1g, n1b, w1, b1, w2, b2, n2g, n2b,
                  merge_ref, n_heads, eps, cd, exact):
    E = x.shape[-1]
    qkv = _proj(x, wqkv, bqkv, cd)                      # fused QKV projection
    attn = _mha(qkv[:, :E], qkv[:, E:2 * E], qkv[:, 2 * E:],
                wo, bo, merge_ref, n_heads, cd, exact)
    x = _ln(x + attn, n1g, n1b, eps)
    h = jnp.maximum(_proj(x, w1, b1, cd), 0.0)          # ReLU
    h = _proj(h, w2, b2, cd)
    return _ln(x + h, n2g, n2b, eps)


def _decoder_core(x, mem, sw, sb, swo, sbo, n1g, n1b,
                  cwq, cbq, cwkv, cbkv, cwo, cbo, n2g, n2b,
                  w1, b1, w2, b2, n3g, n3b,
                  merge_ref, n_heads, eps, cd, exact):
    E = x.shape[-1]
    qkv = _proj(x, sw, sb, cd)
    sa = _mha(qkv[:, :E], qkv[:, E:2 * E], qkv[:, 2 * E:],
              swo, sbo, merge_ref, n_heads, cd, exact)
    x = _ln(x + sa, n1g, n1b, eps)
    q = _proj(x, cwq, cbq, cd)
    kv = _proj(mem, cwkv, cbkv, cd)                     # fused K/V projection
    ca = _mha(q, kv[:, :E], kv[:, E:], cwo, cbo, merge_ref, n_heads, cd, exact)
    x = _ln(x + ca, n2g, n2b, eps)
    h = jnp.maximum(_proj(x, w1, b1, cd), 0.0)
    h = _proj(h, w2, b2, cd)
    return _ln(x + h, n3g, n3b, eps)


# ----------------------------------------------------------------------------
# Fused per-layer Pallas kernels (grid over batch; one batch element / step)
# ----------------------------------------------------------------------------
def _encoder_layer_kernel(*refs, n_heads, eps, cd, exact, final_ln, with_stem):
    if with_stem:
        (z_ref, qp_ref, img_ref, pos_ref, zw_ref, zb_ref, qw_ref, qb_ref,
         wqkv, bqkv, wo, bo, n1g, n1b, w1, b1, w2, b2, n2g, n2b, fg, fb,
         o_ref, src_scr, merge_scr) = refs
        C, E = img_ref.shape[1], img_ref.shape[2]
        S = C + 2
        # Stem: z / qpos embeddings, concat (via scratch rows), + pos encoding.
        z_emb = _proj(z_ref[...].reshape(1, -1), zw_ref[...], zb_ref[...], cd)
        q_emb = _proj(qp_ref[...].reshape(1, -1), qw_ref[...], qb_ref[...], cd)
        src_scr[0:1, :] = z_emb
        src_scr[1:2, :] = q_emb
        src_scr[2:, :] = img_ref[...].reshape(C, E)
        x = src_scr[...] + pos_ref[...]
    else:
        (src_ref,
         wqkv, bqkv, wo, bo, n1g, n1b, w1, b1, w2, b2, n2g, n2b, fg, fb,
         o_ref, merge_scr) = refs
        S, E = src_ref.shape[1], src_ref.shape[2]
        x = src_ref[...].reshape(S, E)

    x = _encoder_core(x, wqkv[...], bqkv[...], wo[...], bo[...],
                      n1g[...], n1b[...], w1[...], b1[...],
                      w2[...], b2[...], n2g[...], n2b[...],
                      merge_scr, n_heads, eps, cd, exact)
    if final_ln:   # final nn.TransformerEncoder norm fused into last layer
        x = _ln(x, fg[...], fb[...], eps)
    o_ref[...] = x.reshape(1, S, E)


def _decoder_layer_kernel(*refs, n_heads, eps, cd, exact, final):
    if final:
        (tgt_ref, mem_ref, sw, sb, swo, sbo, n1g, n1b,
         cwq, cbq, cwkv, cbkv, cwo, cbo, n2g, n2b,
         w1, b1, w2, b2, n3g, n3b, fg, fb, hw, hb,
         o_ref, merge_scr) = refs
    else:
        (tgt_ref, mem_ref, sw, sb, swo, sbo, n1g, n1b,
         cwq, cbq, cwkv, cbkv, cwo, cbo, n2g, n2b,
         w1, b1, w2, b2, n3g, n3b,
         o_ref, merge_scr) = refs

    T, E = tgt_ref.shape[1], tgt_ref.shape[2]
    S = mem_ref.shape[1]
    x = tgt_ref[...].reshape(T, E)
    mem = mem_ref[...].reshape(S, E)

    x = _decoder_core(x, mem, sw[...], sb[...], swo[...], sbo[...],
                      n1g[...], n1b[...],
                      cwq[...], cbq[...], cwkv[...], cbkv[...],
                      cwo[...], cbo[...], n2g[...], n2b[...],
                      w1[...], b1[...], w2[...], b2[...],
                      n3g[...], n3b[...],
                      merge_scr, n_heads, eps, cd, exact)

    if final:
        # Final nn.TransformerDecoder norm + action head (lane-dense output).
        x = _ln(x, fg[...], fb[...], eps)
        y = _proj(x, hw[...], hb[...], cd)              # [T, A_pad]
        o_ref[...] = y.reshape(1, T, y.shape[-1])
    else:
        o_ref[...] = x.reshape(1, T, E)


# ----------------------------------------------------------------------------
# pallas_call wrappers
# ----------------------------------------------------------------------------
def _batch_spec(shape):
    """Block one batch element per grid step."""
    nd = len(shape)
    return pl.BlockSpec((1,) + tuple(shape[1:]),
                        lambda b: (b,) + (0,) * (nd - 1))


def _resident_spec(shape):
    """Full array, constant index_map -> fetched once, resident across grid."""
    nd = len(shape)
    return pl.BlockSpec(tuple(shape), lambda b: (0,) * nd)


def _compiler_params():
    return pltpu.CompilerParams(
        dimension_semantics=("parallel",),   # shard batch across TCs on v7x
        vmem_limit_bytes=VMEM_LIMIT_BYTES)


def _operand_bytes(ops):
    return sum(int(o.size) * jnp.dtype(o.dtype).itemsize for o in ops)


def _enc_cost(B, S, E, F, H, ops, out_bytes):
    flops = B * (2 * S * E * 3 * E + 4 * S * S * E + 2 * S * E * E
                 + 4 * S * E * F)
    return pl.CostEstimate(flops=int(flops),
                           transcendentals=int(B * H * S * S),
                           bytes_accessed=int(_operand_bytes(ops) + out_bytes))


def _dec_cost(B, T, S, E, F, H, ops, out_bytes):
    flops = B * (2 * T * E * 3 * E + 4 * T * T * E + 2 * T * E * E
                 + 2 * T * E * E + 2 * S * E * 2 * E + 4 * T * S * E
                 + 2 * T * E * E + 4 * T * E * F)
    return pl.CostEstimate(flops=int(flops),
                           transcendentals=int(B * H * (T * T + T * S)),
                           bytes_accessed=int(_operand_bytes(ops) + out_bytes))


def stem_encoder_layer(z, qpos, image_embeded, pos, params, p, n_heads, cd,
                       *, final_ln):
    """Stem (z/qpos emb + concat + pos add) fused with the first encoder layer."""
    B, C, E = image_embeded.shape
    S = C + 2
    sa = p["self_attn"]
    F = p["w1"].shape[1]
    z3 = z[:, None, :]
    q3 = qpos[:, None, :]
    ops = (z3, q3, image_embeded, pos,
           params["z_emb_w"], _row(params["z_emb_b"]),
           params["qpos_emb_w"], _row(params["qpos_emb_b"]),
           sa["wqkv"], _row(sa["bqkv"]), sa["wo"], _row(sa["bo"]),
           _row(p["norm1_g"]), _row(p["norm1_b"]),
           p["w1"], _row(p["b1"]), p["w2"], _row(p["b2"]),
           _row(p["norm2_g"]), _row(p["norm2_b"]),
           _row(params["enc_norm_g"]), _row(params["enc_norm_b"]))
    in_specs = ([_batch_spec(z3.shape), _batch_spec(q3.shape),
                 _batch_spec(image_embeded.shape), _resident_spec(pos.shape)]
                + [_resident_spec(o.shape) for o in ops[4:]])
    return pl.pallas_call(
        functools.partial(_encoder_layer_kernel, n_heads=n_heads, eps=LN_EPS,
                          cd=cd, exact=_exact(cd), final_ln=final_ln,
                          with_stem=True),
        grid=(B,),
        out_shape=jax.ShapeDtypeStruct((B, S, E), jnp.float32),
        in_specs=in_specs,
        out_specs=_batch_spec((B, S, E)),
        scratch_shapes=[pltpu.VMEM((S, E), jnp.float32),   # concat scratch
                        pltpu.VMEM((S, E), jnp.float32)],  # head-merge scratch
        compiler_params=_compiler_params(),
        cost_estimate=_enc_cost(B, S, E, F, n_heads, ops, B * S * E * 4),
    )(*ops)


def encoder_layer(src, p, enc_norm_g, enc_norm_b, n_heads, cd, *, final_ln):
    B, S, E = src.shape
    sa = p["self_attn"]
    F = p["w1"].shape[1]
    ops = (src,
           sa["wqkv"], _row(sa["bqkv"]), sa["wo"], _row(sa["bo"]),
           _row(p["norm1_g"]), _row(p["norm1_b"]),
           p["w1"], _row(p["b1"]), p["w2"], _row(p["b2"]),
           _row(p["norm2_g"]), _row(p["norm2_b"]),
           _row(enc_norm_g), _row(enc_norm_b))
    in_specs = [_batch_spec(src.shape)] + [_resident_spec(o.shape)
                                           for o in ops[1:]]
    return pl.pallas_call(
        functools.partial(_encoder_layer_kernel, n_heads=n_heads, eps=LN_EPS,
                          cd=cd, exact=_exact(cd), final_ln=final_ln,
                          with_stem=False),
        grid=(B,),
        out_shape=jax.ShapeDtypeStruct((B, S, E), jnp.float32),
        in_specs=in_specs,
        out_specs=_batch_spec((B, S, E)),
        scratch_shapes=[pltpu.VMEM((S, E), jnp.float32)],
        compiler_params=_compiler_params(),
        cost_estimate=_enc_cost(B, S, E, F, n_heads, ops, B * S * E * 4),
    )(*ops)


def decoder_layer(tgt, memory, p, n_heads, cd, *, final=False,
                  dec_norm_g=None, dec_norm_b=None, head_w=None, head_b=None):
    B, T, E = tgt.shape
    S = memory.shape[1]
    sa = p["self_attn"]
    ca = p["cross_attn"]
    F = p["w1"].shape[1]
    ops = [tgt, memory,
           sa["wqkv"], _row(sa["bqkv"]), sa["wo"], _row(sa["bo"]),
           _row(p["norm1_g"]), _row(p["norm1_b"]),
           ca["wq"], _row(ca["bq"]), ca["wkv"], _row(ca["bkv"]),
           ca["wo"], _row(ca["bo"]),
           _row(p["norm2_g"]), _row(p["norm2_b"]),
           p["w1"], _row(p["b1"]), p["w2"], _row(p["b2"]),
           _row(p["norm3_g"]), _row(p["norm3_b"])]
    if final:
        ops += [_row(dec_norm_g), _row(dec_norm_b), head_w, _row(head_b)]
        out_dim = head_w.shape[1]           # lane-dense padded action dim
    else:
        out_dim = E
    in_specs = ([_batch_spec(tgt.shape), _batch_spec(memory.shape)]
                + [_resident_spec(o.shape) for o in ops[2:]])
    return pl.pallas_call(
        functools.partial(_decoder_layer_kernel, n_heads=n_heads, eps=LN_EPS,
                          cd=cd, exact=_exact(cd), final=final),
        grid=(B,),
        out_shape=jax.ShapeDtypeStruct((B, T, out_dim), jnp.float32),
        in_specs=in_specs,
        out_specs=_batch_spec((B, T, out_dim)),
        scratch_shapes=[pltpu.VMEM((T, E), jnp.float32)],
        compiler_params=_compiler_params(),
        cost_estimate=_dec_cost(B, T, S, E, F, n_heads, ops,
                                B * T * out_dim * 4),
    )(*ops)


# ----------------------------------------------------------------------------
# Positional encoding (host-side constant, same math as the PyTorch helper)
# ----------------------------------------------------------------------------
def sinusoidal_positional_encoding(seq_length, embed_dim, temperature=10000.0):
    position = jnp.arange(seq_length, dtype=jnp.float32)
    div_term = jnp.exp(
        jnp.arange(0, embed_dim, 2, dtype=jnp.float32)
        * -(jnp.log(jnp.float32(temperature)) / embed_dim))
    ang = position[:, None] * div_term[None, :]
    emb = jnp.zeros((seq_length, embed_dim), jnp.float32)
    emb = emb.at[:, 0::2].set(jnp.sin(ang))
    emb = emb.at[:, 1::2].set(jnp.cos(ang)[:, : embed_dim // 2])  # odd-dim safe
    return emb


# ----------------------------------------------------------------------------
# ActDecoder forward
# ----------------------------------------------------------------------------
def act_decoder_forward(params, image_embeded, qpos, z, *, n_heads,
                        compute_dtype=jnp.float32):
    """image_embeded: [B, C, E], qpos: [B, Q], z: [B, Z] -> [B, chunk, A].

    compute_dtype=jnp.bfloat16 casts MXU matmul inputs to bf16 (f32 accum) and
    hands `memory` to the decoder in bf16; default f32 preserves PyTorch math.
    Weights may also be pre-cast to bf16 (kernels accept any weight dtype).
    """
    B, C, E = image_embeded.shape
    S = C + 2
    cd = compute_dtype
    pos = params["pos_encoding"][:S, :]

    # Encoder stack; stem fused into layer 0, final encoder LN into last layer.
    n_enc = len(params["enc_layers"])
    memory = stem_encoder_layer(z, qpos, image_embeded, pos, params,
                                params["enc_layers"][0], n_heads, cd,
                                final_ln=(n_enc == 1))
    for li in range(1, n_enc):
        memory = encoder_layer(memory, params["enc_layers"][li],
                               params["enc_norm_g"], params["enc_norm_b"],
                               n_heads, cd, final_ln=(li == n_enc - 1))

    # Halve the repeated cross-attention KV DMA on the bf16 fast path.
    if jnp.dtype(cd) == jnp.dtype(jnp.bfloat16):
        memory = memory.astype(jnp.bfloat16)

    # Decoder stack; final decoder LN + action head fused into the last layer.
    T = params["action_token"].shape[1]
    tgt = jnp.broadcast_to(params["action_token"], (B, T, E))

    A = params["head_w"].shape[1]
    a_pad = _pad_lanes(A)                          # lane-dense head output
    head_w = jnp.zeros((E, a_pad), jnp.float32).at[:, :A].set(params["head_w"])
    head_b = jnp.zeros((a_pad,), jnp.float32).at[:A].set(params["head_b"])

    out = tgt
    n_dec = len(params["dec_layers"])
    for li in range(n_dec - 1):
        out = decoder_layer(out, memory, params["dec_layers"][li], n_heads, cd)
    out = decoder_layer(out, memory, params["dec_layers"][n_dec - 1], n_heads,
                        cd, final=True,
                        dec_norm_g=params["dec_norm_g"],
                        dec_norm_b=params["dec_norm_b"],
                        head_w=head_w, head_b=head_b)
    return out[:, :, :A]                           # strip lane padding


# ----------------------------------------------------------------------------
# Deterministic parameter init (synthetic weights, not a checkpoint)
# ----------------------------------------------------------------------------
def _init_linear(key, fan_in, fan_out, scale=0.05):
    kw, kb = jax.random.split(key)
    w = scale * jax.random.normal(kw, (fan_in, fan_out), jnp.float32)
    b = scale * jax.random.normal(kb, (fan_out,), jnp.float32)
    return w, b


def _init_self_attn(key, emb_dim):
    ks = jax.random.split(key, 4)
    wq, bq = _init_linear(ks[0], emb_dim, emb_dim)
    wk, bk = _init_linear(ks[1], emb_dim, emb_dim)
    wv, bv = _init_linear(ks[2], emb_dim, emb_dim)
    wo, bo = _init_linear(ks[3], emb_dim, emb_dim)
    return dict(wqkv=jnp.concatenate([wq, wk, wv], axis=1),
                bqkv=jnp.concatenate([bq, bk, bv], axis=0),
                wo=wo, bo=bo)


def _init_cross_attn(key, emb_dim):
    ks = jax.random.split(key, 4)
    wq, bq = _init_linear(ks[0], emb_dim, emb_dim)
    wk, bk = _init_linear(ks[1], emb_dim, emb_dim)
    wv, bv = _init_linear(ks[2], emb_dim, emb_dim)
    wo, bo = _init_linear(ks[3], emb_dim, emb_dim)
    return dict(wq=wq, bq=bq,
                wkv=jnp.concatenate([wk, wv], axis=1),
                bkv=jnp.concatenate([bk, bv], axis=0),
                wo=wo, bo=bo)


def _init_enc_layer(key, emb_dim, ff_dim):
    ks = jax.random.split(key, 3)
    w1, b1 = _init_linear(ks[1], emb_dim, ff_dim)
    w2, b2 = _init_linear(ks[2], ff_dim, emb_dim)
    return dict(self_attn=_init_self_attn(ks[0], emb_dim),
                w1=w1, b1=b1, w2=w2, b2=b2,
                norm1_g=jnp.ones(emb_dim), norm1_b=jnp.zeros(emb_dim),
                norm2_g=jnp.ones(emb_dim), norm2_b=jnp.zeros(emb_dim))


def _init_dec_layer(key, emb_dim, ff_dim):
    ks = jax.random.split(key, 4)
    w1, b1 = _init_linear(ks[2], emb_dim, ff_dim)
    w2, b2 = _init_linear(ks[3], ff_dim, emb_dim)
    return dict(self_attn=_init_self_attn(ks[0], emb_dim),
                cross_attn=_init_cross_attn(ks[1], emb_dim),
                w1=w1, b1=b1, w2=w2, b2=b2,
                norm1_g=jnp.ones(emb_dim), norm1_b=jnp.zeros(emb_dim),
                norm2_g=jnp.ones(emb_dim), norm2_b=jnp.zeros(emb_dim),
                norm3_g=jnp.ones(emb_dim), norm3_b=jnp.zeros(emb_dim))


def init_act_decoder(key, *, action_chunk_size, qpos_dim, action_dim, emb_dim,
                     z_dim, n_enc_layers, n_dec_layers, ff_dim):
    keys = jax.random.split(key, 6 + n_enc_layers + n_dec_layers)
    z_w, z_b = _init_linear(keys[0], z_dim, emb_dim)
    q_w, q_b = _init_linear(keys[1], qpos_dim, emb_dim)
    h_w, h_b = _init_linear(keys[2], emb_dim, action_dim)
    action_token = jax.random.normal(keys[3], (1, action_chunk_size, emb_dim),
                                     jnp.float32)
    enc_layers = [_init_enc_layer(keys[6 + i], emb_dim, ff_dim)
                  for i in range(n_enc_layers)]
    dec_layers = [_init_dec_layer(keys[6 + n_enc_layers + i], emb_dim, ff_dim)
                  for i in range(n_dec_layers)]
    pos = sinusoidal_positional_encoding(MAX_IMAGE_FEAT_SEQ_LENGTH + 2, emb_dim)
    return dict(
        z_emb_w=z_w, z_emb_b=z_b,
        qpos_emb_w=q_w, qpos_emb_b=q_b,
        head_w=h_w, head_b=h_b,
        action_token=action_token,
        pos_encoding=pos,
        enc_layers=enc_layers, dec_layers=dec_layers,
        enc_norm_g=jnp.ones(emb_dim), enc_norm_b=jnp.zeros(emb_dim),
        dec_norm_g=jnp.ones(emb_dim), dec_norm_b=jnp.zeros(emb_dim),
    )


# ----------------------------------------------------------------------------
if __name__ == "__main__":
    # Small, module-consistent shapes.
    B = 2                 # batch
    C = 4                 # image feature tokens
    EMB = 32              # emb_dim
    QPOS = 8              # qpos_dim
    ZD = 32               # z_dim (module default)
    ACT = 6               # action_dim
    CHUNK = 8             # action_chunk_size
    HEADS = 4             # n_heads
    FF = 64               # feedforward_dim
    N_ENC, N_DEC = 2, 2   # encoder / decoder layers

    key = jax.random.PRNGKey(0)
    kp, ki, kq, kz = jax.random.split(key, 4)

    params = init_act_decoder(
        kp, action_chunk_size=CHUNK, qpos_dim=QPOS, action_dim=ACT,
        emb_dim=EMB, z_dim=ZD, n_enc_layers=N_ENC, n_dec_layers=N_DEC,
        ff_dim=FF)

    image_embeded = jax.random.normal(ki, (B, C, EMB), jnp.float32)
    qpos = jax.random.normal(kq, (B, QPOS), jnp.float32)
    z = jax.random.normal(kz, (B, ZD), jnp.float32)

    # compute_dtype=jnp.bfloat16 is the recommended fast path on v6e/v7x at
    # realistic sizes; keep f32 here for numerical parity with PyTorch.
    fwd = jax.jit(functools.partial(act_decoder_forward, n_heads=HEADS,
                                    compute_dtype=jnp.float32))
    out = jax.block_until_ready(fwd(params, image_embeded, qpos, z))

    assert out.shape == (B, CHUNK, ACT), out.shape
    assert bool(jnp.all(jnp.isfinite(out)))
    print("KERNEL_OK")
</pallas_src>

<mosaic_0001>
module attributes {stable_mosaic.version = 11 : i64} {
  func.func @_encoder_layer_kernel(%arg0: i32, %arg1: memref<1x1x32xf32, #tpu.memory_space<vmem>>, %arg2: memref<1x1x8xf32, #tpu.memory_space<vmem>>, %arg3: memref<1x4x32xf32, #tpu.memory_space<vmem>>, %arg4: memref<6x32xf32, #tpu.memory_space<vmem>>, %arg5: memref<32x32xf32, #tpu.memory_space<vmem>>, %arg6: memref<1x32xf32, #tpu.memory_space<vmem>>, %arg7: memref<8x32xf32, #tpu.memory_space<vmem>>, %arg8: memref<1x32xf32, #tpu.memory_space<vmem>>, %arg9: memref<32x96xf32, #tpu.memory_space<vmem>>, %arg10: memref<1x96xf32, #tpu.memory_space<vmem>>, %arg11: memref<32x32xf32, #tpu.memory_space<vmem>>, %arg12: memref<1x32xf32, #tpu.memory_space<vmem>>, %arg13: memref<1x32xf32, #tpu.memory_space<vmem>>, %arg14: memref<1x32xf32, #tpu.memory_space<vmem>>, %arg15: memref<32x64xf32, #tpu.memory_space<vmem>>, %arg16: memref<1x64xf32, #tpu.memory_space<vmem>>, %arg17: memref<64x32xf32, #tpu.memory_space<vmem>>, %arg18: memref<1x32xf32, #tpu.memory_space<vmem>>, %arg19: memref<1x32xf32, #tpu.memory_space<vmem>>, %arg20: memref<1x32xf32, #tpu.memory_space<vmem>>, %arg21: memref<1x32xf32, #tpu.memory_space<vmem>>, %arg22: memref<1x32xf32, #tpu.memory_space<vmem>>, %arg23: memref<1x6x32xf32, #tpu.memory_space<vmem>>, %arg24: memref<6x32xf32, #tpu.memory_space<vmem>>, %arg25: memref<6x32xf32, #tpu.memory_space<vmem>>) attributes {dimension_semantics = [#tpu.dimension_semantics<parallel>], iteration_bounds = array<i64: 2>, scalar_prefetch = 0 : i64, scratch_operands = 2 : i64, tpu.core_type = #tpu.core_type<tc>, window_params = [{transform_indices = @transform_0, window_bounds = array<i64: 1, 1, 32>}, {transform_indices = @transform_1, window_bounds = array<i64: 1, 1, 8>}, {transform_indices = @transform_2, window_bounds = array<i64: 1, 4, 32>}, {pipeline_mode = #tpu.pipeline_mode<synchronous>, transform_indices = @transform_3, window_bounds = array<i64: 6, 32>}, {pipeline_mode = #tpu.pipeline_mode<synchronous>, transform_indices = @transform_4, window_bounds = array<i64: 32, 32>}, {pipeline_mode = #tpu.pipeline_mode<synchronous>, transform_indices = @transform_5, window_bounds = array<i64: 1, 32>}, {pipeline_mode = #tpu.pipeline_mode<synchronous>, transform_indices = @transform_6, window_bounds = array<i64: 8, 32>}, {pipeline_mode = #tpu.pipeline_mode<synchronous>, transform_indices = @transform_7, window_bounds = array<i64: 1, 32>}, {pipeline_mode = #tpu.pipeline_mode<synchronous>, transform_indices = @transform_8, window_bounds = array<i64: 32, 96>}, {pipeline_mode = #tpu.pipeline_mode<synchronous>, transform_indices = @transform_9, window_bounds = array<i64: 1, 96>}, {pipeline_mode = #tpu.pipeline_mode<synchronous>, transform_indices = @transform_10, window_bounds = array<i64: 32, 32>}, {pipeline_mode = #tpu.pipeline_mode<synchronous>, transform_indices = @transform_11, window_bounds = array<i64: 1, 32>}, {pipeline_mode = #tpu.pipeline_mode<synchronous>, transform_indices = @transform_12, window_bounds = array<i64: 1, 32>}, {pipeline_mode = #tpu.pipeline_mode<synchronous>, transform_indices = @transform_13, window_bounds = array<i64: 1, 32>}, {pipeline_mode = #tpu.pipeline_mode<synchronous>, transform_indices = @transform_14, window_bounds = array<i64: 32, 64>}, {pipeline_mode = #tpu.pipeline_mode<synchronous>, transform_indices = @transform_15, window_bounds = array<i64: 1, 64>}, {pipeline_mode = #tpu.pipeline_mode<synchronous>, transform_indices = @transform_16, window_bounds = array<i64: 64, 32>}, {pipeline_mode = #tpu.pipeline_mode<synchronous>, transform_indices = @transform_17, window_bounds = array<i64: 1, 32>}, {pipeline_mode = #tpu.pipeline_mode<synchronous>, transform_indices = @transform_18, window_bounds = array<i64: 1, 32>}, {pipeline_mode = #tpu.pipeline_mode<synchronous>, transform_indices = @transform_19, window_bounds = array<i64: 1, 32>}, {pipeline_mode = #tpu.pipeline_mode<synchronous>, transform_indices = @transform_20, window_bounds = array<i64: 1, 32>}, {pipeline_mode = #tpu.pipeline_mode<synchronous>, transform_indices = @transform_21, window_bounds = array<i64: 1, 32>}, {transform_indices = @transform_22, window_bounds = array<i64: 1, 6, 32>}]} {
    %c0 = arith.constant 0 : index
    %c0_0 = arith.constant 0 : index
    %c0_1 = arith.constant 0 : index
    %0 = vector.load %arg1[%c0, %c0_0, %c0_1] : memref<1x1x32xf32, #tpu.memory_space<vmem>>, vector<1x1x32xf32>
    %1 = vector.shape_cast %0 : vector<1x1x32xf32> to vector<1x32xf32>
    %c0_2 = arith.constant 0 : index
    %c0_3 = arith.constant 0 : index
    %2 = vector.load %arg5[%c0_2, %c0_3] : memref<32x32xf32, #tpu.memory_space<vmem>>, vector<32x32xf32>
    %c0_4 = arith.constant 0 : index
    %c0_5 = arith.constant 0 : index
    %3 = vector.load %arg6[%c0_4, %c0_5] : memref<1x32xf32, #tpu.memory_space<vmem>>, vector<1x32xf32>
    %cst = arith.constant dense<0.000000e+00> : vector<1x32xf32>
    %4 = tpu.matmul %1, %2, %cst {dimension_numbers = #tpu.dot_dimension_numbers<[1], [0], [0], [1], [0, 0, 1, 1], [], []>} : vector<1x32xf32>, vector<32x32xf32>, vector<1x32xf32> -> vector<1x32xf32>
    %5 = arith.addf %4, %3 : vector<1x32xf32>
    %c0_6 = arith.constant 0 : index
    %c0_7 = arith.constant 0 : index
    %c0_8 = arith.constant 0 : index
    %6 = vector.load %arg2[%c0_6, %c0_7, %c0_8] : memref<1x1x8xf32, #tpu.memory_space<vmem>>, vector<1x1x8xf32>
    %7 = vector.shape_cast %6 : vector<1x1x8xf32> to vector<1x8xf32>
    %c0_9 = arith.constant 0 : index
    %c0_10 = arith.constant 0 : index
    %8 = vector.load %arg7[%c0_9, %c0_10] : memref<8x32xf32, #tpu.memory_space<vmem>>, vector<8x32xf32>
    %c0_11 = arith.constant 0 : index
    %c0_12 = arith.constant 0 : index
    %9 = vector.load %arg8[%c0_11, %c0_12] : memref<1x32xf32, #tpu.memory_space<vmem>>, vector<1x32xf32>
    %cst_13 = arith.constant dense<0.000000e+00> : vector<1x32xf32>
    %10 = tpu.matmul %7, %8, %cst_13 {dimension_numbers = #tpu.dot_dimension_numbers<[1], [0], [0], [1], [0, 0, 1, 1], [], []>} : vector<1x8xf32>, vector<8x32xf32>, vector<1x32xf32> -> vector<1x32xf32>
    %11 = arith.addf %10, %9 : vector<1x32xf32>
    %c0_14 = arith.constant 0 : index
    %c0_15 = arith.constant 0 : index
    %12 = vector.load %arg24[%c0_14, %c0_15] : memref<6x32xf32, #tpu.memory_space<vmem>>, vector<1x32xf32>
    tpu.vector_store %arg24[%c0_14, %c0_15], %5 {strides = array<i32>} : memref<6x32xf32, #tpu.memory_space<vmem>>, vector<1x32xf32>,
    %c1 = arith.constant 1 : index
    %c0_16 = arith.constant 0 : index
    %13 = vector.load %arg24[%c1, %c0_16] : memref<6x32xf32, #tpu.memory_space<vmem>>, vector<1x32xf32>
    tpu.vector_store %arg24[%c1, %c0_16], %11 {strides = array<i32>} : memref<6x32xf32, #tpu.memory_space<vmem>>, vector<1x32xf32>,
    %c0_17 = arith.constant 0 : index
    %c0_18 = arith.constant 0 : index
    %c0_19 = arith.constant 0 : index
    %14 = vector.load %arg3[%c0_17, %c0_18, %c0_19] : memref<1x4x32xf32, #tpu.memory_space<vmem>>, vector<1x4x32xf32>
    %15 = vector.shape_cast %14 : vector<1x4x32xf32> to vector<4x32xf32>
    %c2 = arith.constant 2 : index
    %c0_20 = arith.constant 0 : index
    %16 = vector.load %arg24[%c2, %c0_20] : memref<6x32xf32, #tpu.memory_space<vmem>>, vector<4x32xf32>
    tpu.vector_store %arg24[%c2, %c0_20], %15 {strides = array<i32>} : memref<6x32xf32, #tpu.memory_space<vmem>>, vector<4x32xf32>,
    %c0_21 = arith.constant 0 : index
    %c0_22 = arith.constant 0 : index
    %17 = vector.load %arg24[%c0_21, %c0_22] : memref<6x32xf32, #tpu.memory_space<vmem>>, vector<6x32xf32>
    %c0_23 = arith.constant 0 : index
    %c0_24 = arith.constant 0 : index
    %18 = vector.load %arg4[%c0_23, %c0_24] : memref<6x32xf32, #tpu.memory_space<vmem>>, vector<6x32xf32>
    %19 = arith.addf %17, %18 : vector<6x32xf32>
    %c0_25 = arith.constant 0 : index
    %c0_26 = arith.constant 0 : index
    %20 = vector.load %arg9[%c0_25, %c0_26] : memref<32x96xf32, #tpu.memory_space<vmem>>, vector<32x96xf32>
    %c0_27 = arith.constant 0 : index
    %c0_28 = arith.constant 0 : index
    %21 = vector.load %arg10[%c0_27, %c0_28] : memref<1x96xf32, #tpu.memory_space<vmem>>, vector<1x96xf32>
    %c0_29 = arith.constant 0 : index
    %c0_30 = arith.constant 0 : index
    %22 = vector.load %arg11[%c0_29, %c0_30] : memref<32x32xf32, #tpu.memory_space<vmem>>, vector<32x32xf32>
    %c0_31 = arith.constant 0 : index
    %c0_32 = arith.constant 0 : index
    %23 = vector.load %arg12[%c0_31, %c0_32] : memref<1x32xf32, #tpu.memory_space<vmem>>, vector<1x32xf32>
    %c0_33 = arith.constant 0 : index
    %c0_34 = arith.constant 0 : index
    %24 = vector.load %arg13[%c0_33, %c0_34] : memref<1x32xf32, #tpu.memory_space<vmem>>, vector<1x32xf32>
    %c0_35 = arith.constant 0 : index
    %c0_36 = arith.constant 0 : index
    %25 = vector.load %arg14[%c0_35, %c0_36] : memref<1x32xf32, #tpu.memory_space<vmem>>, vector<1x32xf32>
    %c0_37 = arith.constant 0 : index
    %c0_38 = arith.constant 0 : index
    %26 = vector.load %arg15[%c0_37, %c0_38] : memref<32x64xf32, #tpu.memory_space<vmem>>, vector<32x64xf32>
    %c0_39 = arith.constant 0 : index
    %c0_40 = arith.constant 0 : index
    %27 = vector.load %arg16[%c0_39, %c0_40] : memref<1x64xf32, #tpu.memory_space<vmem>>, vector<1x64xf32>
    %c0_41 = arith.constant 0 : index
    %c0_42 = arith.constant 0 : index
    %28 = vector.load %arg17[%c0_41, %c0_42] : memref<64x32xf32, #tpu.memory_space<vmem>>, vector<64x32xf32>
    %c0_43 = arith.constant 0 : index
    %c0_44 = arith.constant 0 : index
    %29 = vector.load %arg18[%c0_43, %c0_44] : memref<1x32xf32, #tpu.memory_space<vmem>>, vector<1x32xf32>
    %c0_45 = arith.constant 0 : index
    %c0_46 = arith.constant 0 : index
    %30 = vector.load %arg19[%c0_45, %c0_46] : memref<1x32xf32, #tpu.memory_space<vmem>>, vector<1x32xf32>
    %c0_47 = arith.constant 0 : index
    %c0_48 = arith.constant 0 : index
    %31 = vector.load %arg20[%c0_47, %c0_48] : memref<1x32xf32, #tpu.memory_space<vmem>>, vector<1x32xf32>
    %cst_49 = arith.constant dense<0.000000e+00> : vector<6x96xf32>
    %32 = tpu.matmul %19, %20, %cst_49 {dimension_numbers = #tpu.dot_dimension_numbers<[1], [0], [0], [1], [0, 0, 1, 1], [], []>} : vector<6x32xf32>, vector<32x96xf32>, vector<6x96xf32> -> vector<6x96xf32>
    %33 = vector.broadcast %21 : vector<1x96xf32> to vector<6x96xf32>
    %34 = arith.addf %32, %33 : vector<6x96xf32>
    %35 = vector.extract_strided_slice %34 {offsets = [0, 0], sizes = [6, 32], strides = [1, 1]} : vector<6x96xf32> to vector<6x32xf32>
    %36 = vector.extract_strided_slice %34 {offsets = [0, 32], sizes = [6, 32], strides = [1, 1]} : vector<6x96xf32> to vector<6x32xf32>
    %37 = vector.extract_strided_slice %34 {offsets = [0, 64], sizes = [6, 32], strides = [1, 1]} : vector<6x96xf32> to vector<6x32xf32>
    %38 = vector.extract_strided_slice %35 {offsets = [0, 0], sizes = [6, 8], strides = [1, 1]} : vector<6x32xf32> to vector<6x8xf32>
    %39 = vector.extract_strided_slice %35 {offsets = [0, 8], sizes = [6, 8], strides = [1, 1]} : vector<6x32xf32> to vector<6x8xf32>
    %40 = vector.extract_strided_slice %35 {offsets = [0, 16], sizes = [6, 8], strides = [1, 1]} : vector<6x32xf32> to vector<6x8xf32>
    %41 = vector.extract_strided_slice %35 {offsets = [0, 24], sizes = [6, 8], strides = [1, 1]} : vector<6x32xf32> to vector<6x8xf32>
    %42 = vector.shape_cast %38 : vector<6x8xf32> to vector<1x6x8xf32>
    %43 = vector.shape_cast %39 : vector<6x8xf32> to vector<1x6x8xf32>
    %44 = vector.shape_cast %40 : vector<6x8xf32> to vector<1x6x8xf32>
    %45 = vector.shape_cast %41 : vector<6x8xf32> to vector<1x6x8xf32>
    %46 = tpu.concatenate %42, %43, %44, %45 in 0 : vector<1x6x8xf32>, vector<1x6x8xf32>, vector<1x6x8xf32>, vector<1x6x8xf32> -> vector<4x6x8xf32>
    %47 = vector.extract_strided_slice %36 {offsets = [0, 0], sizes = [6, 8], strides = [1, 1]} : vector<6x32xf32> to vector<6x8xf32>
    %48 = vector.extract_strided_slice %36 {offsets = [0, 8], sizes = [6, 8], strides = [1, 1]} : vector<6x32xf32> to vector<6x8xf32>
    %49 = vector.extract_strided_slice %36 {offsets = [0, 16], sizes = [6, 8], strides = [1, 1]} : vector<6x32xf32> to vector<6x8xf32>
    %50 = vector.extract_strided_slice %36 {offsets = [0, 24], sizes = [6, 8], strides = [1, 1]} : vector<6x32xf32> to vector<6x8xf32>
    %51 = vector.shape_cast %47 : vector<6x8xf32> to vector<1x6x8xf32>
    %52 = vector.shape_cast %48 : vector<6x8xf32> to vector<1x6x8xf32>
    %53 = vector.shape_cast %49 : vector<6x8xf32> to vector<1x6x8xf32>
    %54 = vector.shape_cast %50 : vector<6x8xf32> to vector<1x6x8xf32>
    %55 = tpu.concatenate %51, %52, %53, %54 in 0 : vector<1x6x8xf32>, vector<1x6x8xf32>, vector<1x6x8xf32>, vector<1x6x8xf32> -> vector<4x6x8xf32>
    %56 = vector.extract_strided_slice %37 {offsets = [0, 0], sizes = [6, 8], strides = [1, 1]} : vector<6x32xf32> to vector<6x8xf32>
    %57 = vector.extract_strided_slice %37 {offsets = [0, 8], sizes = [6, 8], strides = [1, 1]} : vector<6x32xf32> to vector<6x8xf32>
    %58 = vector.extract_strided_slice %37 {offsets = [0, 16], sizes = [6, 8], strides = [1, 1]} : vector<6x32xf32> to vector<6x8xf32>
    %59 = vector.extract_strided_slice %37 {offsets = [0, 24], sizes = [6, 8], strides = [1, 1]} : vector<6x32xf32> to vector<6x8xf32>
    %60 = vector.shape_cast %56 : vector<6x8xf32> to vector<1x6x8xf32>
    %61 = vector.shape_cast %57 : vector<6x8xf32> to vector<1x6x8xf32>
    %62 = vector.shape_cast %58 : vector<6x8xf32> to vector<1x6x8xf32>
    %63 = vector.shape_cast %59 : vector<6x8xf32> to vector<1x6x8xf32>
    %64 = tpu.concatenate %60, %61, %62, %63 in 0 : vector<1x6x8xf32>, vector<1x6x8xf32>, vector<1x6x8xf32>, vector<1x6x8xf32> -> vector<4x6x8xf32>
    "tpu.trace_start"() <{level = 10 : i32, message = "hqd,hkd->hqk"}> : () -> ()
    %cst_50 = arith.constant dense<0.000000e+00> : vector<4x6x6xf32>
    %65 = tpu.matmul %46, %55, %cst_50 {dimension_numbers = #tpu.dot_dimension_numbers<[2], [2], [1], [1], [0, 0, 0, 1, 1, 1], [0], [0]>} : vector<4x6x8xf32>, vector<4x6x8xf32>, vector<4x6x6xf32> -> vector<4x6x6xf32>
    "tpu.trace_stop"() : () -> ()
    %cst_51 = arith.constant 0.353553385 : f32
    %66 = vector.broadcast %cst_51 : f32 to vector<4x6x6xf32>
    %67 = arith.mulf %65, %66 : vector<4x6x6xf32>
    %cst_52 = arith.constant dense<0xFF800000> : vector<4x6xf32>
    %68 = vector.multi_reduction <maximumf>, %67, %cst_52 [2] : vector<4x6x6xf32> to vector<4x6xf32>
    %69 = vector.shape_cast %68 : vector<4x6xf32> to vector<4x6x1xf32>
    %70 = vector.broadcast %69 : vector<4x6x1xf32> to vector<4x6x6xf32>
    %71 = arith.subf %67, %70 : vector<4x6x6xf32>
    %72 = math.exp %71 : vector<4x6x6xf32>
    %cst_53 = arith.constant dense<0.000000e+00> : vector<4x6xf32>
    %73 = vector.multi_reduction <add>, %72, %cst_53 [2] : vector<4x6x6xf32> to vector<4x6xf32>
    %74 = vector.shape_cast %73 : vector<4x6xf32> to vector<4x6x1xf32>
    %75 = vector.broadcast %74 : vector<4x6x1xf32> to vector<4x6x6xf32>
    %76 = arith.divf %72, %75 : vector<4x6x6xf32>
    "tpu.trace_start"() <{level = 10 : i32, message = "hqk,hkd->hqd"}> : () -> ()
    %cst_54 = arith.constant dense<0.000000e+00> : vector<4x6x8xf32>
    %77 = tpu.matmul %76, %64, %cst_54 {dimension_numbers = #tpu.dot_dimension_numbers<[2], [1], [1], [2], [0, 0, 0, 1, 1, 2], [0], [0]>} : vector<4x6x6xf32>, vector<4x6x8xf32>, vector<4x6x8xf32> -> vector<4x6x8xf32>
    "tpu.trace_stop"() : () -> ()
    %78 = vector.extract_strided_slice %77 {offsets = [0, 0, 0], sizes = [1, 6, 8], strides = [1, 1, 1]} : vector<4x6x8xf32> to vector<1x6x8xf32>
    %79 = vector.shape_cast %78 : vector<1x6x8xf32> to vector<6x8xf32>
    %c0_55 = arith.constant 0 : index
    %c0_56 = arith.constant 0 : index
    %80 = vector.load %arg25[%c0_55, %c0_56] : memref<6x32xf32, #tpu.memory_space<vmem>>, vector<6x8xf32>
    tpu.vector_store %arg25[%c0_55, %c0_56], %79 {strides = array<i32>} : memref<6x32xf32, #tpu.memory_space<vmem>>, vector<6x8xf32>,
    %81 = vector.extract_strided_slice %77 {offsets = [1, 0, 0], sizes = [1, 6, 8], strides = [1, 1, 1]} : vector<4x6x8xf32> to vector<1x6x8xf32>
    %82 = vector.shape_cast %81 : vector<1x6x8xf32> to vector<6x8xf32>
    %c0_57 = arith.constant 0 : index
    %c8 = arith.constant 8 : index
    %83 = vector.load %arg25[%c0_57, %c8] : memref<6x32xf32, #tpu.memory_space<vmem>>, vector<6x8xf32>
    tpu.vector_store %arg25[%c0_57, %c8], %82 {strides = array<i32>} : memref<6x32xf32, #tpu.memory_space<vmem>>, vector<6x8xf32>,
    %84 = vector.extract_strided_slice %77 {offsets = [2, 0, 0], sizes = [1, 6, 8], strides = [1, 1, 1]} : vector<4x6x8xf32> to vector<1x6x8xf32>
    %85 = vector.shape_cast %84 : vector<1x6x8xf32> to vector<6x8xf32>
    %c0_58 = arith.constant 0 : index
    %c16 = arith.constant 16 : index
    %86 = vector.load %arg25[%c0_58, %c16] : memref<6x32xf32, #tpu.memory_space<vmem>>, vector<6x8xf32>
    tpu.vector_store %arg25[%c0_58, %c16], %85 {strides = array<i32>} : memref<6x32xf32, #tpu.memory_space<vmem>>, vector<6x8xf32>,
    %87 = vector.extract_strided_slice %77 {offsets = [3, 0, 0], sizes = [1, 6, 8], strides = [1, 1, 1]} : vector<4x6x8xf32> to vector<1x6x8xf32>
    %88 = vector.shape_cast %87 : vector<1x6x8xf32> to vector<6x8xf32>
    %c0_59 = arith.constant 0 : index
    %c24 = arith.constant 24 : index
    %89 = vector.load %arg25[%c0_59, %c24] : memref<6x32xf32, #tpu.memory_space<vmem>>, vector<6x8xf32>
    tpu.vector_store %arg25[%c0_59, %c24], %88 {strides = array<i32>} : memref<6x32xf32, #tpu.memory_space<vmem>>, vector<6x8xf32>,
    %c0_60 = arith.constant 0 : index
    %c0_61 = arith.constant 0 : index
    %90 = vector.load %arg25[%c0_60, %c0_61] : memref<6x32xf32, #tpu.memory_space<vmem>>, vector<6x32xf32>
    %cst_62 = arith.constant dense<0.000000e+00> : vector<6x32xf32>
    %91 = tpu.matmul %90, %22, %cst_62 {dimension_numbers = #tpu.dot_dimension_numbers<[1], [0], [0], [1], [0, 0, 1, 1], [], []>} : vector<6x32xf32>, vector<32x32xf32>, vector<6x32xf32> -> vector<6x32xf32>
    %92 = vector.broadcast %23 : vector<1x32xf32> to vector<6x32xf32>
    %93 = arith.addf %91, %92 : vector<6x32xf32>
    %94 = arith.addf %19, %93 : vector<6x32xf32>
    %cst_63 = arith.constant dense<0.000000e+00> : vector<6xf32>
    %95 = vector.multi_reduction <add>, %94, %cst_63 [1] : vector<6x32xf32> to vector<6xf32>
    %96 = vector.shape_cast %95 : vector<6xf32> to vector<6x1xf32>
    %cst_64 = arith.constant 3.200000e+01 : f32
    %97 = vector.broadcast %cst_64 : f32 to vector<6x1xf32>
    %98 = arith.divf %96, %97 : vector<6x1xf32>
    %99 = vector.broadcast %98 : vector<6x1xf32> to vector<6x32xf32>
    %100 = arith.subf %94, %99 : vector<6x32xf32>
    %101 = arith.mulf %100, %100 : vector<6x32xf32>
    %cst_65 = arith.constant dense<0.000000e+00> : vector<6xf32>
    %102 = vector.multi_reduction <add>, %101, %cst_65 [1] : vector<6x32xf32> to vector<6xf32>
    %103 = vector.shape_cast %102 : vector<6xf32> to vector<6x1xf32>
    %cst_66 = arith.constant 3.200000e+01 : f32
    %104 = vector.broadcast %cst_66 : f32 to vector<6x1xf32>
    %105 = arith.divf %103, %104 : vector<6x1xf32>
    %106 = vector.broadcast %98 : vector<6x1xf32> to vector<6x32xf32>
    %107 = arith.subf %94, %106 : vector<6x32xf32>
    %cst_67 = arith.constant 9.99999974E-6 : f32
    %108 = vector.broadcast %cst_67 : f32 to vector<6x1xf32>
    %109 = arith.addf %105, %108 : vector<6x1xf32>
    %110 = math.rsqrt %109 : vector<6x1xf32>
    %111 = vector.broadcast %110 : vector<6x1xf32> to vector<6x32xf32>
    %112 = arith.mulf %107, %111 : vector<6x32xf32>
    %113 = vector.broadcast %24 : vector<1x32xf32> to vector<6x32xf32>
    %114 = arith.mulf %112, %113 : vector<6x32xf32>
    %115 = vector.broadcast %25 : vector<1x32xf32> to vector<6x32xf32>
    %116 = arith.addf %114, %115 : vector<6x32xf32>
    %cst_68 = arith.constant dense<0.000000e+00> : vector<6x64xf32>
    %117 = tpu.matmul %116, %26, %cst_68 {dimension_numbers = #tpu.dot_dimension_numbers<[1], [0], [0], [1], [0, 0, 1, 1], [], []>} : vector<6x32xf32>, vector<32x64xf32>, vector<6x64xf32> -> vector<6x64xf32>
    %118 = vector.broadcast %27 : vector<1x64xf32> to vector<6x64xf32>
    %119 = arith.addf %117, %118 : vector<6x64xf32>
    %cst_69 = arith.constant 0.000000e+00 : f32
    %120 = vector.broadcast %cst_69 : f32 to vector<6x64xf32>
    %121 = arith.maximumf %119, %120 : vector<6x64xf32>
    %cst_70 = arith.constant dense<0.000000e+00> : vector<6x32xf32>
    %122 = tpu.matmul %121, %28, %cst_70 {dimension_numbers = #tpu.dot_dimension_numbers<[1], [0], [0], [1], [0, 0, 1, 1], [], []>} : vector<6x64xf32>, vector<64x32xf32>, vector<6x32xf32> -> vector<6x32xf32>
    %123 = vector.broadcast %29 : vector<1x32xf32> to vector<6x32xf32>
    %124 = arith.addf %122, %123 : vector<6x32xf32>
    %125 = arith.addf %116, %124 : vector<6x32xf32>
    %cst_71 = arith.constant dense<0.000000e+00> : vector<6xf32>
    %126 = vector.multi_reduction <add>, %125, %cst_71 [1] : vector<6x32xf32> to vector<6xf32>
    %127 = vector.shape_cast %126 : vector<6xf32> to vector<6x1xf32>
    %cst_72 = arith.constant 3.200000e+01 : f32
    %128 = vector.broadcast %cst_72 : f32 to vector<6x1xf32>
    %129 = arith.divf %127, %128 : vector<6x1xf32>
    %130 = vector.broadcast %129 : vector<6x1xf32> to vector<6x32xf32>
    %131 = arith.subf %125, %130 : vector<6x32xf32>
    %132 = arith.mulf %131, %131 : vector<6x32xf32>
    %cst_73 = arith.constant dense<0.000000e+00> : vector<6xf32>
    %133 = vector.multi_reduction <add>, %132, %cst_73 [1] : vector<6x32xf32> to vector<6xf32>
    %134 = vector.shape_cast %133 : vector<6xf32> to vector<6x1xf32>
    %cst_74 = arith.constant 3.200000e+01 : f32
    %135 = vector.broadcast %cst_74 : f32 to vector<6x1xf32>
    %136 = arith.divf %134, %135 : vector<6x1xf32>
    %137 = vector.broadcast %129 : vector<6x1xf32> to vector<6x32xf32>
    %138 = arith.subf %125, %137 : vector<6x32xf32>
    %cst_75 = arith.constant 9.99999974E-6 : f32
    %139 = vector.broadcast %cst_75 : f32 to vector<6x1xf32>
    %140 = arith.addf %136, %139 : vector<6x1xf32>
    %141 = math.rsqrt %140 : vector<6x1xf32>
    %142 = vector.broadcast %141 : vector<6x1xf32> to vector<6x32xf32>
    %143 = arith.mulf %138, %142 : vector<6x32xf32>
    %144 = vector.broadcast %30 : vector<1x32xf32> to vector<6x32xf32>
    %145 = arith.mulf %143, %144 : vector<6x32xf32>
    %146 = vector.broadcast %31 : vector<1x32xf32> to vector<6x32xf32>
    %147 = arith.addf %145, %146 : vector<6x32xf32>
    %148 = vector.shape_cast %147 : vector<6x32xf32> to vector<1x6x32xf32>
    %c0_76 = arith.constant 0 : index
    %c0_77 = arith.constant 0 : index
    %c0_78 = arith.constant 0 : index
    %149 = vector.load %arg23[%c0_76, %c0_77, %c0_78] : memref<1x6x32xf32, #tpu.memory_space<vmem>>, vector<1x6x32xf32>
    tpu.vector_store %arg23[%c0_76, %c0_77, %c0_78], %148 {strides = array<i32>} : memref<1x6x32xf32, #tpu.memory_space<vmem>>, vector<1x6x32xf32>,
    return
  }
  func.func @transform_0(%arg0: i32) -> (i32, i32, i32) {
    %c0_i32 = arith.constant 0 : i32
    %c0_i32_0 = arith.constant 0 : i32
    %c0_i32_1 = arith.constant 0 : i32
    return %arg0, %c0_i32, %c0_i32_0 : i32, i32, i32
  }
  func.func @transform_1(%arg0: i32) -> (i32, i32, i32) {
    %c0_i32 = arith.constant 0 : i32
    %c0_i32_0 = arith.constant 0 : i32
    %c0_i32_1 = arith.constant 0 : i32
    return %arg0, %c0_i32, %c0_i32_0 : i32, i32, i32
  }
  func.func @transform_2(%arg0: i32) -> (i32, i32, i32) {
    %c0_i32 = arith.constant 0 : i32
    %c0_i32_0 = arith.constant 0 : i32
    %c0_i32_1 = arith.constant 0 : i32
    return %arg0, %c0_i32, %c0_i32_0 : i32, i32, i32
  }
  func.func @transform_3(%arg0: i32) -> (i32, i32) {
    %c0_i32 = arith.constant 0 : i32
    %c0_i32_0 = arith.constant 0 : i32
    %c0_i32_1 = arith.constant 0 : i32
    return %c0_i32, %c0_i32_0 : i32, i32
  }
  func.func @transform_4(%arg0: i32) -> (i32, i32) {
    %c0_i32 = arith.constant 0 : i32
    %c0_i32_0 = arith.constant 0 : i32
    %c0_i32_1 = arith.constant 0 : i32
    return %c0_i32, %c0_i32_0 : i32, i32
  }
  func.func @transform_5(%arg0: i32) -> (i32, i32) {
    %c0_i32 = arith.constant 0 : i32
    %c0_i32_0 = arith.constant 0 : i32
    %c0_i32_1 = arith.constant 0 : i32
    return %c0_i32, %c0_i32_0 : i32, i32
  }
  func.func @transform_6(%arg0: i32) -> (i32, i32) {
    %c0_i32 = arith.constant 0 : i32
    %c0_i32_0 = arith.constant 0 : i32
    %c0_i32_1 = arith.constant 0 : i32
    return %c0_i32, %c0_i32_0 : i32, i32
  }
  func.func @transform_7(%arg0: i32) -> (i32, i32) {
    %c0_i32 = arith.constant 0 : i32
    %c0_i32_0 = arith.constant 0 : i32
    %c0_i32_1 = arith.constant 0 : i32
    return %c0_i32, %c0_i32_0 : i32, i32
  }
  func.func @transform_8(%arg0: i32) -> (i32, i32) {
    %c0_i32 = arith.constant 0 : i32
    %c0_i32_0 = arith.constant 0 : i32
    %c0_i32_1 = arith.constant 0 : i32
    return %c0_i32, %c0_i32_0 : i32, i32
  }
  func.func @transform_9(%arg0: i32) -> (i32, i32) {
    %c0_i32 = arith.constant 0 : i32
    %c0_i32_0 = arith.constant 0 : i32
    %c0_i32_1 = arith.constant 0 : i32
    return %c0_i32, %c0_i32_0 : i32, i32
  }
  func.func @transform_10(%arg0: i32) -> (i32, i32) {
    %c0_i32 = arith.constant 0 : i32
    %c0_i32_0 = arith.constant 0 : i32
    %c0_i32_1 = arith.constant 0 : i32
    return %c0_i32, %c0_i32_0 : i32, i32
  }
  func.func @transform_11(%arg0: i32) -> (i32, i32) {
    %c0_i32 = arith.constant 0 : i32
    %c0_i32_0 = arith.constant 0 : i32
    %c0_i32_1 = arith.constant 0 : i32
    return %c0_i32, %c0_i32_0 : i32, i32
  }
  func.func @transform_12(%arg0: i32) -> (i32, i32) {
    %c0_i32 = arith.constant 0 : i32
    %c0_i32_0 = arith.constant 0 : i32
    %c0_i32_1 = arith.constant 0 : i32
    return %c0_i32, %c0_i32_0 : i32, i32
  }
  func.func @transform_13(%arg0: i32) -> (i32, i32) {
    %c0_i32 = arith.constant 0 : i32
    %c0_i32_0 = arith.constant 0 : i32
    %c0_i32_1 = arith.constant 0 : i32
    return %c0_i32, %c0_i32_0 : i32, i32
  }
  func.func @transform_14(%arg0: i32) -> (i32, i32) {
    %c0_i32 = arith.constant 0 : i32
    %c0_i32_0 = arith.constant 0 : i32
    %c0_i32_1 = arith.constant 0 : i32
    return %c0_i32, %c0_i32_0 : i32, i32
  }
  func.func @transform_15(%arg0: i32) -> (i32, i32) {
    %c0_i32 = arith.constant 0 : i32
    %c0_i32_0 = arith.constant 0 : i32
    %c0_i32_1 = arith.constant 0 : i32
    return %c0_i32, %c0_i32_0 : i32, i32
  }
  func.func @transform_16(%arg0: i32) -> (i32, i32) {
    %c0_i32 = arith.constant 0 : i32
    %c0_i32_0 = arith.constant 0 : i32
    %c0_i32_1 = arith.constant 0 : i32
    return %c0_i32, %c0_i32_0 : i32, i32
  }
  func.func @transform_17(%arg0: i32) -> (i32, i32) {
    %c0_i32 = arith.constant 0 : i32
    %c0_i32_0 = arith.constant 0 : i32
    %c0_i32_1 = arith.constant 0 : i32
    return %c0_i32, %c0_i32_0 : i32, i32
  }
  func.func @transform_18(%arg0: i32) -> (i32, i32) {
    %c0_i32 = arith.constant 0 : i32
    %c0_i32_0 = arith.constant 0 : i32
    %c0_i32_1 = arith.constant 0 : i32
    return %c0_i32, %c0_i32_0 : i32, i32
  }
  func.func @transform_19(%arg0: i32) -> (i32, i32) {
    %c0_i32 = arith.constant 0 : i32
    %c0_i32_0 = arith.constant 0 : i32
    %c0_i32_1 = arith.constant 0 : i32
    return %c0_i32, %c0_i32_0 : i32, i32
  }
  func.func @transform_20(%arg0: i32) -> (i32, i32) {
    %c0_i32 = arith.constant 0 : i32
    %c0_i32_0 = arith.constant 0 : i32
    %c0_i32_1 = arith.constant 0 : i32
    return %c0_i32, %c0_i32_0 : i32, i32
  }
  func.func @transform_21(%arg0: i32) -> (i32, i32) {
    %c0_i32 = arith.constant 0 : i32
    %c0_i32_0 = arith.constant 0 : i32
    %c0_i32_1 = arith.constant 0 : i32
    return %c0_i32, %c0_i32_0 : i32, i32
  }
  func.func @transform_22(%arg0: i32) -> (i32, i32, i32) {
    %c0_i32 = arith.constant 0 : i32
    %c0_i32_0 = arith.constant 0 : i32
    %c0_i32_1 = arith.constant 0 : i32
    return %arg0, %c0_i32, %c0_i32_0 : i32, i32, i32
  }
}

module attributes {stable_mosaic.version = 11 : i64} {
  func.func @_encoder_layer_kernel(%arg0: i32, %arg1: memref<1x6x32xf32, #tpu.memory_space<vmem>>, %arg2: memref<32x96xf32, #tpu.memory_space<vmem>>, %arg3: memref<1x96xf32, #tpu.memory_space<vmem>>, %arg4: memref<32x32xf32, #tpu.memory_space<vmem>>, %arg5: memref<1x32xf32, #tpu.memory_space<vmem>>, %arg6: memref<1x32xf32, #tpu.memory_space<vmem>>, %arg7: memref<1x32xf32, #tpu.memory_space<vmem>>, %arg8: memref<32x64xf32, #tpu.memory_space<vmem>>, %arg9: memref<1x64xf32, #tpu.memory_space<vmem>>, %arg10: memref<64x32xf32, #tpu.memory_space<vmem>>, %arg11: memref<1x32xf32, #tpu.memory_space<vmem>>, %arg12: memref<1x32xf32, #tpu.memory_space<vmem>>, %arg13: memref<1x32xf32, #tpu.memory_space<vmem>>, %arg14: memref<1x32xf32, #tpu.memory_space<vmem>>, %arg15: memref<1x32xf32, #tpu.memory_space<vmem>>, %arg16: memref<1x6x32xf32, #tpu.memory_space<vmem>>, %arg17: memref<6x32xf32, #tpu.memory_space<vmem>>) attributes {dimension_semantics = [#tpu.dimension_semantics<parallel>], iteration_bounds = array<i64: 2>, scalar_prefetch = 0 : i64, scratch_operands = 1 : i64, tpu.core_type = #tpu.core_type<tc>, window_params = [{transform_indices = @transform_0, window_bounds = array<i64: 1, 6, 32>}, {pipeline_mode = #tpu.pipeline_mode<synchronous>, transform_indices = @transform_1, window_bounds = array<i64: 32, 96>}, {pipeline_mode = #tpu.pipeline_mode<synchronous>, transform_indices = @transform_2, window_bounds = array<i64: 1, 96>}, {pipeline_mode = #tpu.pipeline_mode<synchronous>, transform_indices = @transform_3, window_bounds = array<i64: 32, 32>}, {pipeline_mode = #tpu.pipeline_mode<synchronous>, transform_indices = @transform_4, window_bounds = array<i64: 1, 32>}, {pipeline_mode = #tpu.pipeline_mode<synchronous>, transform_indices = @transform_5, window_bounds = array<i64: 1, 32>}, {pipeline_mode = #tpu.pipeline_mode<synchronous>, transform_indices = @transform_6, window_bounds = array<i64: 1, 32>}, {pipeline_mode = #tpu.pipeline_mode<synchronous>, transform_indices = @transform_7, window_bounds = array<i64: 32, 64>}, {pipeline_mode = #tpu.pipeline_mode<synchronous>, transform_indices = @transform_8, window_bounds = array<i64: 1, 64>}, {pipeline_mode = #tpu.pipeline_mode<synchronous>, transform_indices = @transform_9, window_bounds = array<i64: 64, 32>}, {pipeline_mode = #tpu.pipeline_mode<synchronous>, transform_indices = @transform_10, window_bounds = array<i64: 1, 32>}, {pipeline_mode = #tpu.pipeline_mode<synchronous>, transform_indices = @transform_11, window_bounds = array<i64: 1, 32>}, {pipeline_mode = #tpu.pipeline_mode<synchronous>, transform_indices = @transform_12, window_bounds = array<i64: 1, 32>}, {pipeline_mode = #tpu.pipeline_mode<synchronous>, transform_indices = @transform_13, window_bounds = array<i64: 1, 32>}, {pipeline_mode = #tpu.pipeline_mode<synchronous>, transform_indices = @transform_14, window_bounds = array<i64: 1, 32>}, {transform_indices = @transform_15, window_bounds = array<i64: 1, 6, 32>}]} {
    %c0 = arith.constant 0 : index
    %c0_0 = arith.constant 0 : index
    %c0_1 = arith.constant 0 : index
    %0 = vector.load %arg1[%c0, %c0_0, %c0_1] : memref<1x6x32xf32, #tpu.memory_space<vmem>>, vector<1x6x32xf32>
    %1 = vector.shape_cast %0 : vector<1x6x32xf32> to vector<6x32xf32>
    %c0_2 = arith.constant 0 : index
    %c0_3 = arith.constant 0 : index
    %2 = vector.load %arg2[%c0_2, %c0_3] : memref<32x96xf32, #tpu.memory_space<vmem>>, vector<32x96xf32>
    %c0_4 = arith.constant 0 : index
    %c0_5 = arith.constant 0 : index
    %3 = vector.load %arg3[%c0_4, %c0_5] : memref<1x96xf32, #tpu.memory_space<vmem>>, vector<1x96xf32>
    %c0_6 = arith.constant 0 : index
    %c0_7 = arith.constant 0 : index
    %4 = vector.load %arg4[%c0_6, %c0_7] : memref<32x32xf32, #tpu.memory_space<vmem>>, vector<32x32xf32>
    %c0_8 = arith.constant 0 : index
    %c0_9 = arith.constant 0 : index
    %5 = vector.load %arg5[%c0_8, %c0_9] : memref<1x32xf32, #tpu.memory_space<vmem>>, vector<1x32xf32>
    %c0_10 = arith.constant 0 : index
    %c0_11 = arith.constant 0 : index
    %6 = vector.load %arg6[%c0_10, %c0_11] : memref<1x32xf32, #tpu.memory_space<vmem>>, vector<1x32xf32>
    %c0_12 = arith.constant 0 : index
    %c0_13 = arith.constant 0 : index
    %7 = vector.load %arg7[%c0_12, %c0_13] : memref<1x32xf32, #tpu.memory_space<vmem>>, vector<1x32xf32>
    %c0_14 = arith.constant 0 : index
    %c0_15 = arith.constant 0 : index
    %8 = vector.load %arg8[%c0_14, %c0_15] : memref<32x64xf32, #tpu.memory_space<vmem>>, vector<32x64xf32>
    %c0_16 = arith.constant 0 : index
    %c0_17 = arith.constant 0 : index
    %9 = vector.load %arg9[%c0_16, %c0_17] : memref<1x64xf32, #tpu.memory_space<vmem>>, vector<1x64xf32>
    %c0_18 = arith.constant 0 : index
    %c0_19 = arith.constant 0 : index
    %10 = vector.load %arg10[%c0_18, %c0_19] : memref<64x32xf32, #tpu.memory_space<vmem>>, vector<64x32xf32>
    %c0_20 = arith.constant 0 : index
    %c0_21 = arith.constant 0 : index
    %11 = vector.load %arg11[%c0_20, %c0_21] : memref<1x32xf32, #tpu.memory_space<vmem>>, vector<1x32xf32>
    %c0_22 = arith.constant 0 : index
    %c0_23 = arith.constant 0 : index
    %12 = vector.load %arg12[%c0_22, %c0_23] : memref<1x32xf32, #tpu.memory_space<vmem>>, vector<1x32xf32>
    %c0_24 = arith.constant 0 : index
    %c0_25 = arith.constant 0 : index
    %13 = vector.load %arg13[%c0_24, %c0_25] : memref<1x32xf32, #tpu.memory_space<vmem>>, vector<1x32xf32>
    %cst = arith.constant dense<0.000000e+00> : vector<6x96xf32>
    %14 = tpu.matmul %1, %2, %cst {dimension_numbers = #tpu.dot_dimension_numbers<[1], [0], [0], [1], [0, 0, 1, 1], [], []>} : vector<6x32xf32>, vector<32x96xf32>, vector<6x96xf32> -> vector<6x96xf32>
    %15 = vector.broadcast %3 : vector<1x96xf32> to vector<6x96xf32>
    %16 = arith.addf %14, %15 : vector<6x96xf32>
    %17 = vector.extract_strided_slice %16 {offsets = [0, 0], sizes = [6, 32], strides = [1, 1]} : vector<6x96xf32> to vector<6x32xf32>
    %18 = vector.extract_strided_slice %16 {offsets = [0, 32], sizes = [6, 32], strides = [1, 1]} : vector<6x96xf32> to vector<6x32xf32>
    %19 = vector.extract_strided_slice %16 {offsets = [0, 64], sizes = [6, 32], strides = [1, 1]} : vector<6x96xf32> to vector<6x32xf32>
    %20 = vector.extract_strided_slice %17 {offsets = [0, 0], sizes = [6, 8], strides = [1, 1]} : vector<6x32xf32> to vector<6x8xf32>
    %21 = vector.extract_strided_slice %17 {offsets = [0, 8], sizes = [6, 8], strides = [1, 1]} : vector<6x32xf32> to vector<6x8xf32>
    %22 = vector.extract_strided_slice %17 {offsets = [0, 16], sizes = [6, 8], strides = [1, 1]} : vector<6x32xf32> to vector<6x8xf32>
    %23 = vector.extract_strided_slice %17 {offsets = [0, 24], sizes = [6, 8], strides = [1, 1]} : vector<6x32xf32> to vector<6x8xf32>
    %24 = vector.shape_cast %20 : vector<6x8xf32> to vector<1x6x8xf32>
    %25 = vector.shape_cast %21 : vector<6x8xf32> to vector<1x6x8xf32>
    %26 = vector.shape_cast %22 : vector<6x8xf32> to vector<1x6x8xf32>
    %27 = vector.shape_cast %23 : vector<6x8xf32> to vector<1x6x8xf32>
    %28 = tpu.concatenate %24, %25, %26, %27 in 0 : vector<1x6x8xf32>, vector<1x6x8xf32>, vector<1x6x8xf32>, vector<1x6x8xf32> -> vector<4x6x8xf32>
    %29 = vector.extract_strided_slice %18 {offsets = [0, 0], sizes = [6, 8], strides = [1, 1]} : vector<6x32xf32> to vector<6x8xf32>
    %30 = vector.extract_strided_slice %18 {offsets = [0, 8], sizes = [6, 8], strides = [1, 1]} : vector<6x32xf32> to vector<6x8xf32>
    %31 = vector.extract_strided_slice %18 {offsets = [0, 16], sizes = [6, 8], strides = [1, 1]} : vector<6x32xf32> to vector<6x8xf32>
    %32 = vector.extract_strided_slice %18 {offsets = [0, 24], sizes = [6, 8], strides = [1, 1]} : vector<6x32xf32> to vector<6x8xf32>
    %33 = vector.shape_cast %29 : vector<6x8xf32> to vector<1x6x8xf32>
    %34 = vector.shape_cast %30 : vector<6x8xf32> to vector<1x6x8xf32>
    %35 = vector.shape_cast %31 : vector<6x8xf32> to vector<1x6x8xf32>
    %36 = vector.shape_cast %32 : vector<6x8xf32> to vector<1x6x8xf32>
    %37 = tpu.concatenate %33, %34, %35, %36 in 0 : vector<1x6x8xf32>, vector<1x6x8xf32>, vector<1x6x8xf32>, vector<1x6x8xf32> -> vector<4x6x8xf32>
    %38 = vector.extract_strided_slice %19 {offsets = [0, 0], sizes = [6, 8], strides = [1, 1]} : vector<6x32xf32> to vector<6x8xf32>
    %39 = vector.extract_strided_slice %19 {offsets = [0, 8], sizes = [6, 8], strides = [1, 1]} : vector<6x32xf32> to vector<6x8xf32>
    %40 = vector.extract_strided_slice %19 {offsets = [0, 16], sizes = [6, 8], strides = [1, 1]} : vector<6x32xf32> to vector<6x8xf32>
    %41 = vector.extract_strided_slice %19 {offsets = [0, 24], sizes = [6, 8], strides = [1, 1]} : vector<6x32xf32> to vector<6x8xf32>
    %42 = vector.shape_cast %38 : vector<6x8xf32> to vector<1x6x8xf32>
    %43 = vector.shape_cast %39 : vector<6x8xf32> to vector<1x6x8xf32>
    %44 = vector.shape_cast %40 : vector<6x8xf32> to vector<1x6x8xf32>
    %45 = vector.shape_cast %41 : vector<6x8xf32> to vector<1x6x8xf32>
    %46 = tpu.concatenate %42, %43, %44, %45 in 0 : vector<1x6x8xf32>, vector<1x6x8xf32>, vector<1x6x8xf32>, vector<1x6x8xf32> -> vector<4x6x8xf32>
    "tpu.trace_start"() <{level = 10 : i32, message = "hqd,hkd->hqk"}> : () -> ()
    %cst_26 = arith.constant dense<0.000000e+00> : vector<4x6x6xf32>
    %47 = tpu.matmul %28, %37, %cst_26 {dimension_numbers = #tpu.dot_dimension_numbers<[2], [2], [1], [1], [0, 0, 0, 1, 1, 1], [0], [0]>} : vector<4x6x8xf32>, vector<4x6x8xf32>, vector<4x6x6xf32> -> vector<4x6x6xf32>
    "tpu.trace_stop"() : () -> ()
    %cst_27 = arith.constant 0.353553385 : f32
    %48 = vector.broadcast %cst_27 : f32 to vector<4x6x6xf32>
    %49 = arith.mulf %47, %48 : vector<4x6x6xf32>
    %cst_28 = arith.constant dense<0xFF800000> : vector<4x6xf32>
    %50 = vector.multi_reduction <maximumf>, %49, %cst_28 [2] : vector<4x6x6xf32> to vector<4x6xf32>
    %51 = vector.shape_cast %50 : vector<4x6xf32> to vector<4x6x1xf32>
    %52 = vector.broadcast %51 : vector<4x6x1xf32> to vector<4x6x6xf32>
    %53 = arith.subf %49, %52 : vector<4x6x6xf32>
    %54 = math.exp %53 : vector<4x6x6xf32>
    %cst_29 = arith.constant dense<0.000000e+00> : vector<4x6xf32>
    %55 = vector.multi_reduction <add>, %54, %cst_29 [2] : vector<4x6x6xf32> to vector<4x6xf32>
    %56 = vector.shape_cast %55 : vector<4x6xf32> to vector<4x6x1xf32>
    %57 = vector.broadcast %56 : vector<4x6x1xf32> to vector<4x6x6xf32>
    %58 = arith.divf %54, %57 : vector<4x6x6xf32>
    "tpu.trace_start"() <{level = 10 : i32, message = "hqk,hkd->hqd"}> : () -> ()
    %cst_30 = arith.constant dense<0.000000e+00> : vector<4x6x8xf32>
    %59 = tpu.matmul %58, %46, %cst_30 {dimension_numbers = #tpu.dot_dimension_numbers<[2], [1], [1], [2], [0, 0, 0, 1, 1, 2], [0], [0]>} : vector<4x6x6xf32>, vector<4x6x8xf32>, vector<4x6x8xf32> -> vector<4x6x8xf32>
    "tpu.trace_stop"() : () -> ()
    %60 = vector.extract_strided_slice %59 {offsets = [0, 0, 0], sizes = [1, 6, 8], strides = [1, 1, 1]} : vector<4x6x8xf32> to vector<1x6x8xf32>
    %61 = vector.shape_cast %60 : vector<1x6x8xf32> to vector<6x8xf32>
    %c0_31 = arith.constant 0 : index
    %c0_32 = arith.constant 0 : index
    %62 = vector.load %arg17[%c0_31, %c0_32] : memref<6x32xf32, #tpu.memory_space<vmem>>, vector<6x8xf32>
    tpu.vector_store %arg17[%c0_31, %c0_32], %61 {strides = array<i32>} : memref<6x32xf32, #tpu.memory_space<vmem>>, vector<6x8xf32>,
    %63 = vector.extract_strided_slice %59 {offsets = [1, 0, 0], sizes = [1, 6, 8], strides = [1, 1, 1]} : vector<4x6x8xf32> to vector<1x6x8xf32>
    %64 = vector.shape_cast %63 : vector<1x6x8xf32> to vector<6x8xf32>
    %c0_33 = arith.constant 0 : index
    %c8 = arith.constant 8 : index
    %65 = vector.load %arg17[%c0_33, %c8] : memref<6x32xf32, #tpu.memory_space<vmem>>, vector<6x8xf32>
    tpu.vector_store %arg17[%c0_33, %c8], %64 {strides = array<i32>} : memref<6x32xf32, #tpu.memory_space<vmem>>, vector<6x8xf32>,
    %66 = vector.extract_strided_slice %59 {offsets = [2, 0, 0], sizes = [1, 6, 8], strides = [1, 1, 1]} : vector<4x6x8xf32> to vector<1x6x8xf32>
    %67 = vector.shape_cast %66 : vector<1x6x8xf32> to vector<6x8xf32>
    %c0_34 = arith.constant 0 : index
    %c16 = arith.constant 16 : index
    %68 = vector.load %arg17[%c0_34, %c16] : memref<6x32xf32, #tpu.memory_space<vmem>>, vector<6x8xf32>
    tpu.vector_store %arg17[%c0_34, %c16], %67 {strides = array<i32>} : memref<6x32xf32, #tpu.memory_space<vmem>>, vector<6x8xf32>,
    %69 = vector.extract_strided_slice %59 {offsets = [3, 0, 0], sizes = [1, 6, 8], strides = [1, 1, 1]} : vector<4x6x8xf32> to vector<1x6x8xf32>
    %70 = vector.shape_cast %69 : vector<1x6x8xf32> to vector<6x8xf32>
    %c0_35 = arith.constant 0 : index
    %c24 = arith.constant 24 : index
    %71 = vector.load %arg17[%c0_35, %c24] : memref<6x32xf32, #tpu.memory_space<vmem>>, vector<6x8xf32>
    tpu.vector_store %arg17[%c0_35, %c24], %70 {strides = array<i32>} : memref<6x32xf32, #tpu.memory_space<vmem>>, vector<6x8xf32>,
    %c0_36 = arith.constant 0 : index
    %c0_37 = arith.constant 0 : index
    %72 = vector.load %arg17[%c0_36, %c0_37] : memref<6x32xf32, #tpu.memory_space<vmem>>, vector<6x32xf32>
    %cst_38 = arith.constant dense<0.000000e+00> : vector<6x32xf32>
    %73 = tpu.matmul %72, %4, %cst_38 {dimension_numbers = #tpu.dot_dimension_numbers<[1], [0], [0], [1], [0, 0, 1, 1], [], []>} : vector<6x32xf32>, vector<32x32xf32>, vector<6x32xf32> -> vector<6x32xf32>
    %74 = vector.broadcast %5 : vector<1x32xf32> to vector<6x32xf32>
    %75 = arith.addf %73, %74 : vector<6x32xf32>
    %76 = arith.addf %1, %75 : vector<6x32xf32>
    %cst_39 = arith.constant dense<0.000000e+00> : vector<6xf32>
    %77 = vector.multi_reduction <add>, %76, %cst_39 [1] : vector<6x32xf32> to vector<6xf32>
    %78 = vector.shape_cast %77 : vector<6xf32> to vector<6x1xf32>
    %cst_40 = arith.constant 3.200000e+01 : f32
    %79 = vector.broadcast %cst_40 : f32 to vector<6x1xf32>
    %80 = arith.divf %78, %79 : vector<6x1xf32>
    %81 = vector.broadcast %80 : vector<6x1xf32> to vector<6x32xf32>
    %82 = arith.subf %76, %81 : vector<6x32xf32>
    %83 = arith.mulf %82, %82 : vector<6x32xf32>
    %cst_41 = arith.constant dense<0.000000e+00> : vector<6xf32>
    %84 = vector.multi_reduction <add>, %83, %cst_41 [1] : vector<6x32xf32> to vector<6xf32>
    %85 = vector.shape_cast %84 : vector<6xf32> to vector<6x1xf32>
    %cst_42 = arith.constant 3.200000e+01 : f32
    %86 = vector.broadcast %cst_42 : f32 to vector<6x1xf32>
    %87 = arith.divf %85, %86 : vector<6x1xf32>
    %88 = vector.broadcast %80 : vector<6x1xf32> to vector<6x32xf32>
    %89 = arith.subf %76, %88 : vector<6x32xf32>
    %cst_43 = arith.constant 9.99999974E-6 : f32
    %90 = vector.broadcast %cst_43 : f32 to vector<6x1xf32>
    %91 = arith.addf %87, %90 : vector<6x1xf32>
    %92 = math.rsqrt %91 : vector<6x1xf32>
    %93 = vector.broadcast %92 : vector<6x1xf32> to vector<6x32xf32>
    %94 = arith.mulf %89, %93 : vector<6x32xf32>
    %95 = vector.broadcast %6 : vector<1x32xf32> to vector<6x32xf32>
    %96 = arith.mulf %94, %95 : vector<6x32xf32>
    %97 = vector.broadcast %7 : vector<1x32xf32> to vector<6x32xf32>
    %98 = arith.addf %96, %97 : vector<6x32xf32>
    %cst_44 = arith.constant dense<0.000000e+00> : vector<6x64xf32>
    %99 = tpu.matmul %98, %8, %cst_44 {dimension_numbers = #tpu.dot_dimension_numbers<[1], [0], [0], [1], [0, 0, 1, 1], [], []>} : vector<6x32xf32>, vector<32x64xf32>, vector<6x64xf32> -> vector<6x64xf32>
    %100 = vector.broadcast %9 : vector<1x64xf32> to vector<6x64xf32>
    %101 = arith.addf %99, %100 : vector<6x64xf32>
    %cst_45 = arith.constant 0.000000e+00 : f32
    %102 = vector.broadcast %cst_45 : f32 to vector<6x64xf32>
    %103 = arith.maximumf %101, %102 : vector<6x64xf32>
    %cst_46 = arith.constant dense<0.000000e+00> : vector<6x32xf32>
    %104 = tpu.matmul %103, %10, %cst_46 {dimension_numbers = #tpu.dot_dimension_numbers<[1], [0], [0], [1], [0, 0, 1, 1], [], []>} : vector<6x64xf32>, vector<64x32xf32>, vector<6x32xf32> -> vector<6x32xf32>
    %105 = vector.broadcast %11 : vector<1x32xf32> to vector<6x32xf32>
    %106 = arith.addf %104, %105 : vector<6x32xf32>
    %107 = arith.addf %98, %106 : vector<6x32xf32>
    %cst_47 = arith.constant dense<0.000000e+00> : vector<6xf32>
    %108 = vector.multi_reduction <add>, %107, %cst_47 [1] : vector<6x32xf32> to vector<6xf32>
    %109 = vector.shape_cast %108 : vector<6xf32> to vector<6x1xf32>
    %cst_48 = arith.constant 3.200000e+01 : f32
    %110 = vector.broadcast %cst_48 : f32 to vector<6x1xf32>
    %111 = arith.divf %109, %110 : vector<6x1xf32>
    %112 = vector.broadcast %111 : vector<6x1xf32> to vector<6x32xf32>
    %113 = arith.subf %107, %112 : vector<6x32xf32>
    %114 = arith.mulf %113, %113 : vector<6x32xf32>
    %cst_49 = arith.constant dense<0.000000e+00> : vector<6xf32>
    %115 = vector.multi_reduction <add>, %114, %cst_49 [1] : vector<6x32xf32> to vector<6xf32>
    %116 = vector.shape_cast %115 : vector<6xf32> to vector<6x1xf32>
    %cst_50 = arith.constant 3.200000e+01 : f32
    %117 = vector.broadcast %cst_50 : f32 to vector<6x1xf32>
    %118 = arith.divf %116, %117 : vector<6x1xf32>
    %119 = vector.broadcast %111 : vector<6x1xf32> to vector<6x32xf32>
    %120 = arith.subf %107, %119 : vector<6x32xf32>
    %cst_51 = arith.constant 9.99999974E-6 : f32
    %121 = vector.broadcast %cst_51 : f32 to vector<6x1xf32>
    %122 = arith.addf %118, %121 : vector<6x1xf32>
    %123 = math.rsqrt %122 : vector<6x1xf32>
    %124 = vector.broadcast %123 : vector<6x1xf32> to vector<6x32xf32>
    %125 = arith.mulf %120, %124 : vector<6x32xf32>
    %126 = vector.broadcast %12 : vector<1x32xf32> to vector<6x32xf32>
    %127 = arith.mulf %125, %126 : vector<6x32xf32>
    %128 = vector.broadcast %13 : vector<1x32xf32> to vector<6x32xf32>
    %129 = arith.addf %127, %128 : vector<6x32xf32>
    %c0_52 = arith.constant 0 : index
    %c0_53 = arith.constant 0 : index
    %130 = vector.load %arg14[%c0_52, %c0_53] : memref<1x32xf32, #tpu.memory_space<vmem>>, vector<1x32xf32>
    %c0_54 = arith.constant 0 : index
    %c0_55 = arith.constant 0 : index
    %131 = vector.load %arg15[%c0_54, %c0_55] : memref<1x32xf32, #tpu.memory_space<vmem>>, vector<1x32xf32>
    %cst_56 = arith.constant dense<0.000000e+00> : vector<6xf32>
    %132 = vector.multi_reduction <add>, %129, %cst_56 [1] : vector<6x32xf32> to vector<6xf32>
    %133 = vector.shape_cast %132 : vector<6xf32> to vector<6x1xf32>
    %cst_57 = arith.constant 3.200000e+01 : f32
    %134 = vector.broadcast %cst_57 : f32 to vector<6x1xf32>
    %135 = arith.divf %133, %134 : vector<6x1xf32>
    %136 = vector.broadcast %135 : vector<6x1xf32> to vector<6x32xf32>
    %137 = arith.subf %129, %136 : vector<6x32xf32>
    %138 = arith.mulf %137, %137 : vector<6x32xf32>
    %cst_58 = arith.constant dense<0.000000e+00> : vector<6xf32>
    %139 = vector.multi_reduction <add>, %138, %cst_58 [1] : vector<6x32xf32> to vector<6xf32>
    %140 = vector.shape_cast %139 : vector<6xf32> to vector<6x1xf32>
    %cst_59 = arith.constant 3.200000e+01 : f32
    %141 = vector.broadcast %cst_59 : f32 to vector<6x1xf32>
    %142 = arith.divf %140, %141 : vector<6x1xf32>
    %143 = vector.broadcast %135 : vector<6x1xf32> to vector<6x32xf32>
    %144 = arith.subf %129, %143 : vector<6x32xf32>
    %cst_60 = arith.constant 9.99999974E-6 : f32
    %145 = vector.broadcast %cst_60 : f32 to vector<6x1xf32>
    %146 = arith.addf %142, %145 : vector<6x1xf32>
    %147 = math.rsqrt %146 : vector<6x1xf32>
    %148 = vector.broadcast %147 : vector<6x1xf32> to vector<6x32xf32>
    %149 = arith.mulf %144, %148 : vector<6x32xf32>
    %150 = vector.broadcast %130 : vector<1x32xf32> to vector<6x32xf32>
    %151 = arith.mulf %149, %150 : vector<6x32xf32>
    %152 = vector.broadcast %131 : vector<1x32xf32> to vector<6x32xf32>
    %153 = arith.addf %151, %152 : vector<6x32xf32>
    %154 = vector.shape_cast %153 : vector<6x32xf32> to vector<1x6x32xf32>
    %c0_61 = arith.constant 0 : index
    %c0_62 = arith.constant 0 : index
    %c0_63 = arith.constant 0 : index
    %155 = vector.load %arg16[%c0_61, %c0_62, %c0_63] : memref<1x6x32xf32, #tpu.memory_space<vmem>>, vector<1x6x32xf32>
    tpu.vector_store %arg16[%c0_61, %c0_62, %c0_63], %154 {strides = array<i32>} : memref<1x6x32xf32, #tpu.memory_space<vmem>>, vector<1x6x32xf32>,
    return
  }
  func.func @transform_0(%arg0: i32) -> (i32, i32, i32) {
    %c0_i32 = arith.constant 0 : i32
    %c0_i32_0 = arith.constant 0 : i32
    %c0_i32_1 = arith.constant 0 : i32
    return %arg0, %c0_i32, %c0_i32_0 : i32, i32, i32
  }
  func.func @transform_1(%arg0: i32) -> (i32, i32) {
    %c0_i32 = arith.constant 0 : i32
    %c0_i32_0 = arith.constant 0 : i32
    %c0_i32_1 = arith.constant 0 : i32
    return %c0_i32, %c0_i32_0 : i32, i32
  }
  func.func @transform_2(%arg0: i32) -> (i32, i32) {
    %c0_i32 = arith.constant 0 : i32
    %c0_i32_0 = arith.constant 0 : i32
    %c0_i32_1 = arith.constant 0 : i32
    return %c0_i32, %c0_i32_0 : i32, i32
  }
  func.func @transform_3(%arg0: i32) -> (i32, i32) {
    %c0_i32 = arith.constant 0 : i32
    %c0_i32_0 = arith.constant 0 : i32
    %c0_i32_1 = arith.constant 0 : i32
    return %c0_i32, %c0_i32_0 : i32, i32
  }
  func.func @transform_4(%arg0: i32) -> (i32, i32) {
    %c0_i32 = arith.constant 0 : i32
    %c0_i32_0 = arith.constant 0 : i32
    %c0_i32_1 = arith.constant 0 : i32
    return %c0_i32, %c0_i32_0 : i32, i32
  }
  func.func @transform_5(%arg0: i32) -> (i32, i32) {
    %c0_i32 = arith.constant 0 : i32
    %c0_i32_0 = arith.constant 0 : i32
    %c0_i32_1 = arith.constant 0 : i32
    return %c0_i32, %c0_i32_0 : i32, i32
  }
  func.func @transform_6(%arg0: i32) -> (i32, i32) {
    %c0_i32 = arith.constant 0 : i32
    %c0_i32_0 = arith.constant 0 : i32
    %c0_i32_1 = arith.constant 0 : i32
    return %c0_i32, %c0_i32_0 : i32, i32
  }
  func.func @transform_7(%arg0: i32) -> (i32, i32) {
    %c0_i32 = arith.constant 0 : i32
    %c0_i32_0 = arith.constant 0 : i32
    %c0_i32_1 = arith.constant 0 : i32
    return %c0_i32, %c0_i32_0 : i32, i32
  }
  func.func @transform_8(%arg0: i32) -> (i32, i32) {
    %c0_i32 = arith.constant 0 : i32
    %c0_i32_0 = arith.constant 0 : i32
    %c0_i32_1 = arith.constant 0 : i32
    return %c0_i32, %c0_i32_0 : i32, i32
  }
  func.func @transform_9(%arg0: i32) -> (i32, i32) {
    %c0_i32 = arith.constant 0 : i32
    %c0_i32_0 = arith.constant 0 : i32
    %c0_i32_1 = arith.constant 0 : i32
    return %c0_i32, %c0_i32_0 : i32, i32
  }
  func.func @transform_10(%arg0: i32) -> (i32, i32) {
    %c0_i32 = arith.constant 0 : i32
    %c0_i32_0 = arith.constant 0 : i32
    %c0_i32_1 = arith.constant 0 : i32
    return %c0_i32, %c0_i32_0 : i32, i32
  }
  func.func @transform_11(%arg0: i32) -> (i32, i32) {
    %c0_i32 = arith.constant 0 : i32
    %c0_i32_0 = arith.constant 0 : i32
    %c0_i32_1 = arith.constant 0 : i32
    return %c0_i32, %c0_i32_0 : i32, i32
  }
  func.func @transform_12(%arg0: i32) -> (i32, i32) {
    %c0_i32 = arith.constant 0 : i32
    %c0_i32_0 = arith.constant 0 : i32
    %c0_i32_1 = arith.constant 0 : i32
    return %c0_i32, %c0_i32_0 : i32, i32
  }
  func.func @transform_13(%arg0: i32) -> (i32, i32) {
    %c0_i32 = arith.constant 0 : i32
    %c0_i32_0 = arith.constant 0 : i32
    %c0_i32_1 = arith.constant 0 : i32
    return %c0_i32, %c0_i32_0 : i32, i32
  }
  func.func @transform_14(%arg0: i32) -> (i32, i32) {
    %c0_i32 = arith.constant 0 : i32
    %c0_i32_0 = arith.constant 0 : i32
    %c0_i32_1 = arith.constant 0 : i32
    return %c0_i32, %c0_i32_0 : i32, i32
  }
  func.func @transform_15(%arg0: i32) -> (i32, i32, i32) {
    %c0_i32 = arith.constant 0 : i32
    %c0_i32_0 = arith.constant 0 : i32
    %c0_i32_1 = arith.constant 0 : i32
    return %arg0, %c0_i32, %c0_i32_0 : i32, i32, i32
  }
}

module attributes {stable_mosaic.version = 11 : i64} {
  func.func @_decoder_layer_kernel(%arg0: i32, %arg1: memref<1x8x32xf32, #tpu.memory_space<vmem>>, %arg2: memref<1x6x32xf32, #tpu.memory_space<vmem>>, %arg3: memref<32x96xf32, #tpu.memory_space<vmem>>, %arg4: memref<1x96xf32, #tpu.memory_space<vmem>>, %arg5: memref<32x32xf32, #tpu.memory_space<vmem>>, %arg6: memref<1x32xf32, #tpu.memory_space<vmem>>, %arg7: memref<1x32xf32, #tpu.memory_space<vmem>>, %arg8: memref<1x32xf32, #tpu.memory_space<vmem>>, %arg9: memref<32x32xf32, #tpu.memory_space<vmem>>, %arg10: memref<1x32xf32, #tpu.memory_space<vmem>>, %arg11: memref<32x64xf32, #tpu.memory_space<vmem>>, %arg12: memref<1x64xf32, #tpu.memory_space<vmem>>, %arg13: memref<32x32xf32, #tpu.memory_space<vmem>>, %arg14: memref<1x32xf32, #tpu.memory_space<vmem>>, %arg15: memref<1x32xf32, #tpu.memory_space<vmem>>, %arg16: memref<1x32xf32, #tpu.memory_space<vmem>>, %arg17: memref<32x64xf32, #tpu.memory_space<vmem>>, %arg18: memref<1x64xf32, #tpu.memory_space<vmem>>, %arg19: memref<64x32xf32, #tpu.memory_space<vmem>>, %arg20: memref<1x32xf32, #tpu.memory_space<vmem>>, %arg21: memref<1x32xf32, #tpu.memory_space<vmem>>, %arg22: memref<1x32xf32, #tpu.memory_space<vmem>>, %arg23: memref<1x8x32xf32, #tpu.memory_space<vmem>>, %arg24: memref<8x32xf32, #tpu.memory_space<vmem>>) attributes {dimension_semantics = [#tpu.dimension_semantics<parallel>], iteration_bounds = array<i64: 2>, scalar_prefetch = 0 : i64, scratch_operands = 1 : i64, tpu.core_type = #tpu.core_type<tc>, window_params = [{transform_indices = @transform_0, window_bounds = array<i64: 1, 8, 32>}, {transform_indices = @transform_1, window_bounds = array<i64: 1, 6, 32>}, {pipeline_mode = #tpu.pipeline_mode<synchronous>, transform_indices = @transform_2, window_bounds = array<i64: 32, 96>}, {pipeline_mode = #tpu.pipeline_mode<synchronous>, transform_indices = @transform_3, window_bounds = array<i64: 1, 96>}, {pipeline_mode = #tpu.pipeline_mode<synchronous>, transform_indices = @transform_4, window_bounds = array<i64: 32, 32>}, {pipeline_mode = #tpu.pipeline_mode<synchronous>, transform_indices = @transform_5, window_bounds = array<i64: 1, 32>}, {pipeline_mode = #tpu.pipeline_mode<synchronous>, transform_indices = @transform_6, window_bounds = array<i64: 1, 32>}, {pipeline_mode = #tpu.pipeline_mode<synchronous>, transform_indices = @transform_7, window_bounds = array<i64: 1, 32>}, {pipeline_mode = #tpu.pipeline_mode<synchronous>, transform_indices = @transform_8, window_bounds = array<i64: 32, 32>}, {pipeline_mode = #tpu.pipeline_mode<synchronous>, transform_indices = @transform_9, window_bounds = array<i64: 1, 32>}, {pipeline_mode = #tpu.pipeline_mode<synchronous>, transform_indices = @transform_10, window_bounds = array<i64: 32, 64>}, {pipeline_mode = #tpu.pipeline_mode<synchronous>, transform_indices = @transform_11, window_bounds = array<i64: 1, 64>}, {pipeline_mode = #tpu.pipeline_mode<synchronous>, transform_indices = @transform_12, window_bounds = array<i64: 32, 32>}, {pipeline_mode = #tpu.pipeline_mode<synchronous>, transform_indices = @transform_13, window_bounds = array<i64: 1, 32>}, {pipeline_mode = #tpu.pipeline_mode<synchronous>, transform_indices = @transform_14, window_bounds = array<i64: 1, 32>}, {pipeline_mode = #tpu.pipeline_mode<synchronous>, transform_indices = @transform_15, window_bounds = array<i64: 1, 32>}, {pipeline_mode = #tpu.pipeline_mode<synchronous>, transform_indices = @transform_16, window_bounds = array<i64: 32, 64>}, {pipeline_mode = #tpu.pipeline_mode<synchronous>, transform_indices = @transform_17, window_bounds = array<i64: 1, 64>}, {pipeline_mode = #tpu.pipeline_mode<synchronous>, transform_indices = @transform_18, window_bounds = array<i64: 64, 32>}, {pipeline_mode = #tpu.pipeline_mode<synchronous>, transform_indices = @transform_19, window_bounds = array<i64: 1, 32>}, {pipeline_mode = #tpu.pipeline_mode<synchronous>, transform_indices = @transform_20, window_bounds = array<i64: 1, 32>}, {pipeline_mode = #tpu.pipeline_mode<synchronous>, transform_indices = @transform_21, window_bounds = array<i64: 1, 32>}, {transform_indices = @transform_22, window_bounds = array<i64: 1, 8, 32>}]} {
    %c0 = arith.constant 0 : index
    %c0_0 = arith.constant 0 : index
    %c0_1 = arith.constant 0 : index
    %0 = vector.load %arg1[%c0, %c0_0, %c0_1] : memref<1x8x32xf32, #tpu.memory_space<vmem>>, vector<1x8x32xf32>
    %1 = vector.shape_cast %0 : vector<1x8x32xf32> to vector<8x32xf32>
    %c0_2 = arith.constant 0 : index
    %c0_3 = arith.constant 0 : index
    %c0_4 = arith.constant 0 : index
    %2 = vector.load %arg2[%c0_2, %c0_3, %c0_4] : memref<1x6x32xf32, #tpu.memory_space<vmem>>, vector<1x6x32xf32>
    %3 = vector.shape_cast %2 : vector<1x6x32xf32> to vector<6x32xf32>
    %c0_5 = arith.constant 0 : index
    %c0_6 = arith.constant 0 : index
    %4 = vector.load %arg3[%c0_5, %c0_6] : memref<32x96xf32, #tpu.memory_space<vmem>>, vector<32x96xf32>
    %c0_7 = arith.constant 0 : index
    %c0_8 = arith.constant 0 : index
    %5 = vector.load %arg4[%c0_7, %c0_8] : memref<1x96xf32, #tpu.memory_space<vmem>>, vector<1x96xf32>
    %c0_9 = arith.constant 0 : index
    %c0_10 = arith.constant 0 : index
    %6 = vector.load %arg5[%c0_9, %c0_10] : memref<32x32xf32, #tpu.memory_space<vmem>>, vector<32x32xf32>
    %c0_11 = arith.constant 0 : index
    %c0_12 = arith.constant 0 : index
    %7 = vector.load %arg6[%c0_11, %c0_12] : memref<1x32xf32, #tpu.memory_space<vmem>>, vector<1x32xf32>
    %c0_13 = arith.constant 0 : index
    %c0_14 = arith.constant 0 : index
    %8 = vector.load %arg7[%c0_13, %c0_14] : memref<1x32xf32, #tpu.memory_space<vmem>>, vector<1x32xf32>
    %c0_15 = arith.constant 0 : index
    %c0_16 = arith.constant 0 : index
    %9 = vector.load %arg8[%c0_15, %c0_16] : memref<1x32xf32, #tpu.memory_space<vmem>>, vector<1x32xf32>
    %c0_17 = arith.constant 0 : index
    %c0_18 = arith.constant 0 : index
    %10 = vector.load %arg9[%c0_17, %c0_18] : memref<32x32xf32, #tpu.memory_space<vmem>>, vector<32x32xf32>
    %c0_19 = arith.constant 0 : index
    %c0_20 = arith.constant 0 : index
    %11 = vector.load %arg10[%c0_19, %c0_20] : memref<1x32xf32, #tpu.memory_space<vmem>>, vector<1x32xf32>
    %c0_21 = arith.constant 0 : index
    %c0_22 = arith.constant 0 : index
    %12 = vector.load %arg11[%c0_21, %c0_22] : memref<32x64xf32, #tpu.memory_space<vmem>>, vector<32x64xf32>
    %c0_23 = arith.constant 0 : index
    %c0_24 = arith.constant 0 : index
    %13 = vector.load %arg12[%c0_23, %c0_24] : memref<1x64xf32, #tpu.memory_space<vmem>>, vector<1x64xf32>
    %c0_25 = arith.constant 0 : index
    %c0_26 = arith.constant 0 : index
    %14 = vector.load %arg13[%c0_25, %c0_26] : memref<32x32xf32, #tpu.memory_space<vmem>>, vector<32x32xf32>
    %c0_27 = arith.constant 0 : index
    %c0_28 = arith.constant 0 : index
    %15 = vector.load %arg14[%c0_27, %c0_28] : memref<1x32xf32, #tpu.memory_space<vmem>>, vector<1x32xf32>
    %c0_29 = arith.constant 0 : index
    %c0_30 = arith.constant 0 : index
    %16 = vector.load %arg15[%c0_29, %c0_30] : memref<1x32xf32, #tpu.memory_space<vmem>>, vector<1x32xf32>
    %c0_31 = arith.constant 0 : index
    %c0_32 = arith.constant 0 : index
    %17 = vector.load %arg16[%c0_31, %c0_32] : memref<1x32xf32, #tpu.memory_space<vmem>>, vector<1x32xf32>
    %c0_33 = arith.constant 0 : index
    %c0_34 = arith.constant 0 : index
    %18 = vector.load %arg17[%c0_33, %c0_34] : memref<32x64xf32, #tpu.memory_space<vmem>>, vector<32x64xf32>
    %c0_35 = arith.constant 0 : index
    %c0_36 = arith.constant 0 : index
    %19 = vector.load %arg18[%c0_35, %c0_36] : memref<1x64xf32, #tpu.memory_space<vmem>>, vector<1x64xf32>
    %c0_37 = arith.constant 0 : index
    %c0_38 = arith.constant 0 : index
    %20 = vector.load %arg19[%c0_37, %c0_38] : memref<64x32xf32, #tpu.memory_space<vmem>>, vector<64x32xf32>
    %c0_39 = arith.constant 0 : index
    %c0_40 = arith.constant 0 : index
    %21 = vector.load %arg20[%c0_39, %c0_40] : memref<1x32xf32, #tpu.memory_space<vmem>>, vector<1x32xf32>
    %c0_41 = arith.constant 0 : index
    %c0_42 = arith.constant 0 : index
    %22 = vector.load %arg21[%c0_41, %c0_42] : memref<1x32xf32, #tpu.memory_space<vmem>>, vector<1x32xf32>
    %c0_43 = arith.constant 0 : index
    %c0_44 = arith.constant 0 : index
    %23 = vector.load %arg22[%c0_43, %c0_44] : memref<1x32xf32, #tpu.memory_space<vmem>>, vector<1x32xf32>
    %cst = arith.constant dense<0.000000e+00> : vector<8x96xf32>
    %24 = tpu.matmul %1, %4, %cst {dimension_numbers = #tpu.dot_dimension_numbers<[1], [0], [0], [1], [0, 0, 1, 1], [], []>} : vector<8x32xf32>, vector<32x96xf32>, vector<8x96xf32> -> vector<8x96xf32>
    %25 = vector.broadcast %5 : vector<1x96xf32> to vector<8x96xf32>
    %26 = arith.addf %24, %25 : vector<8x96xf32>
    %27 = vector.extract_strided_slice %26 {offsets = [0, 0], sizes = [8, 32], strides = [1, 1]} : vector<8x96xf32> to vector<8x32xf32>
    %28 = vector.extract_strided_slice %26 {offsets = [0, 32], sizes = [8, 32], strides = [1, 1]} : vector<8x96xf32> to vector<8x32xf32>
    %29 = vector.extract_strided_slice %26 {offsets = [0, 64], sizes = [8, 32], strides = [1, 1]} : vector<8x96xf32> to vector<8x32xf32>
    %30 = vector.extract_strided_slice %27 {offsets = [0, 0], sizes = [8, 8], strides = [1, 1]} : vector<8x32xf32> to vector<8x8xf32>
    %31 = vector.extract_strided_slice %27 {offsets = [0, 8], sizes = [8, 8], strides = [1, 1]} : vector<8x32xf32> to vector<8x8xf32>
    %32 = vector.extract_strided_slice %27 {offsets = [0, 16], sizes = [8, 8], strides = [1, 1]} : vector<8x32xf32> to vector<8x8xf32>
    %33 = vector.extract_strided_slice %27 {offsets = [0, 24], sizes = [8, 8], strides = [1, 1]} : vector<8x32xf32> to vector<8x8xf32>
    %34 = vector.shape_cast %30 : vector<8x8xf32> to vector<1x8x8xf32>
    %35 = vector.shape_cast %31 : vector<8x8xf32> to vector<1x8x8xf32>
    %36 = vector.shape_cast %32 : vector<8x8xf32> to vector<1x8x8xf32>
    %37 = vector.shape_cast %33 : vector<8x8xf32> to vector<1x8x8xf32>
    %38 = tpu.concatenate %34, %35, %36, %37 in 0 : vector<1x8x8xf32>, vector<1x8x8xf32>, vector<1x8x8xf32>, vector<1x8x8xf32> -> vector<4x8x8xf32>
    %39 = vector.extract_strided_slice %28 {offsets = [0, 0], sizes = [8, 8], strides = [1, 1]} : vector<8x32xf32> to vector<8x8xf32>
    %40 = vector.extract_strided_slice %28 {offsets = [0, 8], sizes = [8, 8], strides = [1, 1]} : vector<8x32xf32> to vector<8x8xf32>
    %41 = vector.extract_strided_slice %28 {offsets = [0, 16], sizes = [8, 8], strides = [1, 1]} : vector<8x32xf32> to vector<8x8xf32>
    %42 = vector.extract_strided_slice %28 {offsets = [0, 24], sizes = [8, 8], strides = [1, 1]} : vector<8x32xf32> to vector<8x8xf32>
    %43 = vector.shape_cast %39 : vector<8x8xf32> to vector<1x8x8xf32>
    %44 = vector.shape_cast %40 : vector<8x8xf32> to vector<1x8x8xf32>
    %45 = vector.shape_cast %41 : vector<8x8xf32> to vector<1x8x8xf32>
    %46 = vector.shape_cast %42 : vector<8x8xf32> to vector<1x8x8xf32>
    %47 = tpu.concatenate %43, %44, %45, %46 in 0 : vector<1x8x8xf32>, vector<1x8x8xf32>, vector<1x8x8xf32>, vector<1x8x8xf32> -> vector<4x8x8xf32>
    %48 = vector.extract_strided_slice %29 {offsets = [0, 0], sizes = [8, 8], strides = [1, 1]} : vector<8x32xf32> to vector<8x8xf32>
    %49 = vector.extract_strided_slice %29 {offsets = [0, 8], sizes = [8, 8], strides = [1, 1]} : vector<8x32xf32> to vector<8x8xf32>
    %50 = vector.extract_strided_slice %29 {offsets = [0, 16], sizes = [8, 8], strides = [1, 1]} : vector<8x32xf32> to vector<8x8xf32>
    %51 = vector.extract_strided_slice %29 {offsets = [0, 24], sizes = [8, 8], strides = [1, 1]} : vector<8x32xf32> to vector<8x8xf32>
    %52 = vector.shape_cast %48 : vector<8x8xf32> to vector<1x8x8xf32>
    %53 = vector.shape_cast %49 : vector<8x8xf32> to vector<1x8x8xf32>
    %54 = vector.shape_cast %50 : vector<8x8xf32> to vector<1x8x8xf32>
    %55 = vector.shape_cast %51 : vector<8x8xf32> to vector<1x8x8xf32>
    %56 = tpu.concatenate %52, %53, %54, %55 in 0 : vector<1x8x8xf32>, vector<1x8x8xf32>, vector<1x8x8xf32>, vector<1x8x8xf32> -> vector<4x8x8xf32>
    "tpu.trace_start"() <{level = 10 : i32, message = "hqd,hkd->hqk"}> : () -> ()
    %cst_45 = arith.constant dense<0.000000e+00> : vector<4x8x8xf32>
    %57 = tpu.matmul %38, %47, %cst_45 {dimension_numbers = #tpu.dot_dimension_numbers<[2], [2], [1], [1], [0, 0, 0, 1, 1, 1], [0], [0]>} : vector<4x8x8xf32>, vector<4x8x8xf32>, vector<4x8x8xf32> -> vector<4x8x8xf32>
    "tpu.trace_stop"() : () -> ()
    %cst_46 = arith.constant 0.353553385 : f32
    %58 = vector.broadcast %cst_46 : f32 to vector<4x8x8xf32>
    %59 = arith.mulf %57, %58 : vector<4x8x8xf32>
    %cst_47 = arith.constant dense<0xFF800000> : vector<4x8xf32>
    %60 = vector.multi_reduction <maximumf>, %59, %cst_47 [2] : vector<4x8x8xf32> to vector<4x8xf32>
    %61 = vector.shape_cast %60 : vector<4x8xf32> to vector<4x8x1xf32>
    %62 = vector.broadcast %61 : vector<4x8x1xf32> to vector<4x8x8xf32>
    %63 = arith.subf %59, %62 : vector<4x8x8xf32>
    %64 = math.exp %63 : vector<4x8x8xf32>
    %cst_48 = arith.constant dense<0.000000e+00> : vector<4x8xf32>
    %65 = vector.multi_reduction <add>, %64, %cst_48 [2] : vector<4x8x8xf32> to vector<4x8xf32>
    %66 = vector.shape_cast %65 : vector<4x8xf32> to vector<4x8x1xf32>
    %67 = vector.broadcast %66 : vector<4x8x1xf32> to vector<4x8x8xf32>
    %68 = arith.divf %64, %67 : vector<4x8x8xf32>
    "tpu.trace_start"() <{level = 10 : i32, message = "hqk,hkd->hqd"}> : () -> ()
    %cst_49 = arith.constant dense<0.000000e+00> : vector<4x8x8xf32>
    %69 = tpu.matmul %68, %56, %cst_49 {dimension_numbers = #tpu.dot_dimension_numbers<[2], [1], [1], [2], [0, 0, 0, 1, 1, 2], [0], [0]>} : vector<4x8x8xf32>, vector<4x8x8xf32>, vector<4x8x8xf32> -> vector<4x8x8xf32>
    "tpu.trace_stop"() : () -> ()
    %70 = vector.extract_strided_slice %69 {offsets = [0, 0, 0], sizes = [1, 8, 8], strides = [1, 1, 1]} : vector<4x8x8xf32> to vector<1x8x8xf32>
    %71 = vector.shape_cast %70 : vector<1x8x8xf32> to vector<8x8xf32>
    %c0_50 = arith.constant 0 : index
    %c0_51 = arith.constant 0 : index
    %72 = vector.load %arg24[%c0_50, %c0_51] : memref<8x32xf32, #tpu.memory_space<vmem>>, vector<8x8xf32>
    tpu.vector_store %arg24[%c0_50, %c0_51], %71 {strides = array<i32>} : memref<8x32xf32, #tpu.memory_space<vmem>>, vector<8x8xf32>,
    %73 = vector.extract_strided_slice %69 {offsets = [1, 0, 0], sizes = [1, 8, 8], strides = [1, 1, 1]} : vector<4x8x8xf32> to vector<1x8x8xf32>
    %74 = vector.shape_cast %73 : vector<1x8x8xf32> to vector<8x8xf32>
    %c0_52 = arith.constant 0 : index
    %c8 = arith.constant 8 : index
    %75 = vector.load %arg24[%c0_52, %c8] : memref<8x32xf32, #tpu.memory_space<vmem>>, vector<8x8xf32>
    tpu.vector_store %arg24[%c0_52, %c8], %74 {strides = array<i32>} : memref<8x32xf32, #tpu.memory_space<vmem>>, vector<8x8xf32>,
    %76 = vector.extract_strided_slice %69 {offsets = [2, 0, 0], sizes = [1, 8, 8], strides = [1, 1, 1]} : vector<4x8x8xf32> to vector<1x8x8xf32>
    %77 = vector.shape_cast %76 : vector<1x8x8xf32> to vector<8x8xf32>
    %c0_53 = arith.constant 0 : index
    %c16 = arith.constant 16 : index
    %78 = vector.load %arg24[%c0_53, %c16] : memref<8x32xf32, #tpu.memory_space<vmem>>, vector<8x8xf32>
    tpu.vector_store %arg24[%c0_53, %c16], %77 {strides = array<i32>} : memref<8x32xf32, #tpu.memory_space<vmem>>, vector<8x8xf32>,
    %79 = vector.extract_strided_slice %69 {offsets = [3, 0, 0], sizes = [1, 8, 8], strides = [1, 1, 1]} : vector<4x8x8xf32> to vector<1x8x8xf32>
    %80 = vector.shape_cast %79 : vector<1x8x8xf32> to vector<8x8xf32>
    %c0_54 = arith.constant 0 : index
    %c24 = arith.constant 24 : index
    %81 = vector.load %arg24[%c0_54, %c24] : memref<8x32xf32, #tpu.memory_space<vmem>>, vector<8x8xf32>
    tpu.vector_store %arg24[%c0_54, %c24], %80 {strides = array<i32>} : memref<8x32xf32, #tpu.memory_space<vmem>>, vector<8x8xf32>,
    %c0_55 = arith.constant 0 : index
    %c0_56 = arith.constant 0 : index
    %82 = vector.load %arg24[%c0_55, %c0_56] : memref<8x32xf32, #tpu.memory_space<vmem>>, vector<8x32xf32>
    %cst_57 = arith.constant dense<0.000000e+00> : vector<8x32xf32>
    %83 = tpu.matmul %82, %6, %cst_57 {dimension_numbers = #tpu.dot_dimension_numbers<[1], [0], [0], [1], [0, 0, 1, 1], [], []>} : vector<8x32xf32>, vector<32x32xf32>, vector<8x32xf32> -> vector<8x32xf32>
    %84 = vector.broadcast %7 : vector<1x32xf32> to vector<8x32xf32>
    %85 = arith.addf %83, %84 : vector<8x32xf32>
    %86 = arith.addf %1, %85 : vector<8x32xf32>
    %cst_58 = arith.constant dense<0.000000e+00> : vector<8xf32>
    %87 = vector.multi_reduction <add>, %86, %cst_58 [1] : vector<8x32xf32> to vector<8xf32>
    %88 = vector.shape_cast %87 : vector<8xf32> to vector<8x1xf32>
    %cst_59 = arith.constant 3.200000e+01 : f32
    %89 = vector.broadcast %cst_59 : f32 to vector<8x1xf32>
    %90 = arith.divf %88, %89 : vector<8x1xf32>
    %91 = vector.broadcast %90 : vector<8x1xf32> to vector<8x32xf32>
    %92 = arith.subf %86, %91 : vector<8x32xf32>
    %93 = arith.mulf %92, %92 : vector<8x32xf32>
    %cst_60 = arith.constant dense<0.000000e+00> : vector<8xf32>
    %94 = vector.multi_reduction <add>, %93, %cst_60 [1] : vector<8x32xf32> to vector<8xf32>
    %95 = vector.shape_cast %94 : vector<8xf32> to vector<8x1xf32>
    %cst_61 = arith.constant 3.200000e+01 : f32
    %96 = vector.broadcast %cst_61 : f32 to vector<8x1xf32>
    %97 = arith.divf %95, %96 : vector<8x1xf32>
    %98 = vector.broadcast %90 : vector<8x1xf32> to vector<8x32xf32>
    %99 = arith.subf %86, %98 : vector<8x32xf32>
    %cst_62 = arith.constant 9.99999974E-6 : f32
    %100 = vector.broadcast %cst_62 : f32 to vector<8x1xf32>
    %101 = arith.addf %97, %100 : vector<8x1xf32>
    %102 = math.rsqrt %101 : vector<8x1xf32>
    %103 = vector.broadcast %102 : vector<8x1xf32> to vector<8x32xf32>
    %104 = arith.mulf %99, %103 : vector<8x32xf32>
    %105 = vector.broadcast %8 : vector<1x32xf32> to vector<8x32xf32>
    %106 = arith.mulf %104, %105 : vector<8x32xf32>
    %107 = vector.broadcast %9 : vector<1x32xf32> to vector<8x32xf32>
    %108 = arith.addf %106, %107 : vector<8x32xf32>
    %cst_63 = arith.constant dense<0.000000e+00> : vector<8x32xf32>
    %109 = tpu.matmul %108, %10, %cst_63 {dimension_numbers = #tpu.dot_dimension_numbers<[1], [0], [0], [1], [0, 0, 1, 1], [], []>} : vector<8x32xf32>, vector<32x32xf32>, vector<8x32xf32> -> vector<8x32xf32>
    %110 = vector.broadcast %11 : vector<1x32xf32> to vector<8x32xf32>
    %111 = arith.addf %109, %110 : vector<8x32xf32>
    %cst_64 = arith.constant dense<0.000000e+00> : vector<6x64xf32>
    %112 = tpu.matmul %3, %12, %cst_64 {dimension_numbers = #tpu.dot_dimension_numbers<[1], [0], [0], [1], [0, 0, 1, 1], [], []>} : vector<6x32xf32>, vector<32x64xf32>, vector<6x64xf32> -> vector<6x64xf32>
    %113 = vector.broadcast %13 : vector<1x64xf32> to vector<6x64xf32>
    %114 = arith.addf %112, %113 : vector<6x64xf32>
    %115 = vector.extract_strided_slice %114 {offsets = [0, 0], sizes = [6, 32], strides = [1, 1]} : vector<6x64xf32> to vector<6x32xf32>
    %116 = vector.extract_strided_slice %114 {offsets = [0, 32], sizes = [6, 32], strides = [1, 1]} : vector<6x64xf32> to vector<6x32xf32>
    %117 = vector.extract_strided_slice %111 {offsets = [0, 0], sizes = [8, 8], strides = [1, 1]} : vector<8x32xf32> to vector<8x8xf32>
    %118 = vector.extract_strided_slice %111 {offsets = [0, 8], sizes = [8, 8], strides = [1, 1]} : vector<8x32xf32> to vector<8x8xf32>
    %119 = vector.extract_strided_slice %111 {offsets = [0, 16], sizes = [8, 8], strides = [1, 1]} : vector<8x32xf32> to vector<8x8xf32>
    %120 = vector.extract_strided_slice %111 {offsets = [0, 24], sizes = [8, 8], strides = [1, 1]} : vector<8x32xf32> to vector<8x8xf32>
    %121 = vector.shape_cast %117 : vector<8x8xf32> to vector<1x8x8xf32>
    %122 = vector.shape_cast %118 : vector<8x8xf32> to vector<1x8x8xf32>
    %123 = vector.shape_cast %119 : vector<8x8xf32> to vector<1x8x8xf32>
    %124 = vector.shape_cast %120 : vector<8x8xf32> to vector<1x8x8xf32>
    %125 = tpu.concatenate %121, %122, %123, %124 in 0 : vector<1x8x8xf32>, vector<1x8x8xf32>, vector<1x8x8xf32>, vector<1x8x8xf32> -> vector<4x8x8xf32>
    %126 = vector.extract_strided_slice %115 {offsets = [0, 0], sizes = [6, 8], strides = [1, 1]} : vector<6x32xf32> to vector<6x8xf32>
    %127 = vector.extract_strided_slice %115 {offsets = [0, 8], sizes = [6, 8], strides = [1, 1]} : vector<6x32xf32> to vector<6x8xf32>
    %128 = vector.extract_strided_slice %115 {offsets = [0, 16], sizes = [6, 8], strides = [1, 1]} : vector<6x32xf32> to vector<6x8xf32>
    %129 = vector.extract_strided_slice %115 {offsets = [0, 24], sizes = [6, 8], strides = [1, 1]} : vector<6x32xf32> to vector<6x8xf32>
    %130 = vector.shape_cast %126 : vector<6x8xf32> to vector<1x6x8xf32>
    %131 = vector.shape_cast %127 : vector<6x8xf32> to vector<1x6x8xf32>
    %132 = vector.shape_cast %128 : vector<6x8xf32> to vector<1x6x8xf32>
    %133 = vector.shape_cast %129 : vector<6x8xf32> to vector<1x6x8xf32>
    %134 = tpu.concatenate %130, %131, %132, %133 in 0 : vector<1x6x8xf32>, vector<1x6x8xf32>, vector<1x6x8xf32>, vector<1x6x8xf32> -> vector<4x6x8xf32>
    %135 = vector.extract_strided_slice %116 {offsets = [0, 0], sizes = [6, 8], strides = [1, 1]} : vector<6x32xf32> to vector<6x8xf32>
    %136 = vector.extract_strided_slice %116 {offsets = [0, 8], sizes = [6, 8], strides = [1, 1]} : vector<6x32xf32> to vector<6x8xf32>
    %137 = vector.extract_strided_slice %116 {offsets = [0, 16], sizes = [6, 8], strides = [1, 1]} : vector<6x32xf32> to vector<6x8xf32>
    %138 = vector.extract_strided_slice %116 {offsets = [0, 24], sizes = [6, 8], strides = [1, 1]} : vector<6x32xf32> to vector<6x8xf32>
    %139 = vector.shape_cast %135 : vector<6x8xf32> to vector<1x6x8xf32>
    %140 = vector.shape_cast %136 : vector<6x8xf32> to vector<1x6x8xf32>
    %141 = vector.shape_cast %137 : vector<6x8xf32> to vector<1x6x8xf32>
    %142 = vector.shape_cast %138 : vector<6x8xf32> to vector<1x6x8xf32>
    %143 = tpu.concatenate %139, %140, %141, %142 in 0 : vector<1x6x8xf32>, vector<1x6x8xf32>, vector<1x6x8xf32>, vector<1x6x8xf32> -> vector<4x6x8xf32>
    "tpu.trace_start"() <{level = 10 : i32, message = "hqd,hkd->hqk"}> : () -> ()
    %cst_65 = arith.constant dense<0.000000e+00> : vector<4x8x6xf32>
    %144 = tpu.matmul %125, %134, %cst_65 {dimension_numbers = #tpu.dot_dimension_numbers<[2], [2], [1], [1], [0, 0, 0, 1, 1, 1], [0], [0]>} : vector<4x8x8xf32>, vector<4x6x8xf32>, vector<4x8x6xf32> -> vector<4x8x6xf32>
    "tpu.trace_stop"() : () -> ()
    %cst_66 = arith.constant 0.353553385 : f32
    %145 = vector.broadcast %cst_66 : f32 to vector<4x8x6xf32>
    %146 = arith.mulf %144, %145 : vector<4x8x6xf32>
    %cst_67 = arith.constant dense<0xFF800000> : vector<4x8xf32>
    %147 = vector.multi_reduction <maximumf>, %146, %cst_67 [2] : vector<4x8x6xf32> to vector<4x8xf32>
    %148 = vector.shape_cast %147 : vector<4x8xf32> to vector<4x8x1xf32>
    %149 = vector.broadcast %148 : vector<4x8x1xf32> to vector<4x8x6xf32>
    %150 = arith.subf %146, %149 : vector<4x8x6xf32>
    %151 = math.exp %150 : vector<4x8x6xf32>
    %cst_68 = arith.constant dense<0.000000e+00> : vector<4x8xf32>
    %152 = vector.multi_reduction <add>, %151, %cst_68 [2] : vector<4x8x6xf32> to vector<4x8xf32>
    %153 = vector.shape_cast %152 : vector<4x8xf32> to vector<4x8x1xf32>
    %154 = vector.broadcast %153 : vector<4x8x1xf32> to vector<4x8x6xf32>
    %155 = arith.divf %151, %154 : vector<4x8x6xf32>
    "tpu.trace_start"() <{level = 10 : i32, message = "hqk,hkd->hqd"}> : () -> ()
    %cst_69 = arith.constant dense<0.000000e+00> : vector<4x8x8xf32>
    %156 = tpu.matmul %155, %143, %cst_69 {dimension_numbers = #tpu.dot_dimension_numbers<[2], [1], [1], [2], [0, 0, 0, 1, 1, 2], [0], [0]>} : vector<4x8x6xf32>, vector<4x6x8xf32>, vector<4x8x8xf32> -> vector<4x8x8xf32>
    "tpu.trace_stop"() : () -> ()
    %157 = vector.extract_strided_slice %156 {offsets = [0, 0, 0], sizes = [1, 8, 8], strides = [1, 1, 1]} : vector<4x8x8xf32> to vector<1x8x8xf32>
    %158 = vector.shape_cast %157 : vector<1x8x8xf32> to vector<8x8xf32>
    %c0_70 = arith.constant 0 : index
    %c0_71 = arith.constant 0 : index
    %159 = vector.load %arg24[%c0_70, %c0_71] : memref<8x32xf32, #tpu.memory_space<vmem>>, vector<8x8xf32>
    tpu.vector_store %arg24[%c0_70, %c0_71], %158 {strides = array<i32>} : memref<8x32xf32, #tpu.memory_space<vmem>>, vector<8x8xf32>,
    %160 = vector.extract_strided_slice %156 {offsets = [1, 0, 0], sizes = [1, 8, 8], strides = [1, 1, 1]} : vector<4x8x8xf32> to vector<1x8x8xf32>
    %161 = vector.shape_cast %160 : vector<1x8x8xf32> to vector<8x8xf32>
    %c0_72 = arith.constant 0 : index
    %c8_73 = arith.constant 8 : index
    %162 = vector.load %arg24[%c0_72, %c8_73] : memref<8x32xf32, #tpu.memory_space<vmem>>, vector<8x8xf32>
    tpu.vector_store %arg24[%c0_72, %c8_73], %161 {strides = array<i32>} : memref<8x32xf32, #tpu.memory_space<vmem>>, vector<8x8xf32>,
    %163 = vector.extract_strided_slice %156 {offsets = [2, 0, 0], sizes = [1, 8, 8], strides = [1, 1, 1]} : vector<4x8x8xf32> to vector<1x8x8xf32>
    %164 = vector.shape_cast %163 : vector<1x8x8xf32> to vector<8x8xf32>
    %c0_74 = arith.constant 0 : index
    %c16_75 = arith.constant 16 : index
    %165 = vector.load %arg24[%c0_74, %c16_75] : memref<8x32xf32, #tpu.memory_space<vmem>>, vector<8x8xf32>
    tpu.vector_store %arg24[%c0_74, %c16_75], %164 {strides = array<i32>} : memref<8x32xf32, #tpu.memory_space<vmem>>, vector<8x8xf32>,
    %166 = vector.extract_strided_slice %156 {offsets = [3, 0, 0], sizes = [1, 8, 8], strides = [1, 1, 1]} : vector<4x8x8xf32> to vector<1x8x8xf32>
    %167 = vector.shape_cast %166 : vector<1x8x8xf32> to vector<8x8xf32>
    %c0_76 = arith.constant 0 : index
    %c24_77 = arith.constant 24 : index
    %168 = vector.load %arg24[%c0_76, %c24_77] : memref<8x32xf32, #tpu.memory_space<vmem>>, vector<8x8xf32>
    tpu.vector_store %arg24[%c0_76, %c24_77], %167 {strides = array<i32>} : memref<8x32xf32, #tpu.memory_space<vmem>>, vector<8x8xf32>,
    %c0_78 = arith.constant 0 : index
    %c0_79 = arith.constant 0 : index
    %169 = vector.load %arg24[%c0_78, %c0_79] : memref<8x32xf32, #tpu.memory_space<vmem>>, vector<8x32xf32>
    %cst_80 = arith.constant dense<0.000000e+00> : vector<8x32xf32>
    %170 = tpu.matmul %169, %14, %cst_80 {dimension_numbers = #tpu.dot_dimension_numbers<[1], [0], [0], [1], [0, 0, 1, 1], [], []>} : vector<8x32xf32>, vector<32x32xf32>, vector<8x32xf32> -> vector<8x32xf32>
    %171 = vector.broadcast %15 : vector<1x32xf32> to vector<8x32xf32>
    %172 = arith.addf %170, %171 : vector<8x32xf32>
    %173 = arith.addf %108, %172 : vector<8x32xf32>
    %cst_81 = arith.constant dense<0.000000e+00> : vector<8xf32>
    %174 = vector.multi_reduction <add>, %173, %cst_81 [1] : vector<8x32xf32> to vector<8xf32>
    %175 = vector.shape_cast %174 : vector<8xf32> to vector<8x1xf32>
    %cst_82 = arith.constant 3.200000e+01 : f32
    %176 = vector.broadcast %cst_82 : f32 to vector<8x1xf32>
    %177 = arith.divf %175, %176 : vector<8x1xf32>
    %178 = vector.broadcast %177 : vector<8x1xf32> to vector<8x32xf32>
    %179 = arith.subf %173, %178 : vector<8x32xf32>
    %180 = arith.mulf %179, %179 : vector<8x32xf32>
    %cst_83 = arith.constant dense<0.000000e+00> : vector<8xf32>
    %181 = vector.multi_reduction <add>, %180, %cst_83 [1] : vector<8x32xf32> to vector<8xf32>
    %182 = vector.shape_cast %181 : vector<8xf32> to vector<8x1xf32>
    %cst_84 = arith.constant 3.200000e+01 : f32
    %183 = vector.broadcast %cst_84 : f32 to vector<8x1xf32>
    %184 = arith.divf %182, %183 : vector<8x1xf32>
    %185 = vector.broadcast %177 : vector<8x1xf32> to vector<8x32xf32>
    %186 = arith.subf %173, %185 : vector<8x32xf32>
    %cst_85 = arith.constant 9.99999974E-6 : f32
    %187 = vector.broadcast %cst_85 : f32 to vector<8x1xf32>
    %188 = arith.addf %184, %187 : vector<8x1xf32>
    %189 = math.rsqrt %188 : vector<8x1xf32>
    %190 = vector.broadcast %189 : vector<8x1xf32> to vector<8x32xf32>
    %191 = arith.mulf %186, %190 : vector<8x32xf32>
    %192 = vector.broadcast %16 : vector<1x32xf32> to vector<8x32xf32>
    %193 = arith.mulf %191, %192 : vector<8x32xf32>
    %194 = vector.broadcast %17 : vector<1x32xf32> to vector<8x32xf32>
    %195 = arith.addf %193, %194 : vector<8x32xf32>
    %cst_86 = arith.constant dense<0.000000e+00> : vector<8x64xf32>
    %196 = tpu.matmul %195, %18, %cst_86 {dimension_numbers = #tpu.dot_dimension_numbers<[1], [0], [0], [1], [0, 0, 1, 1], [], []>} : vector<8x32xf32>, vector<32x64xf32>, vector<8x64xf32> -> vector<8x64xf32>
    %197 = vector.broadcast %19 : vector<1x64xf32> to vector<8x64xf32>
    %198 = arith.addf %196, %197 : vector<8x64xf32>
    %cst_87 = arith.constant 0.000000e+00 : f32
    %199 = vector.broadcast %cst_87 : f32 to vector<8x64xf32>
    %200 = arith.maximumf %198, %199 : vector<8x64xf32>
    %cst_88 = arith.constant dense<0.000000e+00> : vector<8x32xf32>
    %201 = tpu.matmul %200, %20, %cst_88 {dimension_numbers = #tpu.dot_dimension_numbers<[1], [0], [0], [1], [0, 0, 1, 1], [], []>} : vector<8x64xf32>, vector<64x32xf32>, vector<8x32xf32> -> vector<8x32xf32>
    %202 = vector.broadcast %21 : vector<1x32xf32> to vector<8x32xf32>
    %203 = arith.addf %201, %202 : vector<8x32xf32>
    %204 = arith.addf %195, %203 : vector<8x32xf32>
    %cst_89 = arith.constant dense<0.000000e+00> : vector<8xf32>
    %205 = vector.multi_reduction <add>, %204, %cst_89 [1] : vector<8x32xf32> to vector<8xf32>
    %206 = vector.shape_cast %205 : vector<8xf32> to vector<8x1xf32>
    %cst_90 = arith.constant 3.200000e+01 : f32
    %207 = vector.broadcast %cst_90 : f32 to vector<8x1xf32>
    %208 = arith.divf %206, %207 : vector<8x1xf32>
    %209 = vector.broadcast %208 : vector<8x1xf32> to vector<8x32xf32>
    %210 = arith.subf %204, %209 : vector<8x32xf32>
    %211 = arith.mulf %210, %210 : vector<8x32xf32>
    %cst_91 = arith.constant dense<0.000000e+00> : vector<8xf32>
    %212 = vector.multi_reduction <add>, %211, %cst_91 [1] : vector<8x32xf32> to vector<8xf32>
    %213 = vector.shape_cast %212 : vector<8xf32> to vector<8x1xf32>
    %cst_92 = arith.constant 3.200000e+01 : f32
    %214 = vector.broadcast %cst_92 : f32 to vector<8x1xf32>
    %215 = arith.divf %213, %214 : vector<8x1xf32>
    %216 = vector.broadcast %208 : vector<8x1xf32> to vector<8x32xf32>
    %217 = arith.subf %204, %216 : vector<8x32xf32>
    %cst_93 = arith.constant 9.99999974E-6 : f32
    %218 = vector.broadcast %cst_93 : f32 to vector<8x1xf32>
    %219 = arith.addf %215, %218 : vector<8x1xf32>
    %220 = math.rsqrt %219 : vector<8x1xf32>
    %221 = vector.broadcast %220 : vector<8x1xf32> to vector<8x32xf32>
    %222 = arith.mulf %217, %221 : vector<8x32xf32>
    %223 = vector.broadcast %22 : vector<1x32xf32> to vector<8x32xf32>
    %224 = arith.mulf %222, %223 : vector<8x32xf32>
    %225 = vector.broadcast %23 : vector<1x32xf32> to vector<8x32xf32>
    %226 = arith.addf %224, %225 : vector<8x32xf32>
    %227 = vector.shape_cast %226 : vector<8x32xf32> to vector<1x8x32xf32>
    %c0_94 = arith.constant 0 : index
    %c0_95 = arith.constant 0 : index
    %c0_96 = arith.constant 0 : index
    %228 = vector.load %arg23[%c0_94, %c0_95, %c0_96] : memref<1x8x32xf32, #tpu.memory_space<vmem>>, vector<1x8x32xf32>
    tpu.vector_store %arg23[%c0_94, %c0_95, %c0_96], %227 {strides = array<i32>} : memref<1x8x32xf32, #tpu.memory_space<vmem>>, vector<1x8x32xf32>,
    return
  }
  func.func @transform_0(%arg0: i32) -> (i32, i32, i32) {
    %c0_i32 = arith.constant 0 : i32
    %c0_i32_0 = arith.constant 0 : i32
    %c0_i32_1 = arith.constant 0 : i32
    return %arg0, %c0_i32, %c0_i32_0 : i32, i32, i32
  }
  func.func @transform_1(%arg0: i32) -> (i32, i32, i32) {
    %c0_i32 = arith.constant 0 : i32
    %c0_i32_0 = arith.constant 0 : i32
    %c0_i32_1 = arith.constant 0 : i32
    return %arg0, %c0_i32, %c0_i32_0 : i32, i32, i32
  }
  func.func @transform_2(%arg0: i32) -> (i32, i32) {
    %c0_i32 = arith.constant 0 : i32
    %c0_i32_0 = arith.constant 0 : i32
    %c0_i32_1 = arith.constant 0 : i32
    return %c0_i32, %c0_i32_0 : i32, i32
  }
  func.func @transform_3(%arg0: i32) -> (i32, i32) {
    %c0_i32 = arith.constant 0 : i32
    %c0_i32_0 = arith.constant 0 : i32
    %c0_i32_1 = arith.constant 0 : i32
    return %c0_i32, %c0_i32_0 : i32, i32
  }
  func.func @transform_4(%arg0: i32) -> (i32, i32) {
    %c0_i32 = arith.constant 0 : i32
    %c0_i32_0 = arith.constant 0 : i32
    %c0_i32_1 = arith.constant 0 : i32
    return %c0_i32, %c0_i32_0 : i32, i32
  }
  func.func @transform_5(%arg0: i32) -> (i32, i32) {
    %c0_i32 = arith.constant 0 : i32
    %c0_i32_0 = arith.constant 0 : i32
    %c0_i32_1 = arith.constant 0 : i32
    return %c0_i32, %c0_i32_0 : i32, i32
  }
  func.func @transform_6(%arg0: i32) -> (i32, i32) {
    %c0_i32 = arith.constant 0 : i32
    %c0_i32_0 = arith.constant 0 : i32
    %c0_i32_1 = arith.constant 0 : i32
    return %c0_i32, %c0_i32_0 : i32, i32
  }
  func.func @transform_7(%arg0: i32) -> (i32, i32) {
    %c0_i32 = arith.constant 0 : i32
    %c0_i32_0 = arith.constant 0 : i32
    %c0_i32_1 = arith.constant 0 : i32
    return %c0_i32, %c0_i32_0 : i32, i32
  }
  func.func @transform_8(%arg0: i32) -> (i32, i32) {
    %c0_i32 = arith.constant 0 : i32
    %c0_i32_0 = arith.constant 0 : i32
    %c0_i32_1 = arith.constant 0 : i32
    return %c0_i32, %c0_i32_0 : i32, i32
  }
  func.func @transform_9(%arg0: i32) -> (i32, i32) {
    %c0_i32 = arith.constant 0 : i32
    %c0_i32_0 = arith.constant 0 : i32
    %c0_i32_1 = arith.constant 0 : i32
    return %c0_i32, %c0_i32_0 : i32, i32
  }
  func.func @transform_10(%arg0: i32) -> (i32, i32) {
    %c0_i32 = arith.constant 0 : i32
    %c0_i32_0 = arith.constant 0 : i32
    %c0_i32_1 = arith.constant 0 : i32
    return %c0_i32, %c0_i32_0 : i32, i32
  }
  func.func @transform_11(%arg0: i32) -> (i32, i32) {
    %c0_i32 = arith.constant 0 : i32
    %c0_i32_0 = arith.constant 0 : i32
    %c0_i32_1 = arith.constant 0 : i32
    return %c0_i32, %c0_i32_0 : i32, i32
  }
  func.func @transform_12(%arg0: i32) -> (i32, i32) {
    %c0_i32 = arith.constant 0 : i32
    %c0_i32_0 = arith.constant 0 : i32
    %c0_i32_1 = arith.constant 0 : i32
    return %c0_i32, %c0_i32_0 : i32, i32
  }
  func.func @transform_13(%arg0: i32) -> (i32, i32) {
    %c0_i32 = arith.constant 0 : i32
    %c0_i32_0 = arith.constant 0 : i32
    %c0_i32_1 = arith.constant 0 : i32
    return %c0_i32, %c0_i32_0 : i32, i32
  }
  func.func @transform_14(%arg0: i32) -> (i32, i32) {
    %c0_i32 = arith.constant 0 : i32
    %c0_i32_0 = arith.constant 0 : i32
    %c0_i32_1 = arith.constant 0 : i32
    return %c0_i32, %c0_i32_0 : i32, i32
  }
  func.func @transform_15(%arg0: i32) -> (i32, i32) {
    %c0_i32 = arith.constant 0 : i32
    %c0_i32_0 = arith.constant 0 : i32
    %c0_i32_1 = arith.constant 0 : i32
    return %c0_i32, %c0_i32_0 : i32, i32
  }
  func.func @transform_16(%arg0: i32) -> (i32, i32) {
    %c0_i32 = arith.constant 0 : i32
    %c0_i32_0 = arith.constant 0 : i32
    %c0_i32_1 = arith.constant 0 : i32
    return %c0_i32, %c0_i32_0 : i32, i32
  }
  func.func @transform_17(%arg0: i32) -> (i32, i32) {
    %c0_i32 = arith.constant 0 : i32
    %c0_i32_0 = arith.constant 0 : i32
    %c0_i32_1 = arith.constant 0 : i32
    return %c0_i32, %c0_i32_0 : i32, i32
  }
  func.func @transform_18(%arg0: i32) -> (i32, i32) {
    %c0_i32 = arith.constant 0 : i32
    %c0_i32_0 = arith.constant 0 : i32
    %c0_i32_1 = arith.constant 0 : i32
    return %c0_i32, %c0_i32_0 : i32, i32
  }
  func.func @transform_19(%arg0: i32) -> (i32, i32) {
    %c0_i32 = arith.constant 0 : i32
    %c0_i32_0 = arith.constant 0 : i32
    %c0_i32_1 = arith.constant 0 : i32
    return %c0_i32, %c0_i32_0 : i32, i32
  }
  func.func @transform_20(%arg0: i32) -> (i32, i32) {
    %c0_i32 = arith.constant 0 : i32
    %c0_i32_0 = arith.constant 0 : i32
    %c0_i32_1 = arith.constant 0 : i32
    return %c0_i32, %c0_i32_0 : i32, i32
  }
  func.func @transform_21(%arg0: i32) -> (i32, i32) {
    %c0_i32 = arith.constant 0 : i32
    %c0_i32_0 = arith.constant 0 : i32
    %c0_i32_1 = arith.constant 0 : i32
    return %c0_i32, %c0_i32_0 : i32, i32
  }
  func.func @transform_22(%arg0: i32) -> (i32, i32, i32) {
    %c0_i32 = arith.constant 0 : i32
    %c0_i32_0 = arith.constant 0 : i32
    %c0_i32_1 = arith.constant 0 : i32
    return %arg0, %c0_i32, %c0_i32_0 : i32, i32, i32
  }
}

module attributes {stable_mosaic.version = 11 : i64} {
  func.func @_decoder_layer_kernel(%arg0: i32, %arg1: memref<1x8x32xf32, #tpu.memory_space<vmem>>, %arg2: memref<1x6x32xf32, #tpu.memory_space<vmem>>, %arg3: memref<32x96xf32, #tpu.memory_space<vmem>>, %arg4: memref<1x96xf32, #tpu.memory_space<vmem>>, %arg5: memref<32x32xf32, #tpu.memory_space<vmem>>, %arg6: memref<1x32xf32, #tpu.memory_space<vmem>>, %arg7: memref<1x32xf32, #tpu.memory_space<vmem>>, %arg8: memref<1x32xf32, #tpu.memory_space<vmem>>, %arg9: memref<32x32xf32, #tpu.memory_space<vmem>>, %arg10: memref<1x32xf32, #tpu.memory_space<vmem>>, %arg11: memref<32x64xf32, #tpu.memory_space<vmem>>, %arg12: memref<1x64xf32, #tpu.memory_space<vmem>>, %arg13: memref<32x32xf32, #tpu.memory_space<vmem>>, %arg14: memref<1x32xf32, #tpu.memory_space<vmem>>, %arg15: memref<1x32xf32, #tpu.memory_space<vmem>>, %arg16: memref<1x32xf32, #tpu.memory_space<vmem>>, %arg17: memref<32x64xf32, #tpu.memory_space<vmem>>, %arg18: memref<1x64xf32, #tpu.memory_space<vmem>>, %arg19: memref<64x32xf32, #tpu.memory_space<vmem>>, %arg20: memref<1x32xf32, #tpu.memory_space<vmem>>, %arg21: memref<1x32xf32, #tpu.memory_space<vmem>>, %arg22: memref<1x32xf32, #tpu.memory_space<vmem>>, %arg23: memref<1x32xf32, #tpu.memory_space<vmem>>, %arg24: memref<1x32xf32, #tpu.memory_space<vmem>>, %arg25: memref<32x128xf32, #tpu.memory_space<vmem>>, %arg26: memref<1x128xf32, #tpu.memory_space<vmem>>, %arg27: memref<1x8x128xf32, #tpu.memory_space<vmem>>, %arg28: memref<8x32xf32, #tpu.memory_space<vmem>>) attributes {dimension_semantics = [#tpu.dimension_semantics<parallel>], iteration_bounds = array<i64: 2>, scalar_prefetch = 0 : i64, scratch_operands = 1 : i64, tpu.core_type = #tpu.core_type<tc>, window_params = [{transform_indices = @transform_0, window_bounds = array<i64: 1, 8, 32>}, {transform_indices = @transform_1, window_bounds = array<i64: 1, 6, 32>}, {pipeline_mode = #tpu.pipeline_mode<synchronous>, transform_indices = @transform_2, window_bounds = array<i64: 32, 96>}, {pipeline_mode = #tpu.pipeline_mode<synchronous>, transform_indices = @transform_3, window_bounds = array<i64: 1, 96>}, {pipeline_mode = #tpu.pipeline_mode<synchronous>, transform_indices = @transform_4, window_bounds = array<i64: 32, 32>}, {pipeline_mode = #tpu.pipeline_mode<synchronous>, transform_indices = @transform_5, window_bounds = array<i64: 1, 32>}, {pipeline_mode = #tpu.pipeline_mode<synchronous>, transform_indices = @transform_6, window_bounds = array<i64: 1, 32>}, {pipeline_mode = #tpu.pipeline_mode<synchronous>, transform_indices = @transform_7, window_bounds = array<i64: 1, 32>}, {pipeline_mode = #tpu.pipeline_mode<synchronous>, transform_indices = @transform_8, window_bounds = array<i64: 32, 32>}, {pipeline_mode = #tpu.pipeline_mode<synchronous>, transform_indices = @transform_9, window_bounds = array<i64: 1, 32>}, {pipeline_mode = #tpu.pipeline_mode<synchronous>, transform_indices = @transform_10, window_bounds = array<i64: 32, 64>}, {pipeline_mode = #tpu.pipeline_mode<synchronous>, transform_indices = @transform_11, window_bounds = array<i64: 1, 64>}, {pipeline_mode = #tpu.pipeline_mode<synchronous>, transform_indices = @transform_12, window_bounds = array<i64: 32, 32>}, {pipeline_mode = #tpu.pipeline_mode<synchronous>, transform_indices = @transform_13, window_bounds = array<i64: 1, 32>}, {pipeline_mode = #tpu.pipeline_mode<synchronous>, transform_indices = @transform_14, window_bounds = array<i64: 1, 32>}, {pipeline_mode = #tpu.pipeline_mode<synchronous>, transform_indices = @transform_15, window_bounds = array<i64: 1, 32>}, {pipeline_mode = #tpu.pipeline_mode<synchronous>, transform_indices = @transform_16, window_bounds = array<i64: 32, 64>}, {pipeline_mode = #tpu.pipeline_mode<synchronous>, transform_indices = @transform_17, window_bounds = array<i64: 1, 64>}, {pipeline_mode = #tpu.pipeline_mode<synchronous>, transform_indices = @transform_18, window_bounds = array<i64: 64, 32>}, {pipeline_mode = #tpu.pipeline_mode<synchronous>, transform_indices = @transform_19, window_bounds = array<i64: 1, 32>}, {pipeline_mode = #tpu.pipeline_mode<synchronous>, transform_indices = @transform_20, window_bounds = array<i64: 1, 32>}, {pipeline_mode = #tpu.pipeline_mode<synchronous>, transform_indices = @transform_21, window_bounds = array<i64: 1, 32>}, {pipeline_mode = #tpu.pipeline_mode<synchronous>, transform_indices = @transform_22, window_bounds = array<i64: 1, 32>}, {pipeline_mode = #tpu.pipeline_mode<synchronous>, transform_indices = @transform_23, window_bounds = array<i64: 1, 32>}, {pipeline_mode = #tpu.pipeline_mode<synchronous>, transform_indices = @transform_24, window_bounds = array<i64: 32, 128>}, {pipeline_mode = #tpu.pipeline_mode<synchronous>, transform_indices = @transform_25, window_bounds = array<i64: 1, 128>}, {transform_indices = @transform_26, window_bounds = array<i64: 1, 8, 128>}]} {
    %c0 = arith.constant 0 : index
    %c0_0 = arith.constant 0 : index
    %c0_1 = arith.constant 0 : index
    %0 = vector.load %arg1[%c0, %c0_0, %c0_1] : memref<1x8x32xf32, #tpu.memory_space<vmem>>, vector<1x8x32xf32>
    %1 = vector.shape_cast %0 : vector<1x8x32xf32> to vector<8x32xf32>
    %c0_2 = arith.constant 0 : index
    %c0_3 = arith.constant 0 : index
    %c0_4 = arith.constant 0 : index
    %2 = vector.load %arg2[%c0_2, %c0_3, %c0_4] : memref<1x6x32xf32, #tpu.memory_space<vmem>>, vector<1x6x32xf32>
    %3 = vector.shape_cast %2 : vector<1x6x32xf32> to vector<6x32xf32>
    %c0_5 = arith.constant 0 : index
    %c0_6 = arith.constant 0 : index
    %4 = vector.load %arg3[%c0_5, %c0_6] : memref<32x96xf32, #tpu.memory_space<vmem>>, vector<32x96xf32>
    %c0_7 = arith.constant 0 : index
    %c0_8 = arith.constant 0 : index
    %5 = vector.load %arg4[%c0_7, %c0_8] : memref<1x96xf32, #tpu.memory_space<vmem>>, vector<1x96xf32>
    %c0_9 = arith.constant 0 : index
    %c0_10 = arith.constant 0 : index
    %6 = vector.load %arg5[%c0_9, %c0_10] : memref<32x32xf32, #tpu.memory_space<vmem>>, vector<32x32xf32>
    %c0_11 = arith.constant 0 : index
    %c0_12 = arith.constant 0 : index
    %7 = vector.load %arg6[%c0_11, %c0_12] : memref<1x32xf32, #tpu.memory_space<vmem>>, vector<1x32xf32>
    %c0_13 = arith.constant 0 : index
    %c0_14 = arith.constant 0 : index
    %8 = vector.load %arg7[%c0_13, %c0_14] : memref<1x32xf32, #tpu.memory_space<vmem>>, vector<1x32xf32>
    %c0_15 = arith.constant 0 : index
    %c0_16 = arith.constant 0 : index
    %9 = vector.load %arg8[%c0_15, %c0_16] : memref<1x32xf32, #tpu.memory_space<vmem>>, vector<1x32xf32>
    %c0_17 = arith.constant 0 : index
    %c0_18 = arith.constant 0 : index
    %10 = vector.load %arg9[%c0_17, %c0_18] : memref<32x32xf32, #tpu.memory_space<vmem>>, vector<32x32xf32>
    %c0_19 = arith.constant 0 : index
    %c0_20 = arith.constant 0 : index
    %11 = vector.load %arg10[%c0_19, %c0_20] : memref<1x32xf32, #tpu.memory_space<vmem>>, vector<1x32xf32>
    %c0_21 = arith.constant 0 : index
    %c0_22 = arith.constant 0 : index
    %12 = vector.load %arg11[%c0_21, %c0_22] : memref<32x64xf32, #tpu.memory_space<vmem>>, vector<32x64xf32>
    %c0_23 = arith.constant 0 : index
    %c0_24 = arith.constant 0 : index
    %13 = vector.load %arg12[%c0_23, %c0_24] : memref<1x64xf32, #tpu.memory_space<vmem>>, vector<1x64xf32>
    %c0_25 = arith.constant 0 : index
    %c0_26 = arith.constant 0 : index
    %14 = vector.load %arg13[%c0_25, %c0_26] : memref<32x32xf32, #tpu.memory_space<vmem>>, vector<32x32xf32>
    %c0_27 = arith.constant 0 : index
    %c0_28 = arith.constant 0 : index
    %15 = vector.load %arg14[%c0_27, %c0_28] : memref<1x32xf32, #tpu.memory_space<vmem>>, vector<1x32xf32>
    %c0_29 = arith.constant 0 : index
    %c0_30 = arith.constant 0 : index
    %16 = vector.load %arg15[%c0_29, %c0_30] : memref<1x32xf32, #tpu.memory_space<vmem>>, vector<1x32xf32>
    %c0_31 = arith.constant 0 : index
    %c0_32 = arith.constant 0 : index
    %17 = vector.load %arg16[%c0_31, %c0_32] : memref<1x32xf32, #tpu.memory_space<vmem>>, vector<1x32xf32>
    %c0_33 = arith.constant 0 : index
    %c0_34 = arith.constant 0 : index
    %18 = vector.load %arg17[%c0_33, %c0_34] : memref<32x64xf32, #tpu.memory_space<vmem>>, vector<32x64xf32>
    %c0_35 = arith.constant 0 : index
    %c0_36 = arith.constant 0 : index
    %19 = vector.load %arg18[%c0_35, %c0_36] : memref<1x64xf32, #tpu.memory_space<vmem>>, vector<1x64xf32>
    %c0_37 = arith.constant 0 : index
    %c0_38 = arith.constant 0 : index
    %20 = vector.load %arg19[%c0_37, %c0_38] : memref<64x32xf32, #tpu.memory_space<vmem>>, vector<64x32xf32>
    %c0_39 = arith.constant 0 : index
    %c0_40 = arith.constant 0 : index
    %21 = vector.load %arg20[%c0_39, %c0_40] : memref<1x32xf32, #tpu.memory_space<vmem>>, vector<1x32xf32>
    %c0_41 = arith.constant 0 : index
    %c0_42 = arith.constant 0 : index
    %22 = vector.load %arg21[%c0_41, %c0_42] : memref<1x32xf32, #tpu.memory_space<vmem>>, vector<1x32xf32>
    %c0_43 = arith.constant 0 : index
    %c0_44 = arith.constant 0 : index
    %23 = vector.load %arg22[%c0_43, %c0_44] : memref<1x32xf32, #tpu.memory_space<vmem>>, vector<1x32xf32>
    %cst = arith.constant dense<0.000000e+00> : vector<8x96xf32>
    %24 = tpu.matmul %1, %4, %cst {dimension_numbers = #tpu.dot_dimension_numbers<[1], [0], [0], [1], [0, 0, 1, 1], [], []>} : vector<8x32xf32>, vector<32x96xf32>, vector<8x96xf32> -> vector<8x96xf32>
    %25 = vector.broadcast %5 : vector<1x96xf32> to vector<8x96xf32>
    %26 = arith.addf %24, %25 : vector<8x96xf32>
    %27 = vector.extract_strided_slice %26 {offsets = [0, 0], sizes = [8, 32], strides = [1, 1]} : vector<8x96xf32> to vector<8x32xf32>
    %28 = vector.extract_strided_slice %26 {offsets = [0, 32], sizes = [8, 32], strides = [1, 1]} : vector<8x96xf32> to vector<8x32xf32>
    %29 = vector.extract_strided_slice %26 {offsets = [0, 64], sizes = [8, 32], strides = [1, 1]} : vector<8x96xf32> to vector<8x32xf32>
    %30 = vector.extract_strided_slice %27 {offsets = [0, 0], sizes = [8, 8], strides = [1, 1]} : vector<8x32xf32> to vector<8x8xf32>
    %31 = vector.extract_strided_slice %27 {offsets = [0, 8], sizes = [8, 8], strides = [1, 1]} : vector<8x32xf32> to vector<8x8xf32>
    %32 = vector.extract_strided_slice %27 {offsets = [0, 16], sizes = [8, 8], strides = [1, 1]} : vector<8x32xf32> to vector<8x8xf32>
    %33 = vector.extract_strided_slice %27 {offsets = [0, 24], sizes = [8, 8], strides = [1, 1]} : vector<8x32xf32> to vector<8x8xf32>
    %34 = vector.shape_cast %30 : vector<8x8xf32> to vector<1x8x8xf32>
    %35 = vector.shape_cast %31 : vector<8x8xf32> to vector<1x8x8xf32>
    %36 = vector.shape_cast %32 : vector<8x8xf32> to vector<1x8x8xf32>
    %37 = vector.shape_cast %33 : vector<8x8xf32> to vector<1x8x8xf32>
    %38 = tpu.concatenate %34, %35, %36, %37 in 0 : vector<1x8x8xf32>, vector<1x8x8xf32>, vector<1x8x8xf32>, vector<1x8x8xf32> -> vector<4x8x8xf32>
    %39 = vector.extract_strided_slice %28 {offsets = [0, 0], sizes = [8, 8], strides = [1, 1]} : vector<8x32xf32> to vector<8x8xf32>
    %40 = vector.extract_strided_slice %28 {offsets = [0, 8], sizes = [8, 8], strides = [1, 1]} : vector<8x32xf32> to vector<8x8xf32>
    %41 = vector.extract_strided_slice %28 {offsets = [0, 16], sizes = [8, 8], strides = [1, 1]} : vector<8x32xf32> to vector<8x8xf32>
    %42 = vector.extract_strided_slice %28 {offsets = [0, 24], sizes = [8, 8], strides = [1, 1]} : vector<8x32xf32> to vector<8x8xf32>
    %43 = vector.shape_cast %39 : vector<8x8xf32> to vector<1x8x8xf32>
    %44 = vector.shape_cast %40 : vector<8x8xf32> to vector<1x8x8xf32>
    %45 = vector.shape_cast %41 : vector<8x8xf32> to vector<1x8x8xf32>
    %46 = vector.shape_cast %42 : vector<8x8xf32> to vector<1x8x8xf32>
    %47 = tpu.concatenate %43, %44, %45, %46 in 0 : vector<1x8x8xf32>, vector<1x8x8xf32>, vector<1x8x8xf32>, vector<1x8x8xf32> -> vector<4x8x8xf32>
    %48 = vector.extract_strided_slice %29 {offsets = [0, 0], sizes = [8, 8], strides = [1, 1]} : vector<8x32xf32> to vector<8x8xf32>
    %49 = vector.extract_strided_slice %29 {offsets = [0, 8], sizes = [8, 8], strides = [1, 1]} : vector<8x32xf32> to vector<8x8xf32>
    %50 = vector.extract_strided_slice %29 {offsets = [0, 16], sizes = [8, 8], strides = [1, 1]} : vector<8x32xf32> to vector<8x8xf32>
    %51 = vector.extract_strided_slice %29 {offsets = [0, 24], sizes = [8, 8], strides = [1, 1]} : vector<8x32xf32> to vector<8x8xf32>
    %52 = vector.shape_cast %48 : vector<8x8xf32> to vector<1x8x8xf32>
    %53 = vector.shape_cast %49 : vector<8x8xf32> to vector<1x8x8xf32>
    %54 = vector.shape_cast %50 : vector<8x8xf32> to vector<1x8x8xf32>
    %55 = vector.shape_cast %51 : vector<8x8xf32> to vector<1x8x8xf32>
    %56 = tpu.concatenate %52, %53, %54, %55 in 0 : vector<1x8x8xf32>, vector<1x8x8xf32>, vector<1x8x8xf32>, vector<1x8x8xf32> -> vector<4x8x8xf32>
    "tpu.trace_start"() <{level = 10 : i32, message = "hqd,hkd->hqk"}> : () -> ()
    %cst_45 = arith.constant dense<0.000000e+00> : vector<4x8x8xf32>
    %57 = tpu.matmul %38, %47, %cst_45 {dimension_numbers = #tpu.dot_dimension_numbers<[2], [2], [1], [1], [0, 0, 0, 1, 1, 1], [0], [0]>} : vector<4x8x8xf32>, vector<4x8x8xf32>, vector<4x8x8xf32> -> vector<4x8x8xf32>
    "tpu.trace_stop"() : () -> ()
    %cst_46 = arith.constant 0.353553385 : f32
    %58 = vector.broadcast %cst_46 : f32 to vector<4x8x8xf32>
    %59 = arith.mulf %57, %58 : vector<4x8x8xf32>
    %cst_47 = arith.constant dense<0xFF800000> : vector<4x8xf32>
    %60 = vector.multi_reduction <maximumf>, %59, %cst_47 [2] : vector<4x8x8xf32> to vector<4x8xf32>
    %61 = vector.shape_cast %60 : vector<4x8xf32> to vector<4x8x1xf32>
    %62 = vector.broadcast %61 : vector<4x8x1xf32> to vector<4x8x8xf32>
    %63 = arith.subf %59, %62 : vector<4x8x8xf32>
    %64 = math.exp %63 : vector<4x8x8xf32>
    %cst_48 = arith.constant dense<0.000000e+00> : vector<4x8xf32>
    %65 = vector.multi_reduction <add>, %64, %cst_48 [2] : vector<4x8x8xf32> to vector<4x8xf32>
    %66 = vector.shape_cast %65 : vector<4x8xf32> to vector<4x8x1xf32>
    %67 = vector.broadcast %66 : vector<4x8x1xf32> to vector<4x8x8xf32>
    %68 = arith.divf %64, %67 : vector<4x8x8xf32>
    "tpu.trace_start"() <{level = 10 : i32, message = "hqk,hkd->hqd"}> : () -> ()
    %cst_49 = arith.constant dense<0.000000e+00> : vector<4x8x8xf32>
    %69 = tpu.matmul %68, %56, %cst_49 {dimension_numbers = #tpu.dot_dimension_numbers<[2], [1], [1], [2], [0, 0, 0, 1, 1, 2], [0], [0]>} : vector<4x8x8xf32>, vector<4x8x8xf32>, vector<4x8x8xf32> -> vector<4x8x8xf32>
    "tpu.trace_stop"() : () -> ()
    %70 = vector.extract_strided_slice %69 {offsets = [0, 0, 0], sizes = [1, 8, 8], strides = [1, 1, 1]} : vector<4x8x8xf32> to vector<1x8x8xf32>
    %71 = vector.shape_cast %70 : vector<1x8x8xf32> to vector<8x8xf32>
    %c0_50 = arith.constant 0 : index
    %c0_51 = arith.constant 0 : index
    %72 = vector.load %arg28[%c0_50, %c0_51] : memref<8x32xf32, #tpu.memory_space<vmem>>, vector<8x8xf32>
    tpu.vector_store %arg28[%c0_50, %c0_51], %71 {strides = array<i32>} : memref<8x32xf32, #tpu.memory_space<vmem>>, vector<8x8xf32>,
    %73 = vector.extract_strided_slice %69 {offsets = [1, 0, 0], sizes = [1, 8, 8], strides = [1, 1, 1]} : vector<4x8x8xf32> to vector<1x8x8xf32>
    %74 = vector.shape_cast %73 : vector<1x8x8xf32> to vector<8x8xf32>
    %c0_52 = arith.constant 0 : index
    %c8 = arith.constant 8 : index
    %75 = vector.load %arg28[%c0_52, %c8] : memref<8x32xf32, #tpu.memory_space<vmem>>, vector<8x8xf32>
    tpu.vector_store %arg28[%c0_52, %c8], %74 {strides = array<i32>} : memref<8x32xf32, #tpu.memory_space<vmem>>, vector<8x8xf32>,
    %76 = vector.extract_strided_slice %69 {offsets = [2, 0, 0], sizes = [1, 8, 8], strides = [1, 1, 1]} : vector<4x8x8xf32> to vector<1x8x8xf32>
    %77 = vector.shape_cast %76 : vector<1x8x8xf32> to vector<8x8xf32>
    %c0_53 = arith.constant 0 : index
    %c16 = arith.constant 16 : index
    %78 = vector.load %arg28[%c0_53, %c16] : memref<8x32xf32, #tpu.memory_space<vmem>>, vector<8x8xf32>
    tpu.vector_store %arg28[%c0_53, %c16], %77 {strides = array<i32>} : memref<8x32xf32, #tpu.memory_space<vmem>>, vector<8x8xf32>,
    %79 = vector.extract_strided_slice %69 {offsets = [3, 0, 0], sizes = [1, 8, 8], strides = [1, 1, 1]} : vector<4x8x8xf32> to vector<1x8x8xf32>
    %80 = vector.shape_cast %79 : vector<1x8x8xf32> to vector<8x8xf32>
    %c0_54 = arith.constant 0 : index
    %c24 = arith.constant 24 : index
    %81 = vector.load %arg28[%c0_54, %c24] : memref<8x32xf32, #tpu.memory_space<vmem>>, vector<8x8xf32>
    tpu.vector_store %arg28[%c0_54, %c24], %80 {strides = array<i32>} : memref<8x32xf32, #tpu.memory_space<vmem>>, vector<8x8xf32>,
    %c0_55 = arith.constant 0 : index
    %c0_56 = arith.constant 0 : index
    %82 = vector.load %arg28[%c0_55, %c0_56] : memref<8x32xf32, #tpu.memory_space<vmem>>, vector<8x32xf32>
    %cst_57 = arith.constant dense<0.000000e+00> : vector<8x32xf32>
    %83 = tpu.matmul %82, %6, %cst_57 {dimension_numbers = #tpu.dot_dimension_numbers<[1], [0], [0], [1], [0, 0, 1, 1], [], []>} : vector<8x32xf32>, vector<32x32xf32>, vector<8x32xf32> -> vector<8x32xf32>
    %84 = vector.broadcast %7 : vector<1x32xf32> to vector<8x32xf32>
    %85 = arith.addf %83, %84 : vector<8x32xf32>
    %86 = arith.addf %1, %85 : vector<8x32xf32>
    %cst_58 = arith.constant dense<0.000000e+00> : vector<8xf32>
    %87 = vector.multi_reduction <add>, %86, %cst_58 [1] : vector<8x32xf32> to vector<8xf32>
    %88 = vector.shape_cast %87 : vector<8xf32> to vector<8x1xf32>
    %cst_59 = arith.constant 3.200000e+01 : f32
    %89 = vector.broadcast %cst_59 : f32 to vector<8x1xf32>
    %90 = arith.divf %88, %89 : vector<8x1xf32>
    %91 = vector.broadcast %90 : vector<8x1xf32> to vector<8x32xf32>
    %92 = arith.subf %86, %91 : vector<8x32xf32>
    %93 = arith.mulf %92, %92 : vector<8x32xf32>
    %cst_60 = arith.constant dense<0.000000e+00> : vector<8xf32>
    %94 = vector.multi_reduction <add>, %93, %cst_60 [1] : vector<8x32xf32> to vector<8xf32>
    %95 = vector.shape_cast %94 : vector<8xf32> to vector<8x1xf32>
    %cst_61 = arith.constant 3.200000e+01 : f32
    %96 = vector.broadcast %cst_61 : f32 to vector<8x1xf32>
    %97 = arith.divf %95, %96 : vector<8x1xf32>
    %98 = vector.broadcast %90 : vector<8x1xf32> to vector<8x32xf32>
    %99 = arith.subf %86, %98 : vector<8x32xf32>
    %cst_62 = arith.constant 9.99999974E-6 : f32
    %100 = vector.broadcast %cst_62 : f32 to vector<8x1xf32>
    %101 = arith.addf %97, %100 : vector<8x1xf32>
    %102 = math.rsqrt %101 : vector<8x1xf32>
    %103 = vector.broadcast %102 : vector<8x1xf32> to vector<8x32xf32>
    %104 = arith.mulf %99, %103 : vector<8x32xf32>
    %105 = vector.broadcast %8 : vector<1x32xf32> to vector<8x32xf32>
    %106 = arith.mulf %104, %105 : vector<8x32xf32>
    %107 = vector.broadcast %9 : vector<1x32xf32> to vector<8x32xf32>
    %108 = arith.addf %106, %107 : vector<8x32xf32>
    %cst_63 = arith.constant dense<0.000000e+00> : vector<8x32xf32>
    %109 = tpu.matmul %108, %10, %cst_63 {dimension_numbers = #tpu.dot_dimension_numbers<[1], [0], [0], [1], [0, 0, 1, 1], [], []>} : vector<8x32xf32>, vector<32x32xf32>, vector<8x32xf32> -> vector<8x32xf32>
    %110 = vector.broadcast %11 : vector<1x32xf32> to vector<8x32xf32>
    %111 = arith.addf %109, %110 : vector<8x32xf32>
    %cst_64 = arith.constant dense<0.000000e+00> : vector<6x64xf32>
    %112 = tpu.matmul %3, %12, %cst_64 {dimension_numbers = #tpu.dot_dimension_numbers<[1], [0], [0], [1], [0, 0, 1, 1], [], []>} : vector<6x32xf32>, vector<32x64xf32>, vector<6x64xf32> -> vector<6x64xf32>
    %113 = vector.broadcast %13 : vector<1x64xf32> to vector<6x64xf32>
    %114 = arith.addf %112, %113 : vector<6x64xf32>
    %115 = vector.extract_strided_slice %114 {offsets = [0, 0], sizes = [6, 32], strides = [1, 1]} : vector<6x64xf32> to vector<6x32xf32>
    %116 = vector.extract_strided_slice %114 {offsets = [0, 32], sizes = [6, 32], strides = [1, 1]} : vector<6x64xf32> to vector<6x32xf32>
    %117 = vector.extract_strided_slice %111 {offsets = [0, 0], sizes = [8, 8], strides = [1, 1]} : vector<8x32xf32> to vector<8x8xf32>
    %118 = vector.extract_strided_slice %111 {offsets = [0, 8], sizes = [8, 8], strides = [1, 1]} : vector<8x32xf32> to vector<8x8xf32>
    %119 = vector.extract_strided_slice %111 {offsets = [0, 16], sizes = [8, 8], strides = [1, 1]} : vector<8x32xf32> to vector<8x8xf32>
    %120 = vector.extract_strided_slice %111 {offsets = [0, 24], sizes = [8, 8], strides = [1, 1]} : vector<8x32xf32> to vector<8x8xf32>
    %121 = vector.shape_cast %117 : vector<8x8xf32> to vector<1x8x8xf32>
    %122 = vector.shape_cast %118 : vector<8x8xf32> to vector<1x8x8xf32>
    %123 = vector.shape_cast %119 : vector<8x8xf32> to vector<1x8x8xf32>
    %124 = vector.shape_cast %120 : vector<8x8xf32> to vector<1x8x8xf32>
    %125 = tpu.concatenate %121, %122, %123, %124 in 0 : vector<1x8x8xf32>, vector<1x8x8xf32>, vector<1x8x8xf32>, vector<1x8x8xf32> -> vector<4x8x8xf32>
    %126 = vector.extract_strided_slice %115 {offsets = [0, 0], sizes = [6, 8], strides = [1, 1]} : vector<6x32xf32> to vector<6x8xf32>
    %127 = vector.extract_strided_slice %115 {offsets = [0, 8], sizes = [6, 8], strides = [1, 1]} : vector<6x32xf32> to vector<6x8xf32>
    %128 = vector.extract_strided_slice %115 {offsets = [0, 16], sizes = [6, 8], strides = [1, 1]} : vector<6x32xf32> to vector<6x8xf32>
    %129 = vector.extract_strided_slice %115 {offsets = [0, 24], sizes = [6, 8], strides = [1, 1]} : vector<6x32xf32> to vector<6x8xf32>
    %130 = vector.shape_cast %126 : vector<6x8xf32> to vector<1x6x8xf32>
    %131 = vector.shape_cast %127 : vector<6x8xf32> to vector<1x6x8xf32>
    %132 = vector.shape_cast %128 : vector<6x8xf32> to vector<1x6x8xf32>
    %133 = vector.shape_cast %129 : vector<6x8xf32> to vector<1x6x8xf32>
    %134 = tpu.concatenate %130, %131, %132, %133 in 0 : vector<1x6x8xf32>, vector<1x6x8xf32>, vector<1x6x8xf32>, vector<1x6x8xf32> -> vector<4x6x8xf32>
    %135 = vector.extract_strided_slice %116 {offsets = [0, 0], sizes = [6, 8], strides = [1, 1]} : vector<6x32xf32> to vector<6x8xf32>
    %136 = vector.extract_strided_slice %116 {offsets = [0, 8], sizes = [6, 8], strides = [1, 1]} : vector<6x32xf32> to vector<6x8xf32>
    %137 = vector.extract_strided_slice %116 {offsets = [0, 16], sizes = [6, 8], strides = [1, 1]} : vector<6x32xf32> to vector<6x8xf32>
    %138 = vector.extract_strided_slice %116 {offsets = [0, 24], sizes = [6, 8], strides = [1, 1]} : vector<6x32xf32> to vector<6x8xf32>
    %139 = vector.shape_cast %135 : vector<6x8xf32> to vector<1x6x8xf32>
    %140 = vector.shape_cast %136 : vector<6x8xf32> to vector<1x6x8xf32>
    %141 = vector.shape_cast %137 : vector<6x8xf32> to vector<1x6x8xf32>
    %142 = vector.shape_cast %138 : vector<6x8xf32> to vector<1x6x8xf32>
    %143 = tpu.concatenate %139, %140, %141, %142 in 0 : vector<1x6x8xf32>, vector<1x6x8xf32>, vector<1x6x8xf32>, vector<1x6x8xf32> -> vector<4x6x8xf32>
    "tpu.trace_start"() <{level = 10 : i32, message = "hqd,hkd->hqk"}> : () -> ()
    %cst_65 = arith.constant dense<0.000000e+00> : vector<4x8x6xf32>
    %144 = tpu.matmul %125, %134, %cst_65 {dimension_numbers = #tpu.dot_dimension_numbers<[2], [2], [1], [1], [0, 0, 0, 1, 1, 1], [0], [0]>} : vector<4x8x8xf32>, vector<4x6x8xf32>, vector<4x8x6xf32> -> vector<4x8x6xf32>
    "tpu.trace_stop"() : () -> ()
    %cst_66 = arith.constant 0.353553385 : f32
    %145 = vector.broadcast %cst_66 : f32 to vector<4x8x6xf32>
    %146 = arith.mulf %144, %145 : vector<4x8x6xf32>
    %cst_67 = arith.constant dense<0xFF800000> : vector<4x8xf32>
    %147 = vector.multi_reduction <maximumf>, %146, %cst_67 [2] : vector<4x8x6xf32> to vector<4x8xf32>
    %148 = vector.shape_cast %147 : vector<4x8xf32> to vector<4x8x1xf32>
    %149 = vector.broadcast %148 : vector<4x8x1xf32> to vector<4x8x6xf32>
    %150 = arith.subf %146, %149 : vector<4x8x6xf32>
    %151 = math.exp %150 : vector<4x8x6xf32>
    %cst_68 = arith.constant dense<0.000000e+00> : vector<4x8xf32>
    %152 = vector.multi_reduction <add>, %151, %cst_68 [2] : vector<4x8x6xf32> to vector<4x8xf32>
    %153 = vector.shape_cast %152 : vector<4x8xf32> to vector<4x8x1xf32>
    %154 = vector.broadcast %153 : vector<4x8x1xf32> to vector<4x8x6xf32>
    %155 = arith.divf %151, %154 : vector<4x8x6xf32>
    "tpu.trace_start"() <{level = 10 : i32, message = "hqk,hkd->hqd"}> : () -> ()
    %cst_69 = arith.constant dense<0.000000e+00> : vector<4x8x8xf32>
    %156 = tpu.matmul %155, %143, %cst_69 {dimension_numbers = #tpu.dot_dimension_numbers<[2], [1], [1], [2], [0, 0, 0, 1, 1, 2], [0], [0]>} : vector<4x8x6xf32>, vector<4x6x8xf32>, vector<4x8x8xf32> -> vector<4x8x8xf32>
    "tpu.trace_stop"() : () -> ()
    %157 = vector.extract_strided_slice %156 {offsets = [0, 0, 0], sizes = [1, 8, 8], strides = [1, 1, 1]} : vector<4x8x8xf32> to vector<1x8x8xf32>
    %158 = vector.shape_cast %157 : vector<1x8x8xf32> to vector<8x8xf32>
    %c0_70 = arith.constant 0 : index
    %c0_71 = arith.constant 0 : index
    %159 = vector.load %arg28[%c0_70, %c0_71] : memref<8x32xf32, #tpu.memory_space<vmem>>, vector<8x8xf32>
    tpu.vector_store %arg28[%c0_70, %c0_71], %158 {strides = array<i32>} : memref<8x32xf32, #tpu.memory_space<vmem>>, vector<8x8xf32>,
    %160 = vector.extract_strided_slice %156 {offsets = [1, 0, 0], sizes = [1, 8, 8], strides = [1, 1, 1]} : vector<4x8x8xf32> to vector<1x8x8xf32>
    %161 = vector.shape_cast %160 : vector<1x8x8xf32> to vector<8x8xf32>
    %c0_72 = arith.constant 0 : index
    %c8_73 = arith.constant 8 : index
    %162 = vector.load %arg28[%c0_72, %c8_73] : memref<8x32xf32, #tpu.memory_space<vmem>>, vector<8x8xf32>
    tpu.vector_store %arg28[%c0_72, %c8_73], %161 {strides = array<i32>} : memref<8x32xf32, #tpu.memory_space<vmem>>, vector<8x8xf32>,
    %163 = vector.extract_strided_slice %156 {offsets = [2, 0, 0], sizes = [1, 8, 8], strides = [1, 1, 1]} : vector<4x8x8xf32> to vector<1x8x8xf32>
    %164 = vector.shape_cast %163 : vector<1x8x8xf32> to vector<8x8xf32>
    %c0_74 = arith.constant 0 : index
    %c16_75 = arith.constant 16 : index
    %165 = vector.load %arg28[%c0_74, %c16_75] : memref<8x32xf32, #tpu.memory_space<vmem>>, vector<8x8xf32>
    tpu.vector_store %arg28[%c0_74, %c16_75], %164 {strides = array<i32>} : memref<8x32xf32, #tpu.memory_space<vmem>>, vector<8x8xf32>,
    %166 = vector.extract_strided_slice %156 {offsets = [3, 0, 0], sizes = [1, 8, 8], strides = [1, 1, 1]} : vector<4x8x8xf32> to vector<1x8x8xf32>
    %167 = vector.shape_cast %166 : vector<1x8x8xf32> to vector<8x8xf32>
    %c0_76 = arith.constant 0 : index
    %c24_77 = arith.constant 24 : index
    %168 = vector.load %arg28[%c0_76, %c24_77] : memref<8x32xf32, #tpu.memory_space<vmem>>, vector<8x8xf32>
    tpu.vector_store %arg28[%c0_76, %c24_77], %167 {strides = array<i32>} : memref<8x32xf32, #tpu.memory_space<vmem>>, vector<8x8xf32>,
    %c0_78 = arith.constant 0 : index
    %c0_79 = arith.constant 0 : index
    %169 = vector.load %arg28[%c0_78, %c0_79] : memref<8x32xf32, #tpu.memory_space<vmem>>, vector<8x32xf32>
    %cst_80 = arith.constant dense<0.000000e+00> : vector<8x32xf32>
    %170 = tpu.matmul %169, %14, %cst_80 {dimension_numbers = #tpu.dot_dimension_numbers<[1], [0], [0], [1], [0, 0, 1, 1], [], []>} : vector<8x32xf32>, vector<32x32xf32>, vector<8x32xf32> -> vector<8x32xf32>
    %171 = vector.broadcast %15 : vector<1x32xf32> to vector<8x32xf32>
    %172 = arith.addf %170, %171 : vector<8x32xf32>
    %173 = arith.addf %108, %172 : vector<8x32xf32>
    %cst_81 = arith.constant dense<0.000000e+00> : vector<8xf32>
    %174 = vector.multi_reduction <add>, %173, %cst_81 [1] : vector<8x32xf32> to vector<8xf32>
    %175 = vector.shape_cast %174 : vector<8xf32> to vector<8x1xf32>
    %cst_82 = arith.constant 3.200000e+01 : f32
    %176 = vector.broadcast %cst_82 : f32 to vector<8x1xf32>
    %177 = arith.divf %175, %176 : vector<8x1xf32>
    %178 = vector.broadcast %177 : vector<8x1xf32> to vector<8x32xf32>
    %179 = arith.subf %173, %178 : vector<8x32xf32>
    %180 = arith.mulf %179, %179 : vector<8x32xf32>
    %cst_83 = arith.constant dense<0.000000e+00> : vector<8xf32>
    %181 = vector.multi_reduction <add>, %180, %cst_83 [1] : vector<8x32xf32> to vector<8xf32>
    %182 = vector.shape_cast %181 : vector<8xf32> to vector<8x1xf32>
    %cst_84 = arith.constant 3.200000e+01 : f32
    %183 = vector.broadcast %cst_84 : f32 to vector<8x1xf32>
    %184 = arith.divf %182, %183 : vector<8x1xf32>
    %185 = vector.broadcast %177 : vector<8x1xf32> to vector<8x32xf32>
    %186 = arith.subf %173, %185 : vector<8x32xf32>
    %cst_85 = arith.constant 9.99999974E-6 : f32
    %187 = vector.broadcast %cst_85 : f32 to vector<8x1xf32>
    %188 = arith.addf %184, %187 : vector<8x1xf32>
    %189 = math.rsqrt %188 : vector<8x1xf32>
    %190 = vector.broadcast %189 : vector<8x1xf32> to vector<8x32xf32>
    %191 = arith.mulf %186, %190 : vector<8x32xf32>
    %192 = vector.broadcast %16 : vector<1x32xf32> to vector<8x32xf32>
    %193 = arith.mulf %191, %192 : vector<8x32xf32>
    %194 = vector.broadcast %17 : vector<1x32xf32> to vector<8x32xf32>
    %195 = arith.addf %193, %194 : vector<8x32xf32>
    %cst_86 = arith.constant dense<0.000000e+00> : vector<8x64xf32>
    %196 = tpu.matmul %195, %18, %cst_86 {dimension_numbers = #tpu.dot_dimension_numbers<[1], [0], [0], [1], [0, 0, 1, 1], [], []>} : vector<8x32xf32>, vector<32x64xf32>, vector<8x64xf32> -> vector<8x64xf32>
    %197 = vector.broadcast %19 : vector<1x64xf32> to vector<8x64xf32>
    %198 = arith.addf %196, %197 : vector<8x64xf32>
    %cst_87 = arith.constant 0.000000e+00 : f32
    %199 = vector.broadcast %cst_87 : f32 to vector<8x64xf32>
    %200 = arith.maximumf %198, %199 : vector<8x64xf32>
    %cst_88 = arith.constant dense<0.000000e+00> : vector<8x32xf32>
    %201 = tpu.matmul %200, %20, %cst_88 {dimension_numbers = #tpu.dot_dimension_numbers<[1], [0], [0], [1], [0, 0, 1, 1], [], []>} : vector<8x64xf32>, vector<64x32xf32>, vector<8x32xf32> -> vector<8x32xf32>
    %202 = vector.broadcast %21 : vector<1x32xf32> to vector<8x32xf32>
    %203 = arith.addf %201, %202 : vector<8x32xf32>
    %204 = arith.addf %195, %203 : vector<8x32xf32>
    %cst_89 = arith.constant dense<0.000000e+00> : vector<8xf32>
    %205 = vector.multi_reduction <add>, %204, %cst_89 [1] : vector<8x32xf32> to vector<8xf32>
    %206 = vector.shape_cast %205 : vector<8xf32> to vector<8x1xf32>
    %cst_90 = arith.constant 3.200000e+01 : f32
    %207 = vector.broadcast %cst_90 : f32 to vector<8x1xf32>
    %208 = arith.divf %206, %207 : vector<8x1xf32>
    %209 = vector.broadcast %208 : vector<8x1xf32> to vector<8x32xf32>
    %210 = arith.subf %204, %209 : vector<8x32xf32>
    %211 = arith.mulf %210, %210 : vector<8x32xf32>
    %cst_91 = arith.constant dense<0.000000e+00> : vector<8xf32>
    %212 = vector.multi_reduction <add>, %211, %cst_91 [1] : vector<8x32xf32> to vector<8xf32>
    %213 = vector.shape_cast %212 : vector<8xf32> to vector<8x1xf32>
    %cst_92 = arith.constant 3.200000e+01 : f32
    %214 = vector.broadcast %cst_92 : f32 to vector<8x1xf32>
    %215 = arith.divf %213, %214 : vector<8x1xf32>
    %216 = vector.broadcast %208 : vector<8x1xf32> to vector<8x32xf32>
    %217 = arith.subf %204, %216 : vector<8x32xf32>
    %cst_93 = arith.constant 9.99999974E-6 : f32
    %218 = vector.broadcast %cst_93 : f32 to vector<8x1xf32>
    %219 = arith.addf %215, %218 : vector<8x1xf32>
    %220 = math.rsqrt %219 : vector<8x1xf32>
    %221 = vector.broadcast %220 : vector<8x1xf32> to vector<8x32xf32>
    %222 = arith.mulf %217, %221 : vector<8x32xf32>
    %223 = vector.broadcast %22 : vector<1x32xf32> to vector<8x32xf32>
    %224 = arith.mulf %222, %223 : vector<8x32xf32>
    %225 = vector.broadcast %23 : vector<1x32xf32> to vector<8x32xf32>
    %226 = arith.addf %224, %225 : vector<8x32xf32>
    %c0_94 = arith.constant 0 : index
    %c0_95 = arith.constant 0 : index
    %227 = vector.load %arg23[%c0_94, %c0_95] : memref<1x32xf32, #tpu.memory_space<vmem>>, vector<1x32xf32>
    %c0_96 = arith.constant 0 : index
    %c0_97 = arith.constant 0 : index
    %228 = vector.load %arg24[%c0_96, %c0_97] : memref<1x32xf32, #tpu.memory_space<vmem>>, vector<1x32xf32>
    %cst_98 = arith.constant dense<0.000000e+00> : vector<8xf32>
    %229 = vector.multi_reduction <add>, %226, %cst_98 [1] : vector<8x32xf32> to vector<8xf32>
    %230 = vector.shape_cast %229 : vector<8xf32> to vector<8x1xf32>
    %cst_99 = arith.constant 3.200000e+01 : f32
    %231 = vector.broadcast %cst_99 : f32 to vector<8x1xf32>
    %232 = arith.divf %230, %231 : vector<8x1xf32>
    %233 = vector.broadcast %232 : vector<8x1xf32> to vector<8x32xf32>
    %234 = arith.subf %226, %233 : vector<8x32xf32>
    %235 = arith.mulf %234, %234 : vector<8x32xf32>
    %cst_100 = arith.constant dense<0.000000e+00> : vector<8xf32>
    %236 = vector.multi_reduction <add>, %235, %cst_100 [1] : vector<8x32xf32> to vector<8xf32>
    %237 = vector.shape_cast %236 : vector<8xf32> to vector<8x1xf32>
    %cst_101 = arith.constant 3.200000e+01 : f32
    %238 = vector.broadcast %cst_101 : f32 to vector<8x1xf32>
    %239 = arith.divf %237, %238 : vector<8x1xf32>
    %240 = vector.broadcast %232 : vector<8x1xf32> to vector<8x32xf32>
    %241 = arith.subf %226, %240 : vector<8x32xf32>
    %cst_102 = arith.constant 9.99999974E-6 : f32
    %242 = vector.broadcast %cst_102 : f32 to vector<8x1xf32>
    %243 = arith.addf %239, %242 : vector<8x1xf32>
    %244 = math.rsqrt %243 : vector<8x1xf32>
    %245 = vector.broadcast %244 : vector<8x1xf32> to vector<8x32xf32>
    %246 = arith.mulf %241, %245 : vector<8x32xf32>
    %247 = vector.broadcast %227 : vector<1x32xf32> to vector<8x32xf32>
    %248 = arith.mulf %246, %247 : vector<8x32xf32>
    %249 = vector.broadcast %228 : vector<1x32xf32> to vector<8x32xf32>
    %250 = arith.addf %248, %249 : vector<8x32xf32>
    %c0_103 = arith.constant 0 : index
    %c0_104 = arith.constant 0 : index
    %251 = vector.load %arg25[%c0_103, %c0_104] : memref<32x128xf32, #tpu.memory_space<vmem>>, vector<32x128xf32>
    %c0_105 = arith.constant 0 : index
    %c0_106 = arith.constant 0 : index
    %252 = vector.load %arg26[%c0_105, %c0_106] : memref<1x128xf32, #tpu.memory_space<vmem>>, vector<1x128xf32>
    %cst_107 = arith.constant dense<0.000000e+00> : vector<8x128xf32>
    %253 = tpu.matmul %250, %251, %cst_107 {dimension_numbers = #tpu.dot_dimension_numbers<[1], [0], [0], [1], [0, 0, 1, 1], [], []>} : vector<8x32xf32>, vector<32x128xf32>, vector<8x128xf32> -> vector<8x128xf32>
    %254 = vector.broadcast %252 : vector<1x128xf32> to vector<8x128xf32>
    %255 = arith.addf %253, %254 : vector<8x128xf32>
    %256 = vector.shape_cast %255 : vector<8x128xf32> to vector<1x8x128xf32>
    %c0_108 = arith.constant 0 : index
    %c0_109 = arith.constant 0 : index
    %c0_110 = arith.constant 0 : index
    %257 = vector.load %arg27[%c0_108, %c0_109, %c0_110] : memref<1x8x128xf32, #tpu.memory_space<vmem>>, vector<1x8x128xf32>
    tpu.vector_store %arg27[%c0_108, %c0_109, %c0_110], %256 {strides = array<i32>} : memref<1x8x128xf32, #tpu.memory_space<vmem>>, vector<1x8x128xf32>,
    return
  }
  func.func @transform_0(%arg0: i32) -> (i32, i32, i32) {
    %c0_i32 = arith.constant 0 : i32
    %c0_i32_0 = arith.constant 0 : i32
    %c0_i32_1 = arith.constant 0 : i32
    return %arg0, %c0_i32, %c0_i32_0 : i32, i32, i32
  }
  func.func @transform_1(%arg0: i32) -> (i32, i32, i32) {
    %c0_i32 = arith.constant 0 : i32
    %c0_i32_0 = arith.constant 0 : i32
    %c0_i32_1 = arith.constant 0 : i32
    return %arg0, %c0_i32, %c0_i32_0 : i32, i32, i32
  }
  func.func @transform_2(%arg0: i32) -> (i32, i32) {
    %c0_i32 = arith.constant 0 : i32
    %c0_i32_0 = arith.constant 0 : i32
    %c0_i32_1 = arith.constant 0 : i32
    return %c0_i32, %c0_i32_0 : i32, i32
  }
  func.func @transform_3(%arg0: i32) -> (i32, i32) {
    %c0_i32 = arith.constant 0 : i32
    %c0_i32_0 = arith.constant 0 : i32
    %c0_i32_1 = arith.constant 0 : i32
    return %c0_i32, %c0_i32_0 : i32, i32
  }
  func.func @transform_4(%arg0: i32) -> (i32, i32) {
    %c0_i32 = arith.constant 0 : i32
    %c0_i32_0 = arith.constant 0 : i32
    %c0_i32_1 = arith.constant 0 : i32
    return %c0_i32, %c0_i32_0 : i32, i32
  }
  func.func @transform_5(%arg0: i32) -> (i32, i32) {
    %c0_i32 = arith.constant 0 : i32
    %c0_i32_0 = arith.constant 0 : i32
    %c0_i32_1 = arith.constant 0 : i32
    return %c0_i32, %c0_i32_0 : i32, i32
  }
  func.func @transform_6(%arg0: i32) -> (i32, i32) {
    %c0_i32 = arith.constant 0 : i32
    %c0_i32_0 = arith.constant 0 : i32
    %c0_i32_1 = arith.constant 0 : i32
    return %c0_i32, %c0_i32_0 : i32, i32
  }
  func.func @transform_7(%arg0: i32) -> (i32, i32) {
    %c0_i32 = arith.constant 0 : i32
    %c0_i32_0 = arith.constant 0 : i32
    %c0_i32_1 = arith.constant 0 : i32
    return %c0_i32, %c0_i32_0 : i32, i32
  }
  func.func @transform_8(%arg0: i32) -> (i32, i32) {
    %c0_i32 = arith.constant 0 : i32
    %c0_i32_0 = arith.constant 0 : i32
    %c0_i32_1 = arith.constant 0 : i32
    return %c0_i32, %c0_i32_0 : i32, i32
  }
  func.func @transform_9(%arg0: i32) -> (i32, i32) {
    %c0_i32 = arith.constant 0 : i32
    %c0_i32_0 = arith.constant 0 : i32
    %c0_i32_1 = arith.constant 0 : i32
    return %c0_i32, %c0_i32_0 : i32, i32
  }
  func.func @transform_10(%arg0: i32) -> (i32, i32) {
    %c0_i32 = arith.constant 0 : i32
    %c0_i32_0 = arith.constant 0 : i32
    %c0_i32_1 = arith.constant 0 : i32
    return %c0_i32, %c0_i32_0 : i32, i32
  }
  func.func @transform_11(%arg0: i32) -> (i32, i32) {
    %c0_i32 = arith.constant 0 : i32
    %c0_i32_0 = arith.constant 0 : i32
    %c0_i32_1 = arith.constant 0 : i32
    return %c0_i32, %c0_i32_0 : i32, i32
  }
  func.func @transform_12(%arg0: i32) -> (i32, i32) {
    %c0_i32 = arith.constant 0 : i32
    %c0_i32_0 = arith.constant 0 : i32
    %c0_i32_1 = arith.constant 0 : i32
    return %c0_i32, %c0_i32_0 : i32, i32
  }
  func.func @transform_13(%arg0: i32) -> (i32, i32) {
    %c0_i32 = arith.constant 0 : i32
    %c0_i32_0 = arith.constant 0 : i32
    %c0_i32_1 = arith.constant 0 : i32
    return %c0_i32, %c0_i32_0 : i32, i32
  }
  func.func @transform_14(%arg0: i32) -> (i32, i32) {
    %c0_i32 = arith.constant 0 : i32
    %c0_i32_0 = arith.constant 0 : i32
    %c0_i32_1 = arith.constant 0 : i32
    return %c0_i32, %c0_i32_0 : i32, i32
  }
  func.func @transform_15(%arg0: i32) -> (i32, i32) {
    %c0_i32 = arith.constant 0 : i32
    %c0_i32_0 = arith.constant 0 : i32
    %c0_i32_1 = arith.constant 0 : i32
    return %c0_i32, %c0_i32_0 : i32, i32
  }
  func.func @transform_16(%arg0: i32) -> (i32, i32) {
    %c0_i32 = arith.constant 0 : i32
    %c0_i32_0 = arith.constant 0 : i32
    %c0_i32_1 = arith.constant 0 : i32
    return %c0_i32, %c0_i32_0 : i32, i32
  }
  func.func @transform_17(%arg0: i32) -> (i32, i32) {
    %c0_i32 = arith.constant 0 : i32
    %c0_i32_0 = arith.constant 0 : i32
    %c0_i32_1 = arith.constant 0 : i32
    return %c0_i32, %c0_i32_0 : i32, i32
  }
  func.func @transform_18(%arg0: i32) -> (i32, i32) {
    %c0_i32 = arith.constant 0 : i32
    %c0_i32_0 = arith.constant 0 : i32
    %c0_i32_1 = arith.constant 0 : i32
    return %c0_i32, %c0_i32_0 : i32, i32
  }
  func.func @transform_19(%arg0: i32) -> (i32, i32) {
    %c0_i32 = arith.constant 0 : i32
    %c0_i32_0 = arith.constant 0 : i32
    %c0_i32_1 = arith.constant 0 : i32
    return %c0_i32, %c0_i32_0 : i32, i32
  }
  func.func @transform_20(%arg0: i32) -> (i32, i32) {
    %c0_i32 = arith.constant 0 : i32
    %c0_i32_0 = arith.constant 0 : i32
    %c0_i32_1 = arith.constant 0 : i32
    return %c0_i32, %c0_i32_0 : i32, i32
  }
  func.func @transform_21(%arg0: i32) -> (i32, i32) {
    %c0_i32 = arith.constant 0 : i32
    %c0_i32_0 = arith.constant 0 : i32
    %c0_i32_1 = arith.constant 0 : i32
    return %c0_i32, %c0_i32_0 : i32, i32
  }
  func.func @transform_22(%arg0: i32) -> (i32, i32) {
    %c0_i32 = arith.constant 0 : i32
    %c0_i32_0 = arith.constant 0 : i32
    %c0_i32_1 = arith.constant 0 : i32
    return %c0_i32, %c0_i32_0 : i32, i32
  }
  func.func @transform_23(%arg0: i32) -> (i32, i32) {
    %c0_i32 = arith.constant 0 : i32
    %c0_i32_0 = arith.constant 0 : i32
    %c0_i32_1 = arith.constant 0 : i32
    return %c0_i32, %c0_i32_0 : i32, i32
  }
  func.func @transform_24(%arg0: i32) -> (i32, i32) {
    %c0_i32 = arith.constant 0 : i32
    %c0_i32_0 = arith.constant 0 : i32
    %c0_i32_1 = arith.constant 0 : i32
    return %c0_i32, %c0_i32_0 : i32, i32
  }
  func.func @transform_25(%arg0: i32) -> (i32, i32) {
    %c0_i32 = arith.constant 0 : i32
    %c0_i32_0 = arith.constant 0 : i32
    %c0_i32_1 = arith.constant 0 : i32
    return %c0_i32, %c0_i32_0 : i32, i32
  }
  func.func @transform_26(%arg0: i32) -> (i32, i32, i32) {
    %c0_i32 = arith.constant 0 : i32
    %c0_i32_0 = arith.constant 0 : i32
    %c0_i32_1 = arith.constant 0 : i32
    return %arg0, %c0_i32, %c0_i32_0 : i32, i32, i32
  }
}

</mosaic_0001>

<bundles_post_ra>
// kernel: act_decoder_forward.5
= control target key start
LH: loop header
LB: loop body
LE: loop exit
PB: predicated region body
PF: predicated region fallthrough
CT: control target
= control target key end

     0   :  { %s2012_s18 = smov 0   ;;  %s2220_s0 = inlined_call_operand.vmem [shape: f32[2,6,32], index: 0, kind: input, shape index: {}]   ;;  %s2221_s1 = inlined_call_operand.vmem [shape: f32[32,96], index: 1, kind: input, shape index: {}]   ;;  %s2222_s2 = inlined_call_operand.vmem [shape: f32[1,96], index: 2, kind: input, shape index: {}]   ;;  %s2223_s3 = inlined_call_operand.vmem [shape: f32[32,32], index: 3, kind: input, shape index: {}]   ;;  %s2224_s4 = inlined_call_operand.vmem [shape: f32[1,32], index: 4, kind: input, shape index: {}]   ;;  %s2225_s5 = inlined_call_operand.vmem [shape: f32[1,32], index: 5, kind: input, shape index: {}]   ;;  %s2226_s6 = inlined_call_operand.vmem [shape: f32[1,32], index: 6, kind: input, shape index: {}]   ;;  %s2227_s7 = inlined_call_operand.vmem [shape: f32[32,64], index: 7, kind: input, shape index: {}]   ;;  %s2228_s8 = inlined_call_operand.vmem [shape: f32[1,64], index: 8, kind: input, shape index: {}]   ;;  %s2229_s9 = inlined_call_operand.vmem [shape: f32[64,32], index: 9, kind: input, shape index: {}]   ;;  %s2230_s10 = inlined_call_operand.vmem [shape: f32[1,32], index: 10, kind: input, shape index: {}]   ;;  %s2231_s11 = inlined_call_operand.vmem [shape: f32[1,32], index: 11, kind: input, shape index: {}]   ;;  %s2232_s12 = inlined_call_operand.vmem [shape: f32[1,32], index: 12, kind: input, shape index: {}]   ;;  %s2233_s13 = inlined_call_operand.vmem [shape: f32[1,32], index: 13, kind: input, shape index: {}]   ;;  %s2234_s14 = inlined_call_operand.vmem [shape: f32[1,32], index: 14, kind: input, shape index: {}]   ;;  %s2235_s15 = inlined_call_operand.vmem [shape: f32[2,6,32], index: 15, kind: output, shape index: {}]  }
   0x1 LB: > { %s1671_s19 = sadd.s32 4294967295, %s1919_s18   ;;  %p1675_p0 = scmp.ge.s32.totalorder %s1919_s18, 1  ;;  %s1919_s18 = sphi %s2012_s18, %s25_s18  }
   0x2   : > { %p436_p1 = scmp.lt.s32.totalorder %s1919_s18, 3 }
   0x4   : > { %p437_p2 = pnand %p1675_p0, %p436_p1 }
   0x5   : > { %v491_v0 = vld [vmem:[%s2221_s1] sm:$0xff] (!%p437_p2)  ;;  %v492_v1 = vld [vmem:[%s2221_s1 + $0x8] sm:$0xff] (!%p437_p2)  ;;  %v493_v2 = vld [vmem:[%s2221_s1 + $0x10] sm:$0xff] (!%p437_p2)  ;;  %v1921_v3 = vmov (!%p437_p2), 0.0|0.0   ;;  %vm1922_vm0 = vmmov (!%p437_p2), 0   ;;  %v1923_v6 = vmov (!%p437_p2), 0.0  }
   0x6   : > { %440 = sbr.rel (%p437_p2) target bundleno = 2921 (0xb69), region = 80  ;;  %1842 = vmatprep.subr.bf16.mxu1 (!%p437_p2), %v1921_v3  ;;  %v1843_v4 = vpack.c.bf16 (!%p437_p2), %v492_v1, %v491_v0  ;;  %v494_v5 = vld [vmem:[%s2221_s1 + $0x18] sm:$0xff] (!%p437_p2)  ;;  %1758 = vmatprep.mubr.msk.f32.mxu1 (!%p437_p2), %vm1922_vm0, %v1923_v6  ;;  %p482_p3 = scmp.lt.s32.totalorder (!%p437_p2), %s1671_s19, 1  ;;  %vm525_vm1 = vcmask (!%p437_p2), 261120   ;;  %v1678_v9 = vld [vmem:[%s2222_s2] ss:$0 sm:$0xff] (!%p437_p2) }
   0x7   : > { %1771 = vmatprep.subr.mxu0 (!%p437_p2), %v1923_v6  ;;  %1773 = vmatprep.mubr.msk.f32.mxu0 (!%p437_p2), %vm1922_vm0, %v1923_v6  ;;  %v1846_v7 = vpack.c.bf16 (!%p437_p2), %v494_v5, %v493_v2  ;;  %s1924_s21 = smov (!%p437_p2), 104   ;;  %s1925_s22 = smov (!%p437_p2), 120   ;;  %vm608_vm2 = vcmask (!%p437_p2), 64512   ;;  %vm915_vm3 = vcmask (!%p437_p2), 46080   ;;  %vm966_vm4 = vcmask (!%p437_p2), 1045504  }
   0x8   : > { %1844 = vmatpush3.bf16.msra.mxu1 (!%p437_p2), %v1843_v4  ;;  %s1926_s23 = smov (!%p437_p2), 96   ;;  %s1927_s24 = smov (!%p437_p2), 112   ;;  %vm962_vm5 = vcmask (!%p437_p2), 48128   ;;  %vm1270_vm6 = vcmask (!%p437_p2), 62464   ;;  %vm1276_vm7 = vcmask (!%p437_p2), 128064   ;;  %vm1282_vm8 = vcmask (!%p437_p2), 193664  }
   0x9   : > { %1845 = vmatprep.subr.bf16.mxu1 (!%p437_p2), %v1921_v3  ;;  %s1928_s25 = smov (!%p437_p2), 64   ;;  %vm1288_vm9 = vcmask (!%p437_p2), 259264   ;;  %vm1371_vm10 = vcmask (!%p437_p2), 259072   ;;  %vm1486_vm11 = vcmask (!%p437_p2), 523264  }
   0xc   : > { %1847 = vmatpush3.bf16.msra.mxu1 (!%p437_p2), %v1846_v7 }
   0xd   : > { %s2237_s19 = smov (!%p482_p3, %s1671_s19), 1  ;;  %1761 = vmatprep.subr.mxu1 %v1923_v6 }
   0xe   : > { %s1676_s28 = sshll.u32 %s2237_s19, 3 }
   0xf   : > { %s485_s16 = scalar_lea.vmem %s2220_s0, %s1676_s28 }
  0x10   : > { %v2047_v8 = vld [vmem:[%s485_s16] sm:$0x3f] }
  0x11   : > { %1759 = vmatmul.mubr.msk.f32.vlgmr.msra.gmra.mrb[0].mxu1 %vm525_vm1, %v2047_v8 }
  0x12   : > { %1763 = vmatprep.mubr.msk.f32.mxu1 %vm1922_vm0, %v1923_v6 }
  0xe4   : > { %v595_v10 = vpop.f32.mrb[0].mxu1 }
  0xe5   : > { %v596_v11 = vadd.f32 %v1678_v9, %v595_v10  ;;  %v1760_v12 = vpop.f32.mrb[1].mxu1 }
  0xe7   : > { %604 = vrot.lane.b32.xlu1 %v596_v11, %s1924_s21  ;;  %600 = vrot.lane.b32.xlu0 %v596_v11, %s1925_s22  ;;  %s1929_s22 = smov 8   ;;  %s489_s21 = scalar_lea.vmem %s2235_s15, %s1676_s28 }
  0xeb   : > { %606 = vrot.lane.b32.xlu1 %v596_v11, %s1926_s23  ;;  %602 = vrot.lane.b32.xlu0 %v596_v11, %s1927_s24  ;;  %s1931_s24 = smov 16  }
 0x159   : > { %v2057_v13 = vpop.permute.xlu1 %604  ;;  %v601_v14 = vpop.permute.xlu0 %600 }
 0x15a   : > { %683 = vrot.lane.b32.xlu0 %v601_v14, %s1926_s23 }
 0x15d   : > { %v607_v15 = vpop.permute.xlu1 %606  ;;  %v2059_v16 = vpop.permute.xlu0 %602 }
 0x15e   : > { %1762 = vmatpush3.xpose.msk.msra.mxu1 %vm608_vm2, %v607_v15  ;;  %835 = vrot.lane.b32.xlu0 %v2057_v13, %s1926_s23 }
 0x15f   : > { %759 = vrot.lane.b32.xlu1 %v2059_v16, %s1926_s23  ;;  %1766 = vmatprep.subr.mxu1 %v1923_v6  ;;  %s1930_s23 = smov 24  }
 0x161   : > { %1764 = vmatmul.mubr.msk.f32.vlgmr.msra.gmra.mrb[2].mxu1 %vm608_vm2, %v596_v11 }
 0x162   : > { %1768 = vmatprep.mubr.msk.f32.mxu1 %vm1922_vm0, %v1923_v6 }
 0x1cc   : > { %v684_v17 = vpop.permute.xlu0 %683 }
 0x1cd   : > { %1767 = vmatpush3.xpose.msk.msra.mxu1 %vm608_vm2, %v684_v17  ;;  %v499_v17 = vld [vmem:[%s2223_s3 + $0x18] sm:$0xff] }
 0x1ce   : > { %1776 = vmatprep.subr.mxu1 %v1923_v6 }
 0x1d0   : > { %1769 = vmatmul.mubr.msk.f32.vlgmr.msra.gmra.mrb[4].mxu1 %vm608_vm2, %v601_v14  ;;  %v836_v18 = vpop.permute.xlu0 %835 }
 0x1d1   : > { %v760_v19 = vpop.permute.xlu1 %759  ;;  %1777 = vmatpush3.xpose.msk.msra.mxu1 %vm608_vm2, %v836_v18  ;;  %1778 = vmatprep.mubr.msk.f32.mxu1 %vm1922_vm0, %v1923_v6 }
 0x1d2   : > { %1772 = vmatpush3.xpose.msk.msra.mxu0 %vm608_vm2, %v760_v19  ;;  %1786 = vmatprep.subr.mxu1 %v1923_v6 }
 0x1d3   : > { %1781 = vmatprep.subr.mxu0 %v1923_v6 }
 0x1d4   : > { %1779 = vmatmul.mubr.msk.f32.vlgmr.msra.gmra.mrb[6].mxu1 %vm608_vm2, %v2057_v13 }
 0x1d5   : > { %1774 = vmatmul.mubr.msk.f32.vlgmr.msra.gmra.mrb[0].mxu0 %vm608_vm2, %v2059_v16  ;;  %1788 = vmatprep.mubr.msk.f32.mxu1 %vm1922_vm0, %v1923_v6 }
 0x1d6   : > { %1783 = vmatprep.mubr.msk.f32.mxu0 %vm1922_vm0, %v1923_v6 }
 0x234   : > { %v679_v20 = vpop.f32.mrb[2].mxu1 }
 0x235   : > { %v911_v21 = vmul.f32 0.35355338, %v679_v20  ;;  %v1765_v22 = vpop.f32.mrb[3].mxu1 }
 0x237   : > { %v916_v23 = vsel %vm915_vm3, %v911_v21, -inf }
 0x238   : > { %917 = vmax.xlane.f32.xlu1 %v916_v23 }
 0x2a3   : > { %v755_v24 = vpop.f32.mrb[4].mxu1 }
 0x2a4   : > { %v912_v25 = vmul.f32 0.35355338, %v755_v24  ;;  %v1770_v26 = vpop.f32.mrb[5].mxu1 }
 0x2a6   : > { %v919_v27 = vsel %vm915_vm3, %v912_v25, -inf }
 0x2a7   : > { %920 = vmax.xlane.f32.xlu0 %v919_v27  ;;  %v907_v28 = vpop.f32.mrb[6].mxu1 }
 0x2a8   : > { %v831_v29 = vpop.f32.mrb[0].mxu0  ;;  %v914_v30 = vmul.f32 0.35355338, %v907_v28  ;;  %v1780_v31 = vpop.f32.mrb[7].mxu1 }
 0x2a9   : > { %v913_v32 = vmul.f32 0.35355338, %v831_v29  ;;  %v1775_v33 = vpop.f32.mrb[1].mxu0  ;;  %v1696_v29 = vld [vmem:[%s2224_s4] ss:$0 sm:$0xff] }
 0x2aa   : > { %v925_v34 = vsel %vm915_vm3, %v914_v30, -inf }
 0x2ab   : > { %v922_v35 = vsel %vm915_vm3, %v913_v32, -inf  ;;  %926 = vmax.xlane.f32.xlu1 %v925_v34 }
 0x2ac   : > { %923 = vmax.xlane.f32.xlu0 %v922_v35 }
 0x2bc   : > { %1039 = vrot.lane.b32.xlu1 %v601_v14, %s1928_s25  ;;  %v497_v14 = vld [vmem:[%s2223_s3 + $0x8] sm:$0xff] }
 0x2c2   : > { %960 = vrot.lane.b32.xlu0 %v596_v11, %s1928_s25 }
 0x2c5   : > { %v918_v36 = vpop.xlane.xlu1 %917 }
 0x2c6   : > { %v928_v37 = vsub.f32 %v911_v21, %v918_v36 }
 0x2c8   : > { %v932_v38 = vmul.f32 1.442695, %v928_v37 }
 0x2ca   : > { %1891 = vpow2.f32 %v932_v38 }
 0x2d4   : > { %v1892_v39 = vpop.eup %1891 }
 0x2d5   : > { %v940_v40 = vsel %vm915_vm3, %v1892_v39, 0.0 }
 0x2e1   : > { %941 = vadd.xlane.f32.xlu0 %v940_v40  ;;  %v504_v40 = vld [vmem:[%s2227_s7 + $0x8] sm:$0xff] }
 0x334   : > { %v921_v41 = vpop.xlane.xlu0 %920 }
 0x335   : > { %v929_v42 = vsub.f32 %v912_v25, %v921_v41 }
 0x337   : > { %v934_v43 = vmul.f32 1.442695, %v929_v42  ;;  %v506_v42 = vld [vmem:[%s2227_s7 + $0x18] sm:$0xff] }
 0x338   : > { %v927_v44 = vpop.xlane.xlu1 %926 }
 0x339   : > { %1893 = vpow2.f32 %v934_v43  ;;  %v924_v45 = vpop.xlane.xlu0 %923  ;;  %v931_v46 = vsub.f32 %v914_v30, %v927_v44  ;;  %v508_v44 = vld [vmem:[%s2229_s9] sm:$0xff] }
 0x33a   : > { %v930_v47 = vsub.f32 %v913_v32, %v924_v45  ;;  %v509_v45 = vld [vmem:[%s2229_s9 + $0x8] sm:$0xff] }
 0x33b   : > { %v938_v48 = vmul.f32 1.442695, %v931_v46  ;;  %v510_v46 = vld [vmem:[%s2229_s9 + $0x10] sm:$0xff] }
 0x33c   : > { %v936_v49 = vmul.f32 1.442695, %v930_v47  ;;  %v1040_v50 = vpop.permute.xlu1 %1039  ;;  %v1861_v47 = vpack.c.bf16 %v509_v45, %v508_v44 }
 0x33d   : > { %1895 = vpow2.f32 %v938_v48  ;;  %v961_v51 = vpop.permute.xlu0 %960  ;;  %1787 = vmatpush3.msk.msra.mxu1 %vm966_vm4, %v1040_v50  ;;  %v511_v48 = vld [vmem:[%s2229_s9 + $0x18] sm:$0xff]  ;;  %v512_v50 = vld [vmem:[%s2229_s9 + $0x20] sm:$0xff] }
 0x33e   : > { %1897 = vpow2.f32 %v936_v49  ;;  %1782 = vmatpush3.msk.msra.mxu0 %vm966_vm4, %v961_v51  ;;  %1796 = vmatprep.subr.mxu1 %v1923_v6  ;;  %v1864_v49 = vpack.c.bf16 %v511_v48, %v510_v46  ;;  %v513_v51 = vld [vmem:[%s2229_s9 + $0x28] sm:$0xff] }
 0x33f   : > { %1791 = vmatprep.subr.mxu0 %v1923_v6 }
 0x343   : > { %v1894_v52 = vpop.eup %1893 }
 0x344   : > { %v943_v53 = vsel %vm915_vm3, %v1894_v52, 0.0 }
 0x345   : > { %944 = vadd.xlane.f32.xlu1 %v943_v53 }
 0x347   : > { %v1896_v54 = vpop.eup %1895 }
 0x348   : > { %v1898_v55 = vpop.eup %1897  ;;  %v949_v56 = vsel %vm915_vm3, %v1896_v54, 0.0 }
 0x349   : > { %v946_v57 = vsel %vm915_vm3, %v1898_v55, 0.0  ;;  %950 = vadd.xlane.f32.xlu1 %v949_v56 }
 0x34a   : > { %947 = vadd.xlane.f32.xlu0 %v946_v57  ;;  %v1698_v57 = vld [vmem:[%s2225_s5] ss:$0 sm:$0xff] }
 0x35a   : > { %1116 = vrot.lane.b32.xlu1 %v2059_v16, %s1928_s25  ;;  %v498_v16 = vld [vmem:[%s2223_s3 + $0x10] sm:$0xff] }
 0x35b   : > { %v1852_v18 = vpack.c.bf16 %v499_v17, %v498_v16 }
 0x360   : > { %1193 = vrot.lane.b32.xlu0 %v2057_v13, %s1928_s25  ;;  %v496_v13 = vld [vmem:[%s2223_s3] sm:$0xff] }
 0x361   : > { %v1849_v15 = vpack.c.bf16 %v497_v14, %v496_v13 }
 0x36e   : > { %v942_v58 = vpop.xlane.xlu0 %941 }
 0x36f   : > { %1899 = vrcp.f32 %v942_v58 }
 0x379   : > { %v1900_v59 = vpop.eup %1899 }
 0x37a   : > { %v953_v60 = vmul.f32 %v1900_v59, %v1892_v39  ;;  %v1699_v59 = vld [vmem:[%s2226_s6] ss:$0 sm:$0xff] }
 0x37c   : > { %1784 = vmatmul.mubr.msk.f32.vlgmr.msra.gmra.mrb[2].mxu0 %vm962_vm5, %v953_v60 }
 0x37d   : > { %1793 = vmatprep.mubr.msk.f32.mxu0 %vm1922_vm0, %v1923_v6 }
 0x3d2   : > { %v945_v61 = vpop.xlane.xlu1 %944 }
 0x3d3   : > { %1901 = vrcp.f32 %v945_v61 }
 0x3d6   : > { %v951_v62 = vpop.xlane.xlu1 %950 }
 0x3d7   : > { %v948_v63 = vpop.xlane.xlu0 %947  ;;  %1903 = vrcp.f32 %v951_v62  ;;  %v515_v62 = vld [vmem:[%s2229_s9 + $0x38] sm:$0xff] }
 0x3d8   : > { %1905 = vrcp.f32 %v948_v63 }
 0x3da   : > { %v1117_v0 = vpop.permute.xlu1 %1116 }
 0x3db   : > { %1792 = vmatpush3.msk.msra.mxu0 %vm966_vm4, %v1117_v0  ;;  %v1194_v4 = vpop.permute.xlu0 %1193  ;;  %v1700_v0 = vld [vmem:[%s2228_s8] ss:$0 sm:$0xff] }
 0x3dc   : > { %1848 = vmatprep.subr.bf16.mxu0 %v1921_v3 }
 0x3dd   : > { %v1902_v1 = vpop.eup %1901 }
 0x3de   : > { %v955_v2 = vmul.f32 %v1902_v1, %v1894_v52  ;;  %v1867_v52 = vpack.c.bf16 %v513_v51, %v512_v50 }
 0x3e0   : > { %1789 = vmatmul.mubr.msk.f32.vlgmr.msra.gmra.mrb[8].mxu1 %vm962_vm5, %v955_v2 }
 0x3e1   : > { %v1904_v5 = vpop.eup %1903  ;;  %1797 = vmatpush3.msk.msra.mxu1 %vm966_vm4, %v1194_v4  ;;  %1798 = vmatprep.mubr.msk.f32.mxu1 %vm1922_vm0, %v1923_v6 }
 0x3e2   : > { %v1906_v7 = vpop.eup %1905  ;;  %v959_v9 = vmul.f32 %v1904_v5, %v1896_v54  ;;  %1854 = vmatprep.subr.bf16.mxu1 %v1921_v3 }
 0x3e3   : > { %v957_v10 = vmul.f32 %v1906_v7, %v1898_v55  ;;  %v1702_v7 = vld [vmem:[%s2230_s10] ss:$0 sm:$0xff] }
 0x3e4   : > { %1799 = vmatmul.mubr.msk.f32.vlgmr.msra.gmra.mrb[10].mxu1 %vm962_vm5, %v959_v9 }
 0x3e5   : > { %1794 = vmatmul.mubr.msk.f32.vlgmr.msra.gmra.mrb[4].mxu0 %vm962_vm5, %v957_v10  ;;  %1820 = vmatprep.mubr.msk.f32.mxu1 %vm1922_vm0, %v1923_v6 }
 0x3e6   : > { %1809 = vmatprep.mubr.msk.f32.mxu0 %vm1922_vm0, %v1923_v6  ;;  %1850 = vmatpush3.bf16.msra.mxu0 %v1849_v15 }
 0x3e7   : > { %1851 = vmatprep.subr.bf16.mxu0 %v1921_v3 }
 0x3ea   : > { %1853 = vmatpush3.bf16.msra.mxu0 %v1852_v18 }
 0x3eb   : > { %1860 = vmatprep.subr.bf16.mxu0 %v1921_v3 }
 0x44f   : > { %v1035_v11 = vpop.f32.mrb[2].mxu0 }
 0x450   : > { %1271 = vst.msk [vmem:[#allocation2] sm:$0x3f] %vm1270_vm6, %v1035_v11  ;;  %v1785_v12 = vpop.f32.mrb[3].mxu0 }
 0x4b3   : > { %v1112_v19 = vpop.f32.mrb[8].mxu1 }
 0x4b4   : > { %1273 = vrot.lane.b32.xlu1 %v1112_v19, %s1929_s22  ;;  %v1790_v20 = vpop.f32.mrb[9].mxu1 }
 0x4b7   : > { %v1266_v21 = vpop.f32.mrb[10].mxu1 }
 0x4b8   : > { %v1189_v22 = vpop.f32.mrb[4].mxu0  ;;  %1285 = vrot.lane.b32.xlu1 %v1266_v21, %s1930_s23  ;;  %v1800_v23 = vpop.f32.mrb[11].mxu1 }
 0x4b9   : > { %1279 = vrot.lane.b32.xlu0 %v1189_v22, %s1931_s24  ;;  %v1795_v24 = vpop.f32.mrb[5].mxu0  ;;  %v1704_v23 = vld [vmem:[%s2231_s11] ss:$0 sm:$0xff] }
 0x526   : > { %v1274_v25 = vpop.permute.xlu1 %1273 }
 0x527   : > { %1277 = vst.msk [vmem:[#allocation2] sm:$0x3f] %vm1276_vm7, %v1274_v25  ;;  %v1705_v25 = vld [vmem:[%s2232_s12] ss:$0 sm:$0xff] }
 0x52a   : > { %v1286_v26 = vpop.permute.xlu1 %1285 }
 0x52b   : > { %v1280_v27 = vpop.permute.xlu0 %1279 }
 0x52c   : > { %1283 = vst.msk [vmem:[#allocation2] sm:$0x3f] %vm1282_vm8, %v1280_v27 }
 0x52d   : > { %1289 = vst.msk [vmem:[#allocation2] sm:$0x3f] %vm1288_vm9, %v1286_v26 }
 0x534   : > { %v1290_v28 = vld [vmem:[#allocation2] sm:$0x3f] }
 0x535   : > { %1810 = vmatmul.mubr.msk.f32.vlgmr.msra.gmra.mrb[6].mxu0 %vm525_vm1, %v1290_v28 }
 0x536   : > { %1839 = vmatprep.mubr.msk.f32.mxu0 %vm1922_vm0, %v1923_v6  ;;  %v503_v6 = vld [vmem:[%s2227_s7] sm:$0xff]  ;;  %1862 = vmatpush3.bf16.msra.mxu0 %v1861_v47 }
 0x537   : > { %v1855_v41 = vpack.c.bf16 %v504_v40, %v503_v6  ;;  %1863 = vmatprep.subr.bf16.mxu0 %v1921_v3  ;;  %v1707_v6 = vld [vmem:[%s2234_s14] ss:$0 sm:$0xff] }
 0x539   : > { %1856 = vmatpush3.bf16.msra.mxu1 %v1855_v41 }
 0x53a   : > { %1857 = vmatprep.subr.bf16.mxu1 %v1921_v3  ;;  %1865 = vmatpush3.bf16.msra.mxu0 %v1864_v49 }
 0x53b   : > { %1866 = vmatprep.subr.bf16.mxu0 %v1921_v3 }
 0x53e   : > { %1868 = vmatpush3.bf16.msra.mxu0 %v1867_v52 }
 0x53f   : > { %1869 = vmatprep.subr.bf16.mxu0 %v1921_v3  ;;  %v514_v3 = vld [vmem:[%s2229_s9 + $0x30] sm:$0xff] }
 0x540   : > { %v1870_v63 = vpack.c.bf16 %v515_v62, %v514_v3 }
 0x542   : > { %1871 = vmatpush3.bf16.msra.mxu0 %v1870_v63 }
 0x608   : > { %v1366_v30 = vpop.f32.mrb[6].mxu0 }
 0x609   : > { %v1367_v31 = vadd.f32 %v1696_v29, %v1366_v30  ;;  %v1811_v32 = vpop.f32.mrb[7].mxu0 }
 0x60b   : > { %v1370_v33 = vadd.f32 %v1367_v31, %v2047_v8  ;;  %v505_v8 = vld [vmem:[%s2227_s7 + $0x10] sm:$0xff] }
 0x60c   : > { %v1858_v43 = vpack.c.bf16 %v506_v42, %v505_v8 }
 0x60d   : > { %v1372_v34 = vsel %vm1371_vm10, %v1370_v33, 0.0 }
 0x60e   : > { %1373 = vadd.xlane.f32.xlu0 %v1372_v34  ;;  %1859 = vmatpush3.bf16.msra.mxu1 %v1858_v43 }
 0x69b   : > { %v1374_v35 = vpop.xlane.xlu0 %1373 }
 0x69c   : > { %v1376_v36 = vmul.f32 0.03125, %v1374_v35 }
 0x69e   : > { %v1377_v37 = vsub.f32 %v1370_v33, %v1376_v36 }
 0x6a0   : > { %v1378_v38 = vmul.f32 %v1377_v37, %v1377_v37 }
 0x6a2   : > { %v1379_v39 = vsel %vm1371_vm10, %v1378_v38, 0.0  ;;  %v1706_v38 = vld [vmem:[%s2233_s13] ss:$0 sm:$0xff] }
 0x6a3   : > { %1380 = vadd.xlane.f32.xlu1 %v1379_v39 }
 0x730   : > { %v1381_v53 = vpop.xlane.xlu1 %1380 }
 0x731   : > { %v1382_v54 = vmul.f32 0.03125, %v1381_v53 }
 0x733   : > { %v1383_v55 = vadd.f32 1e-05, %v1382_v54 }
 0x735   : > { %1907 = vrsqrt.f32 %v1383_v55 }
 0x73f   : > { %v1908_v56 = vpop.eup %1907 }
 0x740   : > { %v1385_v58 = vmul.f32 %v1908_v56, %v1377_v37 }
 0x742   : > { %v1392_v60 = vmul.f32 %v1698_v57, %v1385_v58 }
 0x744   : > { %v1399_v61 = vadd.f32 %v1699_v59, %v1392_v60 }
 0x746   : > { %1821 = vmatmul.mubr.msk.f32.vlgmr.msra.gmra.mrb[12].mxu1 %vm525_vm1, %v1399_v61 }
 0x819   : > { %v1475_v1 = vpop.f32.mrb[12].mxu1 }
 0x81a   : > { %v1476_v2 = vadd.f32 %v1700_v0, %v1475_v1  ;;  %v1822_v4 = vpop.f32.mrb[13].mxu1 }
 0x81c   : > { %v1479_v5 = vmax.f32 %v1476_v2, 0.0 }
 0x81e   : > { %1840 = vmatmul.mubr.msk.f32.vlgmr.msra.gmra.mrb[8].mxu0 %vm1486_vm11, %v1479_v5 }
 0x8f1   : > { %v1556_v9 = vpop.f32.mrb[8].mxu0 }
 0x8f2   : > { %v1557_v10 = vadd.f32 %v1702_v7, %v1556_v9  ;;  %v1841_v11 = vpop.f32.mrb[9].mxu0 }
 0x8f4   : > { %v1560_v12 = vadd.f32 %v1557_v10, %v1399_v61 }
 0x8f6   : > { %v1561_v13 = vsel %vm1371_vm10, %v1560_v12, 0.0 }
 0x8f7   : > { %1562 = vadd.xlane.f32.xlu0 %v1561_v13 }
 0x984   : > { %v1563_v14 = vpop.xlane.xlu0 %1562 }
 0x985   : > { %v1564_v15 = vmul.f32 0.03125, %v1563_v14 }
 0x987   : > { %v1565_v16 = vsub.f32 %v1560_v12, %v1564_v15 }
 0x989   : > { %v1566_v17 = vmul.f32 %v1565_v16, %v1565_v16 }
 0x98b   : > { %v1567_v18 = vsel %vm1371_vm10, %v1566_v17, 0.0 }
 0x98c   : > { %1568 = vadd.xlane.f32.xlu0 %v1567_v18 }
 0xa19   : > { %v1569_v19 = vpop.xlane.xlu0 %1568 }
 0xa1a   : > { %v1570_v20 = vmul.f32 0.03125, %v1569_v19 }
 0xa1c   : > { %v1571_v21 = vadd.f32 1e-05, %v1570_v20 }
 0xa1e   : > { %1909 = vrsqrt.f32 %v1571_v21 }
 0xa28   : > { %v1910_v22 = vpop.eup %1909 }
 0xa29   : > { %v1573_v24 = vmul.f32 %v1910_v22, %v1565_v16 }
 0xa2b   : > { %v1580_v26 = vmul.f32 %v1704_v23, %v1573_v24 }
 0xa2d   : > { %v1587_v27 = vadd.f32 %v1705_v25, %v1580_v26 }
 0xa2f   : > { %v1590_v28 = vsel %vm1371_vm10, %v1587_v27, 0.0 }
 0xa30   : > { %1591 = vadd.xlane.f32.xlu1 %v1590_v28 }
 0xabd   : > { %v1592_v29 = vpop.xlane.xlu1 %1591 }
 0xabe   : > { %v1593_v30 = vmul.f32 0.03125, %v1592_v29 }
 0xac0   : > { %v1594_v31 = vsub.f32 %v1587_v27, %v1593_v30 }
 0xac2   : > { %v1595_v32 = vmul.f32 %v1594_v31, %v1594_v31 }
 0xac4   : > { %v1596_v33 = vsel %vm1371_vm10, %v1595_v32, 0.0 }
 0xac5   : > { %1597 = vadd.xlane.f32.xlu0 %v1596_v33 }
 0xb52   : > { %v1598_v34 = vpop.xlane.xlu0 %1597 }
 0xb53   : > { %v1599_v35 = vmul.f32 0.03125, %v1598_v34 }
 0xb55   : > { %v1600_v36 = vadd.f32 1e-05, %v1599_v35 }
 0xb57   : > { %1911 = vrsqrt.f32 %v1600_v36 }
 0xb61   : > { %v1912_v37 = vpop.eup %1911 }
 0xb62   : > { %v1602_v39 = vmul.f32 %v1912_v37, %v1594_v31 }
 0xb64   : > { %v1609_v40 = vmul.f32 %v1706_v38, %v1602_v39 }
 0xb66   : > { %v1616_v41 = vadd.f32 %v1707_v6, %v1609_v40 }
 0xb68   : > { %1617 = vst.msk [vmem:[%s489_s21] sm:$0x3f] %vm1371_vm10, %v1616_v41 }
 0xb69 PF: > { %s25_s18 = sadd.s32 1, %s1919_s18  }
 0xb6a   : > { %p22_p4 = scmp.ge.s32.totalorder %s25_s18, 4  }
 0xb6c   :  { %24 = sbr.rel (!%p22_p4) target bundleno = 1 (0x1), region = 110 }

// kernel: act_decoder_forward.4
= control target key start
LH: loop header
LB: loop body
LE: loop exit
PB: predicated region body
PF: predicated region fallthrough
CT: control target
= control target key end

     0   :  { %s2681_s0 = inlined_call_operand.vmem [shape: f32[2,1,32], index: 0, kind: input, shape index: {}]   ;;  %s2682_s1 = inlined_call_operand.vmem [shape: f32[2,1,8], index: 1, kind: input, shape index: {}]   ;;  %s2683_s2 = inlined_call_operand.vmem [shape: f32[2,4,32], index: 2, kind: input, shape index: {}]   ;;  %s2684_s3 = inlined_call_operand.vmem [shape: f32[6,32], index: 3, kind: input, shape index: {}]   ;;  %s2685_s4 = inlined_call_operand.vmem [shape: f32[32,32], index: 4, kind: input, shape index: {}]   ;;  %s2686_s5 = inlined_call_operand.vmem [shape: f32[1,32], index: 5, kind: input, shape index: {}]   ;;  %s2687_s6 = inlined_call_operand.vmem [shape: f32[8,32], index: 6, kind: input, shape index: {}]   ;;  %s2688_s7 = inlined_call_operand.vmem [shape: f32[1,32], index: 7, kind: input, shape index: {}]   ;;  %s2689_s8 = inlined_call_operand.vmem [shape: f32[32,96], index: 8, kind: input, shape index: {}]   ;;  %s2690_s9 = inlined_call_operand.vmem [shape: f32[1,96], index: 9, kind: input, shape index: {}]   ;;  %s2691_s10 = inlined_call_operand.vmem [shape: f32[32,32], index: 10, kind: input, shape index: {}]   ;;  %s2692_s11 = inlined_call_operand.vmem [shape: f32[1,32], index: 11, kind: input, shape index: {}]   ;;  %s2693_s12 = inlined_call_operand.vmem [shape: f32[1,32], index: 12, kind: input, shape index: {}]   ;;  %s2694_s13 = inlined_call_operand.vmem [shape: f32[1,32], index: 13, kind: input, shape index: {}]   ;;  %s2695_s14 = inlined_call_operand.vmem [shape: f32[32,64], index: 14, kind: input, shape index: {}]   ;;  %s2696_s15 = inlined_call_operand.vmem [shape: f32[1,64], index: 15, kind: input, shape index: {}]   ;;  %s2697_s16 = inlined_call_operand.vmem [shape: f32[64,32], index: 16, kind: input, shape index: {}]   ;;  %s2698_s17 = inlined_call_operand.vmem [shape: f32[1,32], index: 17, kind: input, shape index: {}]   ;;  %s2699_s18 = inlined_call_operand.vmem [shape: f32[1,32], index: 18, kind: input, shape index: {}]   ;;  %s2700_s19 = inlined_call_operand.vmem [shape: f32[1,32], index: 19, kind: input, shape index: {}]   ;;  %s2701_s20 = inlined_call_operand.vmem [shape: f32[1,32], index: 20, kind: input, shape index: {}]   ;;  %s2702_s21 = inlined_call_operand.vmem [shape: f32[1,32], index: 21, kind: input, shape index: {}]   ;;  %s2703_s22 = inlined_call_operand.vmem [shape: f32[2,6,32], index: 22, kind: output, shape index: {}]  }
   0x1   :  { %2705 = sst [smem:[#allocation4_spill]] %s2681_s0 }
   0x2   :  { %2706 = sst [smem:[#allocation5_spill]] %s2682_s1 }
   0x3   :  { %2707 = sst [smem:[#allocation6_spill]] %s2683_s2 }
   0x4   :  { %2708 = sst [smem:[#allocation7_spill]] %s2684_s3  ;;  %s2443_s3 = smov 0  }
   0x5   :  { %2709 = sst [smem:[#allocation8_spill]] %s2685_s4 }
   0x6   :  { %2710 = sst [smem:[#allocation9_spill]] %s2686_s5 }
   0x7   :  { %2711 = sst [smem:[#allocation10_spill]] %s2687_s6 }
   0x8 LB: > { %s2040_s28 = sadd.s32 4294967295, %s2315_s3   ;;  %p2044_p0 = scmp.ge.s32.totalorder %s2315_s3, 1  ;;  %s2315_s3 = sphi %s2443_s3, %s32_s3  }
   0x9   : > { %p627_p1 = scmp.lt.s32.totalorder %s2315_s3, 3 }
   0xb   : > { %p628_p2 = pnand %p2044_p0, %p627_p1 }
   0xc   : > { %s2712_s29 = sld [smem:[#allocation8_spill]] (!%p628_p2)  ;;  %v2317_v3 = vmov (!%p628_p2), 0.0|0.0   ;;  %v2318_v6 = vmov (!%p628_p2), 0.0   ;;  %s2713_s25 = sld [smem:[#allocation10_spill]] (!%p628_p2)  ;;  %vm2319_vm0 = vmmov (!%p628_p2), 0   ;;  %vm790_vm1 = vcmask (!%p628_p2), 64512  }
   0xd   : > { %631 = sbr.rel (%p628_p2) target bundleno = 2843 (0xb1b), region = 108  ;;  %2234 = vmatprep.subr.bf16.mxu0 (!%p628_p2), %v2317_v3  ;;  %2137 = vmatprep.subr.mxu1 (!%p628_p2), %v2318_v6  ;;  %p693_p3 = scmp.lt.s32.totalorder (!%p628_p2), %s2040_s28, 1  ;;  %vm868_vm2 = vcmask (!%p628_p2), 257024   ;;  %vm713_vm3 = vcmask (!%p628_p2), 261120   ;;  %v873_v12 = vld [vmem:[%s2689_s8] sm:$0xff] (!%p628_p2)  ;;  %v874_v13 = vld [vmem:[%s2689_s8 + $0x8] sm:$0xff] (!%p628_p2) }
   0xe   : > { %2139 = vmatprep.mubr.msk.f32.mxu1 (!%p628_p2), %vm2319_vm0, %v2318_v6  ;;  %2134 = vmatprep.mubr.msk.f32.mxu0 (!%p628_p2), %vm2319_vm0, %v2318_v6  ;;  %s2714_s27 = sld [smem:[#allocation5_spill]] (!%p628_p2)  ;;  %s2715_s0 = sld [smem:[#allocation6_spill]] (!%p628_p2)  ;;  %v875_v14 = vld [vmem:[%s2689_s8 + $0x10] sm:$0xff] (!%p628_p2)  ;;  %v2241_v15 = vpack.c.bf16 (!%p628_p2), %v874_v13, %v873_v12  ;;  %v876_v16 = vld [vmem:[%s2689_s8 + $0x18] sm:$0xff] (!%p628_p2)  ;;  %v789_v18 = vld [vmem:[%s2688_s7] sm:$0x1] (!%p628_p2) }
   0xf   : > { %s2716_s24 = sld [smem:[#allocation4_spill]] (!%p628_p2)  ;;  %v2244_v17 = vpack.c.bf16 (!%p628_p2), %v876_v16, %v875_v14  ;;  %vm864_vm4 = vcmask (!%p628_p2), 253952   ;;  %s2718_s26 = sld [smem:[#allocation7_spill]] (!%p628_p2)  ;;  %v2049_v29 = vld [vmem:[%s2690_s9] ss:$0 sm:$0xff] (!%p628_p2)  ;;  %vm1295_vm5 = vcmask (!%p628_p2), 46080  }
  0x10   : > { %s2322_s30 = smov (!%p628_p2), 96   ;;  %s2323_s4 = smov (!%p628_p2), 112   ;;  %vm1346_vm6 = vcmask (!%p628_p2), 1045504   ;;  %vm1342_vm7 = vcmask (!%p628_p2), 48128   ;;  %vm1650_vm8 = vcmask (!%p628_p2), 62464   ;;  %vm1656_vm9 = vcmask (!%p628_p2), 128064  }
  0x11   : > { %vm1662_vm10 = vcmask (!%p628_p2), 193664   ;;  %vm1668_vm11 = vcmask (!%p628_p2), 259264   ;;  %vm1751_vm12 = vcmask (!%p628_p2), 259072   ;;  %vm1866_vm13 = vcmask (!%p628_p2), 523264  }
  0x12   : > { %v708_v0 = vld [vmem:[%s2712_s29] sm:$0xff] (!%p628_p2)  ;;  %v709_v1 = vld [vmem:[%s2712_s29 + $0x8] sm:$0xff] (!%p628_p2)  ;;  %v710_v2 = vld [vmem:[%s2712_s29 + $0x10] sm:$0xff] (!%p628_p2) }
  0x13   : > { %v2235_v4 = vpack.c.bf16 (!%p628_p2), %v709_v1, %v708_v0  ;;  %v711_v5 = vld [vmem:[%s2712_s29 + $0x18] sm:$0xff] (!%p628_p2)  ;;  %v788_v7 = vld [vmem:[%s2713_s25] sm:$0xff] (!%p628_p2) }
  0x14   : > { %2138 = vmatpush3.msra.mxu1 %v788_v7  ;;  %v2238_v8 = vpack.c.bf16 %v711_v5, %v710_v2  ;;  %s2720_s28 = smov (!%p693_p3, %s2040_s28), 1 }
  0x15   : > { %2236 = vmatpush3.bf16.msra.mxu0 %v2235_v4  ;;  %2240 = vmatprep.subr.bf16.mxu1 %v2317_v3  ;;  %s698_s20 = scalar_lea.vmem %s2714_s27, %s2720_s28  ;;  %s2045_s21 = sshll.u32 %s2720_s28, 2  ;;  %v871_v26 = vld [vmem:[%s2718_s26] sm:$0x3f] }
  0x16   : > { %2237 = vmatprep.subr.bf16.mxu0 %v2317_v3  ;;  %s702_s23 = scalar_lea.vmem %s2715_s0, %s2045_s21  ;;  %v787_v9 = vld [vmem:[%s698_s20] sm:$0x1]  ;;  %s695_s6 = scalar_lea.vmem %s2716_s24, %s2720_s28 }
  0x17   : > { %2140 = vmatmul.mubr.msk.f32.vlgmr.msra.gmra.mrb[0].mxu1 %vm790_vm1, %v787_v9  ;;  %v867_v10 = vld [vmem:[%s702_s23] sm:$0xf]  ;;  %s2717_s24 = sld [smem:[#allocation9_spill]]  ;;  %s2320_s20 = smov 104  }
  0x18   : > { %869 = vst.msk [vmem:[#allocation2 + $0x2] sm:$0xf] %vm868_vm2, %v867_v10  ;;  %v707_v11 = vld [vmem:[%s695_s6] sm:$0x1]  ;;  %2150 = vmatprep.mubr.msk.f32.mxu1 %vm2319_vm0, %v2318_v6  ;;  %2242 = vmatpush3.bf16.msra.mxu1 %v2241_v15  ;;  %s2321_s21 = smov 120   ;;  %s2324_s0 = smov 64  }
  0x19   : > { %2239 = vmatpush3.bf16.msra.mxu0 %v2238_v8  ;;  %2243 = vmatprep.subr.bf16.mxu1 %v2317_v3  ;;  %s2325_s27 = smov 8   ;;  %s2046_s25 = sshll.u32 %s2720_s28, 3 }
  0x1a   : > { %2153 = vmatprep.subr.mxu0 %v2318_v6 }
  0x1c   : > { %2135 = vmatmul.mubr.msk.f32.vlgmr.msra.gmra.mrb[0].mxu0 %vm713_vm3, %v707_v11  ;;  %2245 = vmatpush3.bf16.msra.mxu1 %v2244_v17 }
  0x1d   : > { %2155 = vmatprep.mubr.msk.f32.mxu0 %vm2319_vm0, %v2318_v6  ;;  %2158 = vmatprep.subr.mxu1 %v2318_v6  ;;  %v712_v21 = vld [vmem:[%s2717_s24] sm:$0x1] }
  0xea   : > { %v860_v19 = vpop.f32.mrb[0].mxu1 }
  0xeb   : > { %v861_v20 = vadd.f32 %v860_v19, %v789_v18  ;;  %v2141_v22 = vpop.f32.mrb[1].mxu1 }
  0xed   : > { %866 = vst.msk [vmem:[#allocation2 + $0x1] sm:$0x1] %vm864_vm4, %v861_v20 }
  0xef   : > { %v783_v23 = vpop.f32.mrb[0].mxu0 }
  0xf0   : > { %v784_v24 = vadd.f32 %v783_v23, %v712_v21  ;;  %v2136_v25 = vpop.f32.mrb[1].mxu0 }
  0xf2   : > { %865 = vst.msk [vmem:[#allocation2] sm:$0x1] %vm864_vm4, %v784_v24 }
  0xf9   : > { %v870_v27 = vld [vmem:[#allocation2] sm:$0x3f] }
  0xfa   : > { %v2518_v28 = vadd.f32 %v871_v26, %v870_v27 }
  0xfc   : > { %2151 = vmatmul.mubr.msk.f32.vlgmr.msra.gmra.mrb[2].mxu1 %vm713_vm3, %v2518_v28 }
  0xfd   : > { %2160 = vmatprep.mubr.msk.f32.mxu1 %vm2319_vm0, %v2318_v6 }
 0x1cf   : > { %v976_v30 = vpop.f32.mrb[2].mxu1 }
 0x1d0   : > { %v977_v31 = vadd.f32 %v2049_v29, %v976_v30  ;;  %v2152_v32 = vpop.f32.mrb[3].mxu1 }
 0x1d2   : > { %985 = vrot.lane.b32.xlu1 %v977_v31, %s2320_s20  ;;  %981 = vrot.lane.b32.xlu0 %v977_v31, %s2321_s21  ;;  %s2326_s20 = smov 24   ;;  %s2327_s21 = smov 16  }
 0x1d6   : > { %987 = vrot.lane.b32.xlu1 %v977_v31, %s2322_s30  ;;  %983 = vrot.lane.b32.xlu0 %v977_v31, %s2323_s4 }
 0x244   : > { %v2527_v33 = vpop.permute.xlu1 %985  ;;  %v982_v34 = vpop.permute.xlu0 %981 }
 0x245   : > { %1063 = vrot.lane.b32.xlu0 %v982_v34, %s2322_s30 }
 0x248   : > { %v988_v35 = vpop.permute.xlu1 %987  ;;  %v2529_v36 = vpop.permute.xlu0 %983 }
 0x249   : > { %2154 = vmatpush3.xpose.msk.msra.mxu0 %vm790_vm1, %v988_v35  ;;  %1215 = vrot.lane.b32.xlu0 %v2527_v33, %s2322_s30 }
 0x24a   : > { %1139 = vrot.lane.b32.xlu1 %v2529_v36, %s2322_s30  ;;  %2163 = vmatprep.subr.mxu0 %v2318_v6 }
 0x24c   : > { %2156 = vmatmul.mubr.msk.f32.vlgmr.msra.gmra.mrb[2].mxu0 %vm790_vm1, %v977_v31 }
 0x24d   : > { %2165 = vmatprep.mubr.msk.f32.mxu0 %vm2319_vm0, %v2318_v6 }
 0x2b7   : > { %v1064_v37 = vpop.permute.xlu0 %1063 }
 0x2b8   : > { %2159 = vmatpush3.xpose.msk.msra.mxu1 %vm790_vm1, %v1064_v37  ;;  %v881_v37 = vld [vmem:[%s2691_s10 + $0x18] sm:$0xff] }
 0x2b9   : > { %2168 = vmatprep.subr.mxu1 %v2318_v6 }
 0x2bb   : > { %2161 = vmatmul.mubr.msk.f32.vlgmr.msra.gmra.mrb[4].mxu1 %vm790_vm1, %v982_v34  ;;  %v1216_v38 = vpop.permute.xlu0 %1215 }
 0x2bc   : > { %v1140_v39 = vpop.permute.xlu1 %1139  ;;  %2169 = vmatpush3.xpose.msk.msra.mxu1 %vm790_vm1, %v1216_v38  ;;  %2170 = vmatprep.mubr.msk.f32.mxu1 %vm2319_vm0, %v2318_v6 }
 0x2bd   : > { %2164 = vmatpush3.xpose.msk.msra.mxu0 %vm790_vm1, %v1140_v39  ;;  %2178 = vmatprep.subr.mxu1 %v2318_v6 }
 0x2be   : > { %2173 = vmatprep.subr.mxu0 %v2318_v6 }
 0x2bf   : > { %2171 = vmatmul.mubr.msk.f32.vlgmr.msra.gmra.mrb[6].mxu1 %vm790_vm1, %v2527_v33 }
 0x2c0   : > { %2166 = vmatmul.mubr.msk.f32.vlgmr.msra.gmra.mrb[4].mxu0 %vm790_vm1, %v2529_v36  ;;  %2180 = vmatprep.mubr.msk.f32.mxu1 %vm2319_vm0, %v2318_v6 }
 0x2c1   : > { %2175 = vmatprep.mubr.msk.f32.mxu0 %vm2319_vm0, %v2318_v6 }
 0x31f   : > { %v1059_v40 = vpop.f32.mrb[2].mxu0 }
 0x320   : > { %v1291_v41 = vmul.f32 0.35355338, %v1059_v40  ;;  %v2157_v42 = vpop.f32.mrb[3].mxu0 }
 0x322   : > { %v1296_v43 = vsel %vm1295_vm5, %v1291_v41, -inf }
 0x323   : > { %1297 = vmax.xlane.f32.xlu1 %v1296_v43 }
 0x38e   : > { %v1135_v44 = vpop.f32.mrb[4].mxu1 }
 0x38f   : > { %v1292_v45 = vmul.f32 0.35355338, %v1135_v44  ;;  %v2162_v46 = vpop.f32.mrb[5].mxu1 }
 0x391   : > { %v1299_v47 = vsel %vm1295_vm5, %v1292_v45, -inf }
 0x392   : > { %1300 = vmax.xlane.f32.xlu0 %v1299_v47  ;;  %v1287_v48 = vpop.f32.mrb[6].mxu1 }
 0x393   : > { %v1211_v49 = vpop.f32.mrb[4].mxu0  ;;  %v1294_v50 = vmul.f32 0.35355338, %v1287_v48  ;;  %v2172_v51 = vpop.f32.mrb[7].mxu1 }
 0x394   : > { %v1293_v52 = vmul.f32 0.35355338, %v1211_v49  ;;  %v2167_v53 = vpop.f32.mrb[5].mxu0  ;;  %v2067_v49 = vld [vmem:[%s2692_s11] ss:$0 sm:$0xff] }
 0x395   : > { %v1305_v54 = vsel %vm1295_vm5, %v1294_v50, -inf }
 0x396   : > { %1306 = vmax.xlane.f32.xlu1 %v1305_v54  ;;  %v1302_v55 = vsel %vm1295_vm5, %v1293_v52, -inf }
 0x397   : > { %1303 = vmax.xlane.f32.xlu0 %v1302_v55 }
 0x3a7   : > { %1419 = vrot.lane.b32.xlu1 %v982_v34, %s2324_s0  ;;  %v879_v34 = vld [vmem:[%s2691_s10 + $0x8] sm:$0xff] }
 0x3ad   : > { %1340 = vrot.lane.b32.xlu0 %v977_v31, %s2324_s0 }
 0x3b0   : > { %v1298_v56 = vpop.xlane.xlu1 %1297 }
 0x3b1   : > { %v1308_v57 = vsub.f32 %v1291_v41, %v1298_v56 }
 0x3b3   : > { %v1312_v58 = vmul.f32 1.442695, %v1308_v57 }
 0x3b5   : > { %2289 = vpow2.f32 %v1312_v58 }
 0x3bf   : > { %v2290_v59 = vpop.eup %2289 }
 0x3c0   : > { %v1320_v60 = vsel %vm1295_vm5, %v2290_v59, 0.0 }
 0x3cc   : > { %1321 = vadd.xlane.f32.xlu0 %v1320_v60  ;;  %v886_v60 = vld [vmem:[%s2695_s14 + $0x8] sm:$0xff] }
 0x41f   : > { %v1301_v61 = vpop.xlane.xlu0 %1300 }
 0x420   : > { %v1309_v62 = vsub.f32 %v1292_v45, %v1301_v61 }
 0x422   : > { %v1314_v63 = vmul.f32 1.442695, %v1309_v62  ;;  %v888_v62 = vld [vmem:[%s2695_s14 + $0x18] sm:$0xff] }
 0x423   : > { %v1307_v0 = vpop.xlane.xlu1 %1306 }
 0x424   : > { %2291 = vpow2.f32 %v1314_v63  ;;  %v1311_v1 = vsub.f32 %v1294_v50, %v1307_v0  ;;  %v1304_v2 = vpop.xlane.xlu0 %1303  ;;  %v890_v0 = vld [vmem:[%s2697_s16] sm:$0xff] }
 0x425   : > { %v1310_v4 = vsub.f32 %v1293_v52, %v1304_v2  ;;  %v892_v2 = vld [vmem:[%s2697_s16 + $0x10] sm:$0xff] }
 0x426   : > { %v1318_v5 = vmul.f32 1.442695, %v1311_v1  ;;  %v891_v1 = vld [vmem:[%s2697_s16 + $0x8] sm:$0xff] }
 0x427   : > { %v1316_v7 = vmul.f32 1.442695, %v1310_v4  ;;  %v1420_v8 = vpop.permute.xlu1 %1419  ;;  %v2259_v4 = vpack.c.bf16 %v891_v1, %v890_v0 }
 0x428   : > { %2293 = vpow2.f32 %v1318_v5  ;;  %v1341_v9 = vpop.permute.xlu0 %1340  ;;  %2179 = vmatpush3.msk.msra.mxu1 %vm1346_vm6, %v1420_v8  ;;  %v893_v5 = vld [vmem:[%s2697_s16 + $0x18] sm:$0xff]  ;;  %v894_v8 = vld [vmem:[%s2697_s16 + $0x20] sm:$0xff] }
 0x429   : > { %2295 = vpow2.f32 %v1316_v7  ;;  %2174 = vmatpush3.msk.msra.mxu0 %vm1346_vm6, %v1341_v9  ;;  %2188 = vmatprep.subr.mxu1 %v2318_v6  ;;  %v2262_v7 = vpack.c.bf16 %v893_v5, %v892_v2  ;;  %v895_v9 = vld [vmem:[%s2697_s16 + $0x28] sm:$0xff] }
 0x42a   : > { %2183 = vmatprep.subr.mxu0 %v2318_v6 }
 0x42e   : > { %v2292_v10 = vpop.eup %2291 }
 0x42f   : > { %v1323_v11 = vsel %vm1295_vm5, %v2292_v10, 0.0 }
 0x430   : > { %1324 = vadd.xlane.f32.xlu1 %v1323_v11 }
 0x432   : > { %v2294_v12 = vpop.eup %2293 }
 0x433   : > { %v2296_v13 = vpop.eup %2295  ;;  %v1329_v14 = vsel %vm1295_vm5, %v2294_v12, 0.0 }
 0x434   : > { %1330 = vadd.xlane.f32.xlu1 %v1329_v14  ;;  %v1326_v15 = vsel %vm1295_vm5, %v2296_v13, 0.0 }
 0x435   : > { %1327 = vadd.xlane.f32.xlu0 %v1326_v15  ;;  %v2069_v15 = vld [vmem:[%s2693_s12] ss:$0 sm:$0xff] }
 0x445   : > { %1496 = vrot.lane.b32.xlu1 %v2529_v36, %s2324_s0  ;;  %v880_v36 = vld [vmem:[%s2691_s10 + $0x10] sm:$0xff] }
 0x446   : > { %v2250_v38 = vpack.c.bf16 %v881_v37, %v880_v36 }
 0x44b   : > { %1573 = vrot.lane.b32.xlu0 %v2527_v33, %s2324_s0  ;;  %v878_v33 = vld [vmem:[%s2691_s10] sm:$0xff] }
 0x44c   : > { %v2247_v35 = vpack.c.bf16 %v879_v34, %v878_v33 }
 0x459   : > { %v1322_v16 = vpop.xlane.xlu0 %1321 }
 0x45a   : > { %2297 = vrcp.f32 %v1322_v16 }
 0x464   : > { %v2298_v17 = vpop.eup %2297 }
 0x465   : > { %v1333_v18 = vmul.f32 %v2298_v17, %v2290_v59  ;;  %v2070_v17 = vld [vmem:[%s2694_s13] ss:$0 sm:$0xff] }
 0x467   : > { %2176 = vmatmul.mubr.msk.f32.vlgmr.msra.gmra.mrb[6].mxu0 %vm1342_vm7, %v1333_v18 }
 0x468   : > { %2185 = vmatprep.mubr.msk.f32.mxu0 %vm2319_vm0, %v2318_v6 }
 0x4bd   : > { %v1325_v19 = vpop.xlane.xlu1 %1324 }
 0x4be   : > { %2299 = vrcp.f32 %v1325_v19 }
 0x4c1   : > { %v1331_v20 = vpop.xlane.xlu1 %1330 }
 0x4c2   : > { %2301 = vrcp.f32 %v1331_v20  ;;  %v1328_v21 = vpop.xlane.xlu0 %1327  ;;  %v897_v20 = vld [vmem:[%s2697_s16 + $0x38] sm:$0xff] }
 0x4c3   : > { %2303 = vrcp.f32 %v1328_v21 }
 0x4c5   : > { %v1497_v22 = vpop.permute.xlu1 %1496 }
 0x4c6   : > { %2184 = vmatpush3.msk.msra.mxu0 %vm1346_vm6, %v1497_v22  ;;  %v1574_v25 = vpop.permute.xlu0 %1573  ;;  %v2071_v22 = vld [vmem:[%s2696_s15] ss:$0 sm:$0xff] }
 0x4c7   : > { %2258 = vmatprep.subr.bf16.mxu0 %v2317_v3 }
 0x4c8   : > { %v2300_v23 = vpop.eup %2299 }
 0x4c9   : > { %v1335_v24 = vmul.f32 %v2300_v23, %v2292_v10  ;;  %v2265_v10 = vpack.c.bf16 %v895_v9, %v894_v8 }
 0x4cb   : > { %2181 = vmatmul.mubr.msk.f32.vlgmr.msra.gmra.mrb[8].mxu1 %vm1342_vm7, %v1335_v24 }
 0x4cc   : > { %v2302_v26 = vpop.eup %2301  ;;  %2189 = vmatpush3.msk.msra.mxu1 %vm1346_vm6, %v1574_v25  ;;  %2190 = vmatprep.mubr.msk.f32.mxu1 %vm2319_vm0, %v2318_v6 }
 0x4cd   : > { %v2304_v27 = vpop.eup %2303  ;;  %v1339_v29 = vmul.f32 %v2302_v26, %v2294_v12  ;;  %2246 = vmatprep.subr.bf16.mxu1 %v2317_v3 }
 0x4ce   : > { %v1337_v30 = vmul.f32 %v2304_v27, %v2296_v13  ;;  %v2073_v27 = vld [vmem:[%s2698_s17] ss:$0 sm:$0xff] }
 0x4cf   : > { %2191 = vmatmul.mubr.msk.f32.vlgmr.msra.gmra.mrb[10].mxu1 %vm1342_vm7, %v1339_v29 }
 0x4d0   : > { %2186 = vmatmul.mubr.msk.f32.vlgmr.msra.gmra.mrb[8].mxu0 %vm1342_vm7, %v1337_v30  ;;  %2201 = vmatprep.mubr.msk.f32.mxu1 %vm2319_vm0, %v2318_v6 }
 0x4d1   : > { %2231 = vmatprep.mubr.msk.f32.mxu0 %vm2319_vm0, %v2318_v6  ;;  %2248 = vmatpush3.bf16.msra.mxu1 %v2247_v35 }
 0x4d2   : > { %2249 = vmatprep.subr.bf16.mxu1 %v2317_v3  ;;  %2260 = vmatpush3.bf16.msra.mxu0 %v2259_v4 }
 0x4d3   : > { %2261 = vmatprep.subr.bf16.mxu0 %v2317_v3 }
 0x4d5   : > { %2251 = vmatpush3.bf16.msra.mxu1 %v2250_v38 }
 0x4d6   : > { %2252 = vmatprep.subr.bf16.mxu1 %v2317_v3  ;;  %2263 = vmatpush3.bf16.msra.mxu0 %v2262_v7 }
 0x4d7   : > { %2264 = vmatprep.subr.bf16.mxu0 %v2317_v3 }
 0x4da   : > { %2266 = vmatpush3.bf16.msra.mxu0 %v2265_v10 }
 0x4db   : > { %2267 = vmatprep.subr.bf16.mxu0 %v2317_v3 }
 0x53a   : > { %v1415_v31 = vpop.f32.mrb[6].mxu0 }
 0x53b   : > { %1651 = vst.msk [vmem:[#allocation3] sm:$0x3f] %vm1650_vm8, %v1415_v31  ;;  %v2177_v32 = vpop.f32.mrb[7].mxu0 }
 0x59e   : > { %v1492_v39 = vpop.f32.mrb[8].mxu1 }
 0x59f   : > { %1653 = vrot.lane.b32.xlu1 %v1492_v39, %s2325_s27  ;;  %v2182_v40 = vpop.f32.mrb[9].mxu1 }
 0x5a2   : > { %v1646_v41 = vpop.f32.mrb[10].mxu1 }
 0x5a3   : > { %v1569_v42 = vpop.f32.mrb[8].mxu0  ;;  %1665 = vrot.lane.b32.xlu1 %v1646_v41, %s2326_s20  ;;  %v2192_v43 = vpop.f32.mrb[11].mxu1 }
 0x5a4   : > { %1659 = vrot.lane.b32.xlu0 %v1569_v42, %s2327_s21  ;;  %v2187_v44 = vpop.f32.mrb[9].mxu0  ;;  %v2075_v43 = vld [vmem:[%s2699_s18] ss:$0 sm:$0xff]  ;;  %s706_s21 = scalar_lea.vmem %s2703_s22, %s2046_s25 }
 0x611   : > { %v1654_v45 = vpop.permute.xlu1 %1653 }
 0x612   : > { %1657 = vst.msk [vmem:[#allocation3] sm:$0x3f] %vm1656_vm9, %v1654_v45  ;;  %v2076_v45 = vld [vmem:[%s2700_s19] ss:$0 sm:$0xff] }
 0x615   : > { %v1666_v46 = vpop.permute.xlu1 %1665 }
 0x616   : > { %v1660_v47 = vpop.permute.xlu0 %1659 }
 0x617   : > { %1663 = vst.msk [vmem:[#allocation3] sm:$0x3f] %vm1662_vm10, %v1660_v47 }
 0x618   : > { %1669 = vst.msk [vmem:[#allocation3] sm:$0x3f] %vm1668_vm11, %v1666_v46 }
 0x61f   : > { %v1670_v48 = vld [vmem:[#allocation3] sm:$0x3f] }
 0x620   : > { %2202 = vmatmul.mubr.msk.f32.vlgmr.msra.gmra.mrb[12].mxu1 %vm713_vm3, %v1670_v48 }
 0x621   : > { %2212 = vmatprep.mubr.msk.f32.mxu1 %vm2319_vm0, %v2318_v6  ;;  %v885_v6 = vld [vmem:[%s2695_s14] sm:$0xff] }
 0x622   : > { %v2253_v61 = vpack.c.bf16 %v886_v60, %v885_v6 }
 0x624   : > { %2254 = vmatpush3.bf16.msra.mxu1 %v2253_v61 }
 0x625   : > { %2255 = vmatprep.subr.bf16.mxu1 %v2317_v3  ;;  %v896_v3 = vld [vmem:[%s2697_s16 + $0x30] sm:$0xff] }
 0x626   : > { %v2268_v21 = vpack.c.bf16 %v897_v20, %v896_v3 }
 0x628   : > { %2269 = vmatpush3.bf16.msra.mxu0 %v2268_v21 }
 0x6f3   : > { %v1746_v50 = vpop.f32.mrb[12].mxu1 }
 0x6f4   : > { %v1747_v51 = vadd.f32 %v2067_v49, %v1746_v50  ;;  %v2203_v52 = vpop.f32.mrb[13].mxu1 }
 0x6f6   : > { %v1750_v53 = vadd.f32 %v1747_v51, %v2518_v28  ;;  %v887_v28 = vld [vmem:[%s2695_s14 + $0x10] sm:$0xff] }
 0x6f7   : > { %v2256_v63 = vpack.c.bf16 %v888_v62, %v887_v28 }
 0x6f8   : > { %v1752_v54 = vsel %vm1751_vm12, %v1750_v53, 0.0 }
 0x6f9   : > { %1753 = vadd.xlane.f32.xlu0 %v1752_v54  ;;  %2257 = vmatpush3.bf16.msra.mxu1 %v2256_v63 }
 0x786   : > { %v1754_v55 = vpop.xlane.xlu0 %1753 }
 0x787   : > { %v1756_v56 = vmul.f32 0.03125, %v1754_v55 }
 0x789   : > { %v1757_v57 = vsub.f32 %v1750_v53, %v1756_v56 }
 0x78b   : > { %v1758_v58 = vmul.f32 %v1757_v57, %v1757_v57 }
 0x78d   : > { %v1759_v59 = vsel %vm1751_vm12, %v1758_v58, 0.0 }
 0x78e   : > { %1760 = vadd.xlane.f32.xlu1 %v1759_v59 }
 0x81b   : > { %v1761_v11 = vpop.xlane.xlu1 %1760 }
 0x81c   : > { %v1762_v12 = vmul.f32 0.03125, %v1761_v11 }
 0x81e   : > { %v1763_v13 = vadd.f32 1e-05, %v1762_v12 }
 0x820   : > { %2305 = vrsqrt.f32 %v1763_v13 }
 0x82a   : > { %v2306_v14 = vpop.eup %2305 }
 0x82b   : > { %v1765_v16 = vmul.f32 %v2306_v14, %v1757_v57 }
 0x82d   : > { %v1772_v18 = vmul.f32 %v2069_v15, %v1765_v16 }
 0x82f   : > { %v1779_v19 = vadd.f32 %v2070_v17, %v1772_v18 }
 0x831   : > { %2213 = vmatmul.mubr.msk.f32.vlgmr.msra.gmra.mrb[14].mxu1 %vm713_vm3, %v1779_v19 }
 0x904   : > { %v1855_v23 = vpop.f32.mrb[14].mxu1 }
 0x905   : > { %v1856_v24 = vadd.f32 %v2071_v22, %v1855_v23  ;;  %v2214_v25 = vpop.f32.mrb[15].mxu1 }
 0x907   : > { %v1859_v26 = vmax.f32 %v1856_v24, 0.0 }
 0x909   : > { %2232 = vmatmul.mubr.msk.f32.vlgmr.msra.gmra.mrb[10].mxu0 %vm1866_vm13, %v1859_v26 }
 0x9dc   : > { %v1936_v29 = vpop.f32.mrb[10].mxu0 }
 0x9dd   : > { %v1937_v30 = vadd.f32 %v2073_v27, %v1936_v29  ;;  %v2233_v31 = vpop.f32.mrb[11].mxu0 }
 0x9df   : > { %v1940_v32 = vadd.f32 %v1937_v30, %v1779_v19 }
 0x9e1   : > { %v1941_v33 = vsel %vm1751_vm12, %v1940_v32, 0.0 }
 0x9e2   : > { %1942 = vadd.xlane.f32.xlu0 %v1941_v33 }
 0xa6f   : > { %v1943_v34 = vpop.xlane.xlu0 %1942 }
 0xa70   : > { %v1944_v35 = vmul.f32 0.03125, %v1943_v34 }
 0xa72   : > { %v1945_v36 = vsub.f32 %v1940_v32, %v1944_v35 }
 0xa74   : > { %v1946_v37 = vmul.f32 %v1945_v36, %v1945_v36 }
 0xa76   : > { %v1947_v38 = vsel %vm1751_vm12, %v1946_v37, 0.0 }
 0xa77   : > { %1948 = vadd.xlane.f32.xlu0 %v1947_v38 }
 0xb04   : > { %v1949_v39 = vpop.xlane.xlu0 %1948 }
 0xb05   : > { %v1950_v40 = vmul.f32 0.03125, %v1949_v39 }
 0xb07   : > { %v1951_v41 = vadd.f32 1e-05, %v1950_v40 }
 0xb09   : > { %2307 = vrsqrt.f32 %v1951_v41 }
 0xb13   : > { %v2308_v42 = vpop.eup %2307 }
 0xb14   : > { %v1953_v44 = vmul.f32 %v2308_v42, %v1945_v36 }
 0xb16   : > { %v1960_v46 = vmul.f32 %v2075_v43, %v1953_v44 }
 0xb18   : > { %v1967_v47 = vadd.f32 %v2076_v45, %v1960_v46 }
 0xb1a   : > { %1968 = vst.msk [vmem:[%s706_s21] sm:$0x3f] %vm1751_vm12, %v1967_v47 }
 0xb1b PF: > { %s32_s3 = sadd.s32 1, %s2315_s3  }
 0xb1c   : > { %p29_p4 = scmp.ge.s32.totalorder %s32_s3, 4  }
 0xb1e   :  { %31 = sbr.rel (!%p29_p4) target bundleno = 8 (0x8), region = 144 }

// kernel: act_decoder_forward.6
= control target key start
LH: loop header
LB: loop body
LE: loop exit
PB: predicated region body
PF: predicated region fallthrough
CT: control target
= control target key end

     0   :  { %s3712_s0 = inlined_call_operand.vmem [shape: f32[2,8,32], index: 0, kind: input, shape index: {}]   ;;  %s3713_s1 = inlined_call_operand.vmem [shape: f32[2,6,32], index: 1, kind: input, shape index: {}]   ;;  %s3714_s2 = inlined_call_operand.vmem [shape: f32[32,96], index: 2, kind: input, shape index: {}]   ;;  %s3715_s3 = inlined_call_operand.vmem [shape: f32[1,96], index: 3, kind: input, shape index: {}]   ;;  %s3716_s4 = inlined_call_operand.vmem [shape: f32[32,32], index: 4, kind: input, shape index: {}]   ;;  %s3717_s5 = inlined_call_operand.vmem [shape: f32[1,32], index: 5, kind: input, shape index: {}]   ;;  %s3718_s6 = inlined_call_operand.vmem [shape: f32[1,32], index: 6, kind: input, shape index: {}]   ;;  %s3719_s7 = inlined_call_operand.vmem [shape: f32[1,32], index: 7, kind: input, shape index: {}]   ;;  %s3720_s8 = inlined_call_operand.vmem [shape: f32[32,32], index: 8, kind: input, shape index: {}]   ;;  %s3721_s9 = inlined_call_operand.vmem [shape: f32[1,32], index: 9, kind: input, shape index: {}]   ;;  %s3722_s10 = inlined_call_operand.vmem [shape: f32[32,64], index: 10, kind: input, shape index: {}]   ;;  %s3723_s11 = inlined_call_operand.vmem [shape: f32[1,64], index: 11, kind: input, shape index: {}]   ;;  %s3724_s12 = inlined_call_operand.vmem [shape: f32[32,32], index: 12, kind: input, shape index: {}]   ;;  %s3725_s13 = inlined_call_operand.vmem [shape: f32[1,32], index: 13, kind: input, shape index: {}]   ;;  %s3726_s14 = inlined_call_operand.vmem [shape: f32[1,32], index: 14, kind: input, shape index: {}]   ;;  %s3727_s15 = inlined_call_operand.vmem [shape: f32[1,32], index: 15, kind: input, shape index: {}]   ;;  %s3728_s16 = inlined_call_operand.vmem [shape: f32[32,64], index: 16, kind: input, shape index: {}]   ;;  %s3729_s17 = inlined_call_operand.vmem [shape: f32[1,64], index: 17, kind: input, shape index: {}]   ;;  %s3730_s18 = inlined_call_operand.vmem [shape: f32[64,32], index: 18, kind: input, shape index: {}]   ;;  %s3731_s19 = inlined_call_operand.vmem [shape: f32[1,32], index: 19, kind: input, shape index: {}]   ;;  %s3732_s20 = inlined_call_operand.vmem [shape: f32[1,32], index: 20, kind: input, shape index: {}]   ;;  %s3733_s21 = inlined_call_operand.vmem [shape: f32[1,32], index: 21, kind: input, shape index: {}]   ;;  %s3734_s22 = inlined_call_operand.vmem [shape: f32[2,8,32], index: 22, kind: output, shape index: {}]  }
   0x1   :  { %3746 = sst [smem:[#allocation3_spill]] %s3712_s0 }
   0x2   :  { %3747 = sst [smem:[#allocation4_spill]] %s3713_s1 }
   0x3   :  { %3748 = sst [smem:[#allocation5_spill]] %s3714_s2 }
   0x4   :  { %3749 = sst [smem:[#allocation6_spill]] %s3715_s3  ;;  %s3352_s3 = smov 0  }
   0x5   :  { %3750 = sst [smem:[#allocation7_spill]] %s3716_s4 }
   0x6   :  { %3751 = sst [smem:[#allocation8_spill]] %s3717_s5 }
   0x7   :  { %3752 = sst [smem:[#allocation9_spill]] %s3718_s6 }
   0x8 LB: > { %s2819_s28 = sadd.s32 4294967295, %s3224_s3   ;;  %p2823_p0 = scmp.ge.s32.totalorder %s3224_s3, 1  ;;  %s3224_s3 = sphi %s3352_s3, %s32_s3  }
   0x9   : > { %p620_p1 = scmp.lt.s32.totalorder %s3224_s3, 3 }
   0xb   : > { %p621_p2 = pnand %p2823_p0, %p620_p1 }
   0xc   : > { %s3753_s4 = sld [smem:[#allocation5_spill]] (!%p621_p2)  ;;  %v3226_v3 = vmov (!%p621_p2), 0.0|0.0   ;;  %vm3227_vm0 = vmmov (!%p621_p2), 0   ;;  %v3228_v6 = vmov (!%p621_p2), 0.0   ;;  %p684_p3 = scmp.lt.s32.totalorder (!%p621_p2), %s2819_s28, 1  ;;  %vm749_vm1 = vcmask (!%p621_p2), 261120  }
   0xd   : > { %624 = sbr.rel (%p621_p2) target bundleno = 4345 (0x10f9), region = 108  ;;  %3113 = vmatprep.subr.bf16.mxu1 (!%p621_p2), %v3226_v3  ;;  %2956 = vmatprep.mubr.msk.f32.mxu1 (!%p621_p2), %vm3227_vm0, %v3228_v6  ;;  %s3754_s27 = sld [smem:[#allocation3_spill]] (!%p621_p2)  ;;  %vm832_vm2 = vcmask (!%p621_p2), 64512   ;;  %vm1492_vm3 = vcmask (!%p621_p2), 130112   ;;  %vm1498_vm4 = vcmask (!%p621_p2), 195712   ;;  %vm1504_vm5 = vcmask (!%p621_p2), 261312  }
   0xe   : > { %2969 = vmatprep.subr.mxu0 (!%p621_p2), %v3228_v6  ;;  %2971 = vmatprep.mubr.msk.f32.mxu0 (!%p621_p2), %vm3227_vm0, %v3228_v6  ;;  %s3755_s0 = sld [smem:[#allocation6_spill]] (!%p621_p2)  ;;  %s3744_s23 = smov (!%p621_p2), 104   ;;  %vm2087_vm6 = vcmask (!%p621_p2), 48128   ;;  %vm2137_vm7 = vcmask (!%p621_p2), 1045504   ;;  %vm2651_vm8 = vcmask (!%p621_p2), 523264  }
   0xf   : > { %s3230_s1 = smov (!%p621_p2), 120   ;;  %s3737_s5 = smov (!%p621_p2), 96  }
  0x10   : > { %s3742_s24 = smov (!%p621_p2), 112   ;;  %s3233_s6 = smov (!%p621_p2), 64  }
  0x11   : > { %s3740_s26 = smov (!%p621_p2), 8   ;;  %s3739_s2 = smov (!%p621_p2), 24  }
  0x12   : > { %v698_v0 = vld [vmem:[%s3753_s4] sm:$0xff] (!%p621_p2)  ;;  %v699_v1 = vld [vmem:[%s3753_s4 + $0x8] sm:$0xff] (!%p621_p2)  ;;  %v700_v2 = vld [vmem:[%s3753_s4 + $0x10] sm:$0xff] (!%p621_p2)  ;;  %s3760_s30 = smov (!%p621_p2), 104  }
  0x13   : > { %v3114_v4 = vpack.c.bf16 (!%p621_p2), %v699_v1, %v698_v0  ;;  %v701_v5 = vld [vmem:[%s3753_s4 + $0x18] sm:$0xff] (!%p621_p2) }
  0x14   : > { %v3117_v7 = vpack.c.bf16 %v701_v5, %v700_v2  ;;  %s3767_s28 = smov (!%p684_p3, %s2819_s28), 1  ;;  %v2827_v9 = vld [vmem:[%s3755_s0] ss:$0 sm:$0xff]  ;;  %s3764_s0 = smov 8  }
  0x15   : > { %3115 = vmatpush3.bf16.msra.mxu1 %v3114_v4  ;;  %s3379_s25 = sshll.u32 %s3767_s28, 3  ;;  %s3757_s28 = sld [smem:[#allocation8_spill]] }
  0x16   : > { %3116 = vmatprep.subr.bf16.mxu1 %v3226_v3  ;;  %s687_s29 = scalar_lea.vmem %s3754_s27, %s3379_s25  ;;  %s3756_s27 = sld [smem:[#allocation7_spill]] }
  0x17   : > { %v3385_v8 = vld [vmem:[%s687_s29] sm:$0xff] }
  0x19   : > { %3118 = vmatpush3.bf16.msra.mxu1 %v3117_v7 }
  0x1a   : > { %2959 = vmatprep.subr.mxu1 %v3228_v6 }
  0x1c   : > { %2957 = vmatmul.mubr.msk.f32.vlgmr.msra.gmra.mrb[0].mxu1 %vm749_vm1, %v3385_v8 }
  0x1d   : > { %2961 = vmatprep.mubr.msk.f32.mxu1 %vm3227_vm0, %v3228_v6 }
  0xef   : > { %v819_v10 = vpop.f32.mrb[0].mxu1 }
  0xf0   : > { %v820_v11 = vadd.f32 %v2827_v9, %v819_v10  ;;  %v2958_v12 = vpop.f32.mrb[1].mxu1 }
  0xf2   : > { %828 = vrot.lane.b32.xlu1 %v820_v11, %s3744_s23  ;;  %824 = vrot.lane.b32.xlu0 %v820_v11, %s3230_s1 }
  0xf6   : > { %830 = vrot.lane.b32.xlu1 %v820_v11, %s3737_s5  ;;  %826 = vrot.lane.b32.xlu0 %v820_v11, %s3742_s24  ;;  %s3758_s24 = sld [smem:[#allocation4_spill]] }
  0xfc   : > { %s691_s23 = scalar_lea.vmem %s3758_s24, %s3379_s25 }
 0x164   : > { %v3399_v13 = vpop.permute.xlu1 %828  ;;  %v825_v14 = vpop.permute.xlu0 %824 }
 0x165   : > { %907 = vrot.lane.b32.xlu0 %v825_v14, %s3737_s5 }
 0x168   : > { %v831_v15 = vpop.permute.xlu1 %830  ;;  %v3402_v16 = vpop.permute.xlu0 %826 }
 0x169   : > { %2960 = vmatpush3.xpose.msk.msra.mxu1 %vm832_vm2, %v831_v15  ;;  %1059 = vrot.lane.b32.xlu0 %v3399_v13, %s3737_s5 }
 0x16a   : > { %983 = vrot.lane.b32.xlu1 %v3402_v16, %s3737_s5  ;;  %2964 = vmatprep.subr.mxu1 %v3228_v6  ;;  %s3741_s5 = smov 16  }
 0x16c   : > { %2962 = vmatmul.mubr.msk.f32.vlgmr.msra.gmra.mrb[2].mxu1 %vm832_vm2, %v820_v11 }
 0x16d   : > { %2966 = vmatprep.mubr.msk.f32.mxu1 %vm3227_vm0, %v3228_v6 }
 0x1d7   : > { %v908_v17 = vpop.permute.xlu0 %907 }
 0x1d8   : > { %2965 = vmatpush3.xpose.msk.msra.mxu1 %vm832_vm2, %v908_v17  ;;  %v706_v17 = vld [vmem:[%s3756_s27 + $0x18] sm:$0xff] }
 0x1d9   : > { %2974 = vmatprep.subr.mxu1 %v3228_v6 }
 0x1db   : > { %2967 = vmatmul.mubr.msk.f32.vlgmr.msra.gmra.mrb[4].mxu1 %vm832_vm2, %v825_v14  ;;  %v1060_v18 = vpop.permute.xlu0 %1059 }
 0x1dc   : > { %v984_v19 = vpop.permute.xlu1 %983  ;;  %2975 = vmatpush3.xpose.msk.msra.mxu1 %vm832_vm2, %v1060_v18  ;;  %2976 = vmatprep.mubr.msk.f32.mxu1 %vm3227_vm0, %v3228_v6 }
 0x1dd   : > { %2970 = vmatpush3.xpose.msk.msra.mxu0 %vm832_vm2, %v984_v19  ;;  %2984 = vmatprep.subr.mxu1 %v3228_v6 }
 0x1de   : > { %2979 = vmatprep.subr.mxu0 %v3228_v6 }
 0x1df   : > { %2977 = vmatmul.mubr.msk.f32.vlgmr.msra.gmra.mrb[6].mxu1 %vm832_vm2, %v3399_v13 }
 0x1e0   : > { %2972 = vmatmul.mubr.msk.f32.vlgmr.msra.gmra.mrb[0].mxu0 %vm832_vm2, %v3402_v16  ;;  %2986 = vmatprep.mubr.msk.f32.mxu1 %vm3227_vm0, %v3228_v6 }
 0x1e1   : > { %2981 = vmatprep.mubr.msk.f32.mxu0 %vm3227_vm0, %v3228_v6 }
 0x23f   : > { %v903_v20 = vpop.f32.mrb[2].mxu1 }
 0x240   : > { %v1135_v21 = vmul.f32 0.35355338, %v903_v20  ;;  %v2963_v22 = vpop.f32.mrb[3].mxu1 }
 0x242   : > { %v1139_v23 = vsel %vm832_vm2, %v1135_v21, -inf }
 0x243   : > { %1140 = vmax.xlane.f32.xlu1 %v1139_v23 }
 0x2ae   : > { %v979_v24 = vpop.f32.mrb[4].mxu1 }
 0x2af   : > { %v1136_v25 = vmul.f32 0.35355338, %v979_v24  ;;  %v2968_v26 = vpop.f32.mrb[5].mxu1 }
 0x2b1   : > { %v1142_v27 = vsel %vm832_vm2, %v1136_v25, -inf }
 0x2b2   : > { %1143 = vmax.xlane.f32.xlu0 %v1142_v27  ;;  %v1131_v28 = vpop.f32.mrb[6].mxu1 }
 0x2b3   : > { %v1055_v29 = vpop.f32.mrb[0].mxu0  ;;  %v1138_v30 = vmul.f32 0.35355338, %v1131_v28  ;;  %v2978_v31 = vpop.f32.mrb[7].mxu1 }
 0x2b4   : > { %v1137_v32 = vmul.f32 0.35355338, %v1055_v29  ;;  %v2973_v33 = vpop.f32.mrb[1].mxu0  ;;  %v2841_v29 = vld [vmem:[%s3757_s28] ss:$0 sm:$0xff]  ;;  %s3763_s28 = smov 16  }
 0x2b5   : > { %v1148_v34 = vsel %vm832_vm2, %v1138_v30, -inf }
 0x2b6   : > { %v1145_v35 = vsel %vm832_vm2, %v1137_v32, -inf  ;;  %1149 = vmax.xlane.f32.xlu1 %v1148_v34 }
 0x2b7   : > { %1146 = vmax.xlane.f32.xlu0 %v1145_v35 }
 0x2c7   : > { %1259 = vrot.lane.b32.xlu1 %v825_v14, %s3233_s6  ;;  %v704_v14 = vld [vmem:[%s3756_s27 + $0x8] sm:$0xff] }
 0x2cd   : > { %1183 = vrot.lane.b32.xlu0 %v820_v11, %s3233_s6 }
 0x2d0   : > { %v1141_v36 = vpop.xlane.xlu1 %1140 }
 0x2d1   : > { %v1151_v37 = vsub.f32 %v1135_v21, %v1141_v36 }
 0x2d3   : > { %v1155_v38 = vmul.f32 1.442695, %v1151_v37 }
 0x2d5   : > { %3180 = vpow2.f32 %v1155_v38 }
 0x2df   : > { %v3181_v39 = vpop.eup %3180 }
 0x2e0   : > { %v1163_v40 = vsel %vm832_vm2, %v3181_v39, 0.0 }
 0x2ec   : > { %1164 = vadd.xlane.f32.xlu0 %v1163_v40  ;;  %v715_v40 = vld [vmem:[%s3722_s10] sm:$0xff] }
 0x33f   : > { %v1144_v41 = vpop.xlane.xlu0 %1143 }
 0x340   : > { %v1152_v42 = vsub.f32 %v1136_v25, %v1144_v41  ;;  %v716_v41 = vld [vmem:[%s3722_s10 + $0x8] sm:$0xff] }
 0x342   : > { %v1157_v43 = vmul.f32 1.442695, %v1152_v42  ;;  %v717_v42 = vld [vmem:[%s3722_s10 + $0x10] sm:$0xff] }
 0x343   : > { %v1150_v44 = vpop.xlane.xlu1 %1149 }
 0x344   : > { %3182 = vpow2.f32 %v1157_v43  ;;  %v1147_v45 = vpop.xlane.xlu0 %1146  ;;  %v1154_v46 = vsub.f32 %v1138_v30, %v1150_v44  ;;  %v718_v43 = vld [vmem:[%s3722_s10 + $0x18] sm:$0xff] }
 0x345   : > { %v1153_v47 = vsub.f32 %v1137_v32, %v1147_v45  ;;  %v3135_v44 = vpack.c.bf16 %v718_v43, %v717_v42  ;;  %v697_v45 = vld [vmem:[%s691_s23] sm:$0x3f]  ;;  %s3761_s23 = smov 112  }
 0x346   : > { %v1161_v48 = vmul.f32 1.442695, %v1154_v46  ;;  %v710_v46 = vld [vmem:[%s3720_s8] sm:$0xff] }
 0x347   : > { %v1159_v49 = vmul.f32 1.442695, %v1153_v47  ;;  %v1260_v50 = vpop.permute.xlu1 %1259  ;;  %v711_v47 = vld [vmem:[%s3720_s8 + $0x8] sm:$0xff] }
 0x348   : > { %3184 = vpow2.f32 %v1161_v48  ;;  %v1184_v51 = vpop.permute.xlu0 %1183  ;;  %2985 = vmatpush3.msra.mxu1 %v1260_v50  ;;  %v3126_v48 = vpack.c.bf16 %v711_v47, %v710_v46  ;;  %v713_v50 = vld [vmem:[%s3720_s8 + $0x18] sm:$0xff] }
 0x349   : > { %3186 = vpow2.f32 %v1159_v49  ;;  %2980 = vmatpush3.msra.mxu0 %v1184_v51  ;;  %2994 = vmatprep.subr.mxu1 %v3228_v6  ;;  %v712_v49 = vld [vmem:[%s3720_s8 + $0x10] sm:$0xff] }
 0x34a   : > { %2989 = vmatprep.subr.mxu0 %v3228_v6  ;;  %v3129_v51 = vpack.c.bf16 %v713_v50, %v712_v49 }
 0x34e   : > { %v3183_v52 = vpop.eup %3182 }
 0x34f   : > { %v1166_v53 = vsel %vm832_vm2, %v3183_v52, 0.0 }
 0x350   : > { %1167 = vadd.xlane.f32.xlu1 %v1166_v53 }
 0x352   : > { %v3185_v54 = vpop.eup %3184 }
 0x353   : > { %v3187_v55 = vpop.eup %3186  ;;  %v1172_v56 = vsel %vm832_vm2, %v3185_v54, 0.0 }
 0x354   : > { %v1169_v57 = vsel %vm832_vm2, %v3187_v55, 0.0  ;;  %1173 = vadd.xlane.f32.xlu1 %v1172_v56 }
 0x355   : > { %1170 = vadd.xlane.f32.xlu0 %v1169_v57 }
 0x365   : > { %1335 = vrot.lane.b32.xlu1 %v3402_v16, %s3233_s6  ;;  %v705_v16 = vld [vmem:[%s3756_s27 + $0x10] sm:$0xff] }
 0x366   : > { %v3123_v18 = vpack.c.bf16 %v706_v17, %v705_v16 }
 0x36b   : > { %1411 = vrot.lane.b32.xlu0 %v3399_v13, %s3233_s6  ;;  %v703_v13 = vld [vmem:[%s3756_s27] sm:$0xff] }
 0x36c   : > { %v3120_v15 = vpack.c.bf16 %v704_v14, %v703_v13 }
 0x379   : > { %v1165_v58 = vpop.xlane.xlu0 %1164 }
 0x37a   : > { %3188 = vrcp.f32 %v1165_v58  ;;  %v2844_v58 = vld [vmem:[%s3719_s7] ss:$0 sm:$0xff] }
 0x384   : > { %v3189_v59 = vpop.eup %3188 }
 0x385   : > { %v1176_v60 = vmul.f32 %v3189_v59, %v3181_v39 }
 0x387   : > { %2982 = vmatmul.mubr.msk.f32.vlgmr.msra.gmra.mrb[2].mxu0 %vm832_vm2, %v1176_v60 }
 0x388   : > { %2991 = vmatprep.mubr.msk.f32.mxu0 %vm3227_vm0, %v3228_v6 }
 0x3dd   : > { %v1168_v61 = vpop.xlane.xlu1 %1167 }
 0x3de   : > { %3190 = vrcp.f32 %v1168_v61  ;;  %v2847_v61 = vld [vmem:[%s3723_s11] ss:$0 sm:$0xff] }
 0x3e1   : > { %v1174_v62 = vpop.xlane.xlu1 %1173 }
 0x3e2   : > { %v1171_v63 = vpop.xlane.xlu0 %1170  ;;  %3192 = vrcp.f32 %v1174_v62 }
 0x3e3   : > { %3194 = vrcp.f32 %v1171_v63 }
 0x3e5   : > { %v1336_v0 = vpop.permute.xlu1 %1335 }
 0x3e6   : > { %2990 = vmatpush3.msra.mxu0 %v1336_v0  ;;  %v1412_v4 = vpop.permute.xlu0 %1411 }
 0x3e7   : > { %3119 = vmatprep.subr.bf16.mxu0 %v3226_v3 }
 0x3e8   : > { %v3191_v1 = vpop.eup %3190 }
 0x3e9   : > { %v1178_v2 = vmul.f32 %v3191_v1, %v3183_v52 }
 0x3eb   : > { %2987 = vmatmul.mubr.msk.f32.vlgmr.msra.gmra.mrb[8].mxu1 %vm832_vm2, %v1178_v2 }
 0x3ec   : > { %v3193_v5 = vpop.eup %3192  ;;  %2995 = vmatpush3.msra.mxu1 %v1412_v4  ;;  %2996 = vmatprep.mubr.msk.f32.mxu1 %vm3227_vm0, %v3228_v6  ;;  %v2845_v4 = vld [vmem:[%s3721_s9] ss:$0 sm:$0xff] }
 0x3ed   : > { %v3195_v7 = vpop.eup %3194  ;;  %v1182_v9 = vmul.f32 %v3193_v5, %v3185_v54  ;;  %3125 = vmatprep.subr.bf16.mxu1 %v3226_v3 }
 0x3ee   : > { %v1180_v10 = vmul.f32 %v3195_v7, %v3187_v55 }
 0x3ef   : > { %2997 = vmatmul.mubr.msk.f32.vlgmr.msra.gmra.mrb[10].mxu1 %vm832_vm2, %v1182_v9 }
 0x3f0   : > { %2992 = vmatmul.mubr.msk.f32.vlgmr.msra.gmra.mrb[4].mxu0 %vm832_vm2, %v1180_v10  ;;  %3018 = vmatprep.mubr.msk.f32.mxu1 %vm3227_vm0, %v3228_v6 }
 0x3f1   : > { %3007 = vmatprep.mubr.msk.f32.mxu0 %vm3227_vm0, %v3228_v6  ;;  %3121 = vmatpush3.bf16.msra.mxu0 %v3120_v15 }
 0x3f2   : > { %3122 = vmatprep.subr.bf16.mxu0 %v3226_v3  ;;  %3127 = vmatpush3.bf16.msra.mxu1 %v3126_v48 }
 0x3f3   : > { %3128 = vmatprep.subr.bf16.mxu1 %v3226_v3 }
 0x3f5   : > { %3124 = vmatpush3.bf16.msra.mxu0 %v3123_v18 }
 0x3f6   : > { %3131 = vmatprep.subr.bf16.mxu0 %v3226_v3  ;;  %3130 = vmatpush3.bf16.msra.mxu1 %v3129_v51 }
 0x3f7   : > { %3032 = vmatprep.subr.mxu1 %v3228_v6 }
 0x45a   : > { %v1255_v11 = vpop.f32.mrb[2].mxu0 }
 0x45b   : > { %1487 = vst.msk [vmem:[#allocation2] sm:$0xff] %vm832_vm2, %v1255_v11  ;;  %v2983_v12 = vpop.f32.mrb[3].mxu0 }
 0x4be   : > { %v1331_v19 = vpop.f32.mrb[8].mxu1 }
 0x4bf   : > { %1489 = vrot.lane.b32.xlu1 %v1331_v19, %s3740_s26  ;;  %v2988_v20 = vpop.f32.mrb[9].mxu1 }
 0x4c2   : > { %v1483_v21 = vpop.f32.mrb[10].mxu1 }
 0x4c3   : > { %v1407_v22 = vpop.f32.mrb[4].mxu0  ;;  %1501 = vrot.lane.b32.xlu1 %v1483_v21, %s3739_s2  ;;  %v2998_v23 = vpop.f32.mrb[11].mxu1  ;;  %s3759_s2 = sld [smem:[#allocation9_spill]] }
 0x4c4   : > { %1495 = vrot.lane.b32.xlu0 %v1407_v22, %s3741_s5  ;;  %v2993_v24 = vpop.f32.mrb[5].mxu0 }
 0x4c9   : > { %v2843_v56 = vld [vmem:[%s3759_s2] ss:$0 sm:$0xff] }
 0x531   : > { %v1490_v25 = vpop.permute.xlu1 %1489 }
 0x532   : > { %1493 = vst.msk [vmem:[#allocation2] sm:$0xff] %vm1492_vm3, %v1490_v25 }
 0x535   : > { %v1502_v26 = vpop.permute.xlu1 %1501 }
 0x536   : > { %v1496_v27 = vpop.permute.xlu0 %1495 }
 0x537   : > { %1499 = vst.msk [vmem:[#allocation2] sm:$0xff] %vm1498_vm4, %v1496_v27 }
 0x538   : > { %1505 = vst.msk [vmem:[#allocation2] sm:$0xff] %vm1504_vm5, %v1502_v26 }
 0x53f   : > { %v1506_v28 = vld [vmem:[#allocation2] sm:$0xff] }
 0x540   : > { %3008 = vmatmul.mubr.msk.f32.vlgmr.msra.gmra.mrb[6].mxu0 %vm749_vm1, %v1506_v28 }
 0x541   : > { %3029 = vmatprep.mubr.msk.f32.mxu0 %vm3227_vm0, %v3228_v6 }
 0x613   : > { %v1582_v30 = vpop.f32.mrb[6].mxu0 }
 0x614   : > { %v1583_v31 = vadd.f32 %v2841_v29, %v1582_v30  ;;  %v3009_v32 = vpop.f32.mrb[7].mxu0 }
 0x616   : > { %v1586_v33 = vadd.f32 %v1583_v31, %v3385_v8  ;;  %v3132_v8 = vpack.c.bf16 %v716_v41, %v715_v40 }
 0x618   : > { %v1587_v34 = vsel %vm749_vm1, %v1586_v33, 0.0  ;;  %3133 = vmatpush3.bf16.msra.mxu0 %v3132_v8 }
 0x619   : > { %1588 = vadd.xlane.f32.xlu0 %v1587_v34  ;;  %3134 = vmatprep.subr.bf16.mxu0 %v3226_v3 }
 0x61c   : > { %3136 = vmatpush3.bf16.msra.mxu0 %v3135_v44 }
 0x61d   : > { %3042 = vmatprep.subr.mxu0 %v3228_v6 }
 0x61f   : > { %3030 = vmatmul.mubr.msk.f32.vlgmr.msra.gmra.mrb[8].mxu0 %vm749_vm1, %v697_v45 }
 0x620   : > { %3044 = vmatprep.mubr.msk.f32.mxu0 %vm3227_vm0, %v3228_v6 }
 0x6a6   : > { %v1589_v35 = vpop.xlane.xlu0 %1588 }
 0x6a7   : > { %v1591_v36 = vmul.f32 0.03125, %v1589_v35 }
 0x6a9   : > { %v1592_v37 = vsub.f32 %v1586_v33, %v1591_v36 }
 0x6ab   : > { %v1593_v38 = vmul.f32 %v1592_v37, %v1592_v37 }
 0x6ad   : > { %v1594_v39 = vsel %vm749_vm1, %v1593_v38, 0.0 }
 0x6ae   : > { %1595 = vadd.xlane.f32.xlu1 %v1594_v39 }
 0x6f2   : > { %v1769_v62 = vpop.f32.mrb[8].mxu0 }
 0x6f3   : > { %v1770_v63 = vadd.f32 %v2847_v61, %v1769_v62  ;;  %v3031_v0 = vpop.f32.mrb[9].mxu0 }
 0x6f5   : > { %1781 = vrot.lane.b32.xlu0 %v1770_v63, %s3230_s1  ;;  %1785 = vrot.lane.b32.xlu1 %v1770_v63, %s3760_s30 }
 0x6f9   : > { %1783 = vrot.lane.b32.xlu0 %v1770_v63, %s3761_s23 }
 0x73b   : > { %v1596_v52 = vpop.xlane.xlu1 %1595 }
 0x73c   : > { %v1597_v53 = vmul.f32 0.03125, %v1596_v52 }
 0x73e   : > { %v1598_v54 = vadd.f32 1e-05, %v1597_v53 }
 0x740   : > { %3196 = vrsqrt.f32 %v1598_v54 }
 0x74a   : > { %v3197_v55 = vpop.eup %3196 }
 0x74b   : > { %v1600_v57 = vmul.f32 %v3197_v55, %v1592_v37 }
 0x74d   : > { %v1607_v59 = vmul.f32 %v2843_v56, %v1600_v57 }
 0x74f   : > { %v3531_v60 = vadd.f32 %v2844_v58, %v1607_v59 }
 0x751   : > { %3019 = vmatmul.mubr.msk.f32.vlgmr.msra.gmra.mrb[12].mxu1 %vm749_vm1, %v3531_v60 }
 0x752   : > { %3034 = vmatprep.mubr.msk.f32.mxu1 %vm3227_vm0, %v3228_v6  ;;  %3033 = vmatpush3.xpose.msk.msra.mxu1 %vm832_vm2, %v1770_v63 }
 0x753   : > { %3037 = vmatprep.subr.mxu1 %v3228_v6 }
 0x767   : > { %v3545_v1 = vpop.permute.xlu0 %1781  ;;  %v3564_v10 = vpop.permute.xlu1 %1785 }
 0x76b   : > { %v3547_v2 = vpop.permute.xlu0 %1783 }
 0x76c   : > { %3043 = vmatpush3.xpose.msk.msra.mxu0 %vm832_vm2, %v3547_v2 }
 0x76d   : > { %3052 = vmatprep.subr.mxu0 %v3228_v6 }
 0x824   : > { %v1690_v5 = vpop.f32.mrb[12].mxu1 }
 0x825   : > { %v1691_v7 = vadd.f32 %v2845_v4, %v1690_v5  ;;  %v3020_v9 = vpop.f32.mrb[13].mxu1  ;;  %v720_v5 = vld [vmem:[%s3724_s12] sm:$0xff] }
 0x827   : > { %1776 = vrot.lane.b32.xlu0 %v1691_v7, %s3761_s23  ;;  %1774 = vrot.lane.b32.xlu1 %v1691_v7, %s3230_s1  ;;  %s3762_s1 = smov 96   ;;  %s695_s23 = scalar_lea.vmem %s3734_s22, %s3379_s25 }
 0x828   : > { %3035 = vmatmul.mubr.msk.f32.vlgmr.msra.gmra.mrb[14].mxu1 %vm832_vm2, %v1691_v7 }
 0x829   : > { %3038 = vmatpush3.xpose.msk.msra.mxu1 %vm832_vm2, %v3545_v1  ;;  %3039 = vmatprep.mubr.msk.f32.mxu1 %vm3227_vm0, %v3228_v6 }
 0x82a   : > { %3047 = vmatprep.subr.mxu1 %v3228_v6 }
 0x82b   : > { %1778 = vrot.lane.b32.xlu1 %v1691_v7, %s3760_s30  ;;  %v721_v7 = vld [vmem:[%s3724_s12 + $0x8] sm:$0xff] }
 0x82c   : > { %v3138_v9 = vpack.c.bf16 %v721_v7, %v720_v5 }
 0x899   : > { %v1777_v11 = vpop.permute.xlu0 %1776  ;;  %v1775_v12 = vpop.permute.xlu1 %1774 }
 0x89a   : > { %3040 = vmatmul.mubr.msk.f32.vlgmr.msra.gmra.mrb[16].mxu1 %vm832_vm2, %v1775_v12  ;;  %3045 = vmatmul.mubr.msk.f32.vlgmr.msra.gmra.mrb[10].mxu0 %vm832_vm2, %v1777_v11  ;;  %v723_v11 = vld [vmem:[%s3724_s12 + $0x18] sm:$0xff] }
 0x89b   : > { %3048 = vmatpush3.xpose.msk.msra.mxu1 %vm832_vm2, %v3564_v10  ;;  %3049 = vmatprep.mubr.msk.f32.mxu1 %vm3227_vm0, %v3228_v6 }
 0x89c   : > { %3054 = vmatprep.mubr.msk.f32.mxu0 %vm3227_vm0, %v3228_v6  ;;  %3057 = vmatprep.subr.mxu1 %v3228_v6 }
 0x89d   : > { %v1779_v13 = vpop.permute.xlu1 %1778 }
 0x89e   : > { %3050 = vmatmul.mubr.msk.f32.vlgmr.msra.gmra.mrb[18].mxu1 %vm832_vm2, %v1779_v13 }
 0x89f   : > { %3059 = vmatprep.mubr.msk.f32.mxu1 %vm3227_vm0, %v3228_v6 }
 0x8fb   : > { %v1857_v14 = vpop.f32.mrb[14].mxu1 }
 0x8fc   : > { %v2083_v15 = vmul.f32 0.35355338, %v1857_v14  ;;  %v3036_v16 = vpop.f32.mrb[15].mxu1 }
 0x8fe   : > { %v2088_v17 = vsel %vm2087_vm6, %v2083_v15, -inf }
 0x8ff   : > { %2089 = vmax.xlane.f32.xlu0 %v2088_v17 }
 0x96d   : > { %v1931_v18 = vpop.f32.mrb[16].mxu1  ;;  %v2005_v19 = vpop.f32.mrb[10].mxu0 }
 0x96e   : > { %v2084_v20 = vmul.f32 0.35355338, %v1931_v18  ;;  %v2085_v21 = vmul.f32 0.35355338, %v2005_v19  ;;  %v3041_v22 = vpop.f32.mrb[17].mxu1  ;;  %v3046_v23 = vpop.f32.mrb[11].mxu0 }
 0x96f   : > { %v2865_v23 = vld [vmem:[%s3725_s13] ss:$0 sm:$0xff] }
 0x970   : > { %v2094_v24 = vsel %vm2087_vm6, %v2085_v21, -inf  ;;  %v2091_v25 = vsel %vm2087_vm6, %v2084_v20, -inf }
 0x971   : > { %2095 = vmax.xlane.f32.xlu0 %v2094_v24  ;;  %2092 = vmax.xlane.f32.xlu1 %v2091_v25  ;;  %v2079_v26 = vpop.f32.mrb[18].mxu1 }
 0x972   : > { %v2086_v27 = vmul.f32 0.35355338, %v2079_v26  ;;  %v3051_v28 = vpop.f32.mrb[19].mxu1 }
 0x974   : > { %v2097_v29 = vsel %vm2087_vm6, %v2086_v27, -inf }
 0x975   : > { %2098 = vmax.xlane.f32.xlu0 %v2097_v29 }
 0x982   : > { %2132 = vrot.lane.b32.xlu1 %v1770_v63, %s3762_s1 }
 0x98c   : > { %v2090_v30 = vpop.xlane.xlu0 %2089 }
 0x98d   : > { %v2100_v31 = vsub.f32 %v2083_v15, %v2090_v30 }
 0x98f   : > { %v2104_v32 = vmul.f32 1.442695, %v2100_v31 }
 0x991   : > { %3198 = vpow2.f32 %v2104_v32 }
 0x99b   : > { %v3199_v33 = vpop.eup %3198 }
 0x99c   : > { %v2112_v34 = vsel %vm2087_vm6, %v3199_v33, 0.0 }
 0x9a6   : > { %2113 = vadd.xlane.f32.xlu1 %v2112_v34  ;;  %v728_v34 = vld [vmem:[%s3728_s16 + $0x8] sm:$0xff] }
 0x9fe   : > { %v2096_v35 = vpop.xlane.xlu0 %2095  ;;  %v2093_v36 = vpop.xlane.xlu1 %2092 }
 0x9ff   : > { %v2102_v37 = vsub.f32 %v2085_v21, %v2096_v35  ;;  %v2101_v38 = vsub.f32 %v2084_v20, %v2093_v36  ;;  %v730_v36 = vld [vmem:[%s3728_s16 + $0x18] sm:$0xff] }
 0xa01   : > { %v2108_v39 = vmul.f32 1.442695, %v2102_v37  ;;  %v2106_v40 = vmul.f32 1.442695, %v2101_v38  ;;  %v732_v38 = vld [vmem:[%s3730_s18] sm:$0xff] }
 0xa02   : > { %v2133_v41 = vpop.permute.xlu1 %2132  ;;  %v2099_v8 = vpop.xlane.xlu0 %2098 }
 0xa03   : > { %3200 = vpow2.f32 %v2108_v39  ;;  %v2103_v42 = vsub.f32 %v2086_v27, %v2099_v8  ;;  %3053 = vmatpush3.msk.msra.mxu0 %vm2137_vm7, %v2133_v41  ;;  %v733_v39 = vld [vmem:[%s3730_s18 + $0x8] sm:$0xff]  ;;  %v735_v8 = vld [vmem:[%s3730_s18 + $0x18] sm:$0xff] }
 0xa04   : > { %3202 = vpow2.f32 %v2106_v40  ;;  %3062 = vmatprep.subr.mxu0 %v3228_v6  ;;  %v734_v40 = vld [vmem:[%s3730_s18 + $0x10] sm:$0xff]  ;;  %v3150_v41 = vpack.c.bf16 %v733_v39, %v732_v38 }
 0xa05   : > { %v2110_v43 = vmul.f32 1.442695, %v2103_v42  ;;  %v3153_v42 = vpack.c.bf16 %v735_v8, %v734_v40 }
 0xa07   : > { %3204 = vpow2.f32 %v2110_v43  ;;  %v736_v43 = vld [vmem:[%s3730_s18 + $0x20] sm:$0xff] }
 0xa0d   : > { %v3201_v44 = vpop.eup %3200 }
 0xa0e   : > { %v3203_v45 = vpop.eup %3202  ;;  %v2118_v46 = vsel %vm2087_vm6, %v3201_v44, 0.0 }
 0xa0f   : > { %2119 = vadd.xlane.f32.xlu1 %v2118_v46  ;;  %v2115_v47 = vsel %vm2087_vm6, %v3203_v45, 0.0 }
 0xa10   : > { %2116 = vadd.xlane.f32.xlu0 %v2115_v47 }
 0xa11   : > { %v3205_v48 = vpop.eup %3204 }
 0xa12   : > { %v2121_v49 = vsel %vm2087_vm6, %v3205_v48, 0.0 }
 0xa14   : > { %2122 = vadd.xlane.f32.xlu0 %v2121_v49 }
 0xa20   : > { %2287 = vrot.lane.b32.xlu1 %v3547_v2, %s3762_s1 }
 0xa24   : > { %2364 = vrot.lane.b32.xlu1 %v3564_v10, %s3762_s1  ;;  %v722_v10 = vld [vmem:[%s3724_s12 + $0x10] sm:$0xff] }
 0xa25   : > { %v3141_v12 = vpack.c.bf16 %v723_v11, %v722_v10 }
 0xa2a   : > { %2210 = vrot.lane.b32.xlu0 %v3545_v1, %s3762_s1  ;;  %s3765_s1 = smov 24  }
 0xa33   : > { %v2114_v50 = vpop.xlane.xlu1 %2113 }
 0xa34   : > { %3206 = vrcp.f32 %v2114_v50  ;;  %v2867_v50 = vld [vmem:[%s3726_s14] ss:$0 sm:$0xff] }
 0xa3e   : > { %v3207_v51 = vpop.eup %3206 }
 0xa3f   : > { %v2125_v52 = vmul.f32 %v3207_v51, %v3199_v33 }
 0xa41   : > { %3055 = vmatmul.mubr.msk.f32.vlgmr.msra.gmra.mrb[12].mxu0 %vm2087_vm6, %v2125_v52  ;;  %v2868_v52 = vld [vmem:[%s3727_s15] ss:$0 sm:$0xff] }
 0xa42   : > { %3064 = vmatprep.mubr.msk.f32.mxu0 %vm3227_vm0, %v3228_v6 }
 0xa9c   : > { %v2120_v53 = vpop.xlane.xlu1 %2119 }
 0xa9d   : > { %3208 = vrcp.f32 %v2120_v53  ;;  %v2117_v54 = vpop.xlane.xlu0 %2116 }
 0xa9e   : > { %3210 = vrcp.f32 %v2117_v54 }
 0xaa0   : > { %v2288_v55 = vpop.permute.xlu1 %2287 }
 0xaa1   : > { %v2123_v56 = vpop.xlane.xlu0 %2122  ;;  %3063 = vmatpush3.msk.msra.mxu0 %vm2137_vm7, %v2288_v55  ;;  %v739_v55 = vld [vmem:[%s3730_s18 + $0x38] sm:$0xff] }
 0xaa2   : > { %3212 = vrcp.f32 %v2123_v56  ;;  %3137 = vmatprep.subr.bf16.mxu0 %v3226_v3 }
 0xaa4   : > { %v2365_v63 = vpop.permute.xlu1 %2364 }
 0xaa5   : > { %v2211_v57 = vpop.permute.xlu0 %2210 }
 0xaa6   : > { %3058 = vmatpush3.msk.msra.mxu1 %vm2137_vm7, %v2211_v57  ;;  %v2869_v57 = vld [vmem:[%s3729_s17] ss:$0 sm:$0xff] }
 0xaa7   : > { %v3209_v58 = vpop.eup %3208  ;;  %3067 = vmatprep.subr.mxu1 %v3228_v6 }
 0xaa8   : > { %v3211_v59 = vpop.eup %3210  ;;  %v2129_v61 = vmul.f32 %v3209_v58, %v3201_v44  ;;  %v737_v44 = vld [vmem:[%s3730_s18 + $0x28] sm:$0xff] }
 0xaa9   : > { %v2127_v62 = vmul.f32 %v3211_v59, %v3203_v45  ;;  %v3156_v45 = vpack.c.bf16 %v737_v44, %v736_v43 }
 0xaaa   : > { %3065 = vmatmul.mubr.msk.f32.vlgmr.msra.gmra.mrb[14].mxu0 %vm2087_vm6, %v2129_v61 }
 0xaab   : > { %3060 = vmatmul.mubr.msk.f32.vlgmr.msra.gmra.mrb[20].mxu1 %vm2087_vm6, %v2127_v62  ;;  %3080 = vmatprep.mubr.msk.f32.mxu0 %vm3227_vm0, %v3228_v6 }
 0xaac   : > { %v3213_v0 = vpop.eup %3212  ;;  %3068 = vmatpush3.msk.msra.mxu1 %vm2137_vm7, %v2365_v63  ;;  %3069 = vmatprep.mubr.msk.f32.mxu1 %vm3227_vm0, %v3228_v6  ;;  %v2871_v63 = vld [vmem:[%s3731_s19] ss:$0 sm:$0xff] }
 0xaad   : > { %v2131_v1 = vmul.f32 %v3213_v0, %v3205_v48  ;;  %3143 = vmatprep.subr.bf16.mxu1 %v3226_v3  ;;  %3139 = vmatpush3.bf16.msra.mxu0 %v3138_v9 }
 0xaae   : > { %3140 = vmatprep.subr.bf16.mxu0 %v3226_v3 }
 0xaaf   : > { %3070 = vmatmul.mubr.msk.f32.vlgmr.msra.gmra.mrb[22].mxu1 %vm2087_vm6, %v2131_v1 }
 0xab0   : > { %3091 = vmatprep.mubr.msk.f32.mxu1 %vm3227_vm0, %v3228_v6 }
 0xab1   : > { %3142 = vmatpush3.bf16.msra.mxu0 %v3141_v12 }
 0xab2   : > { %3149 = vmatprep.subr.bf16.mxu0 %v3226_v3 }
 0xb14   : > { %v2206_v2 = vpop.f32.mrb[12].mxu0 }
 0xb15   : > { %2441 = vst.msk [vmem:[#allocation2] sm:$0xff] %vm832_vm2, %v2206_v2  ;;  %v3056_v4 = vpop.f32.mrb[13].mxu0 }
 0xb7d   : > { %v2360_v13 = vpop.f32.mrb[14].mxu0 }
 0xb7e   : > { %v2283_v14 = vpop.f32.mrb[20].mxu1  ;;  %2448 = vrot.lane.b32.xlu1 %v2360_v13, %s3763_s28  ;;  %v3066_v15 = vpop.f32.mrb[15].mxu0 }
 0xb7f   : > { %2443 = vrot.lane.b32.xlu0 %v2283_v14, %s3764_s0  ;;  %v3061_v16 = vpop.f32.mrb[21].mxu1 }
 0xb82   : > { %v2437_v17 = vpop.f32.mrb[22].mxu1 }
 0xb83   : > { %2453 = vrot.lane.b32.xlu0 %v2437_v17, %s3765_s1  ;;  %v3071_v18 = vpop.f32.mrb[23].mxu1  ;;  %v2873_v17 = vld [vmem:[%s3732_s20] ss:$0 sm:$0xff] }
 0xbf0   : > { %v2449_v19 = vpop.permute.xlu1 %2448 }
 0xbf1   : > { %v2444_v20 = vpop.permute.xlu0 %2443 }
 0xbf2   : > { %2446 = vst.msk [vmem:[#allocation2] sm:$0xff] %vm1492_vm3, %v2444_v20 }
 0xbf3   : > { %2451 = vst.msk [vmem:[#allocation2] sm:$0xff] %vm1498_vm4, %v2449_v19  ;;  %v2874_v19 = vld [vmem:[%s3733_s21] ss:$0 sm:$0xff] }
 0xbf5   : > { %v2454_v21 = vpop.permute.xlu0 %2453 }
 0xbf6   : > { %2456 = vst.msk [vmem:[#allocation2] sm:$0xff] %vm1504_vm5, %v2454_v21 }
 0xbfd   : > { %v2457_v22 = vld [vmem:[#allocation2] sm:$0xff] }
 0xbfe   : > { %3081 = vmatmul.mubr.msk.f32.vlgmr.msra.gmra.mrb[16].mxu0 %vm749_vm1, %v2457_v22 }
 0xbff   : > { %3110 = vmatprep.mubr.msk.f32.mxu0 %vm3227_vm0, %v3228_v6  ;;  %v727_v6 = vld [vmem:[%s3728_s16] sm:$0xff]  ;;  %3151 = vmatpush3.bf16.msra.mxu0 %v3150_v41 }
 0xc00   : > { %v3144_v35 = vpack.c.bf16 %v728_v34, %v727_v6  ;;  %3152 = vmatprep.subr.bf16.mxu0 %v3226_v3 }
 0xc02   : > { %3145 = vmatpush3.bf16.msra.mxu1 %v3144_v35 }
 0xc03   : > { %3146 = vmatprep.subr.bf16.mxu1 %v3226_v3  ;;  %3154 = vmatpush3.bf16.msra.mxu0 %v3153_v42 }
 0xc04   : > { %3155 = vmatprep.subr.bf16.mxu0 %v3226_v3 }
 0xc07   : > { %3157 = vmatpush3.bf16.msra.mxu0 %v3156_v45 }
 0xc08   : > { %3158 = vmatprep.subr.bf16.mxu0 %v3226_v3  ;;  %v738_v3 = vld [vmem:[%s3730_s18 + $0x30] sm:$0xff] }
 0xc09   : > { %v3159_v56 = vpack.c.bf16 %v739_v55, %v738_v3 }
 0xc0b   : > { %3160 = vmatpush3.bf16.msra.mxu0 %v3159_v56 }
 0xcd1   : > { %v2533_v24 = vpop.f32.mrb[16].mxu0 }
 0xcd2   : > { %v2534_v25 = vadd.f32 %v2865_v23, %v2533_v24  ;;  %v3082_v26 = vpop.f32.mrb[17].mxu0 }
 0xcd4   : > { %v2537_v27 = vadd.f32 %v2534_v25, %v3531_v60  ;;  %v729_v60 = vld [vmem:[%s3728_s16 + $0x10] sm:$0xff] }
 0xcd5   : > { %v3147_v37 = vpack.c.bf16 %v730_v36, %v729_v60 }
 0xcd6   : > { %v2538_v28 = vsel %vm749_vm1, %v2537_v27, 0.0 }
 0xcd7   : > { %2539 = vadd.xlane.f32.xlu1 %v2538_v28  ;;  %3148 = vmatpush3.bf16.msra.mxu1 %v3147_v37 }
 0xd64   : > { %v2540_v29 = vpop.xlane.xlu1 %2539 }
 0xd65   : > { %v2541_v30 = vmul.f32 0.03125, %v2540_v29 }
 0xd67   : > { %v2542_v31 = vsub.f32 %v2537_v27, %v2541_v30 }
 0xd69   : > { %v2543_v32 = vmul.f32 %v2542_v31, %v2542_v31 }
 0xd6b   : > { %v2544_v33 = vsel %vm749_vm1, %v2543_v32, 0.0 }
 0xd6c   : > { %2545 = vadd.xlane.f32.xlu0 %v2544_v33 }
 0xdf9   : > { %v2546_v46 = vpop.xlane.xlu0 %2545 }
 0xdfa   : > { %v2547_v47 = vmul.f32 0.03125, %v2546_v46 }
 0xdfc   : > { %v2548_v48 = vadd.f32 1e-05, %v2547_v47 }
 0xdfe   : > { %3214 = vrsqrt.f32 %v2548_v48 }
 0xe08   : > { %v3215_v49 = vpop.eup %3214 }
 0xe09   : > { %v2550_v51 = vmul.f32 %v3215_v49, %v2542_v31 }
 0xe0b   : > { %v2557_v53 = vmul.f32 %v2867_v50, %v2550_v51 }
 0xe0d   : > { %v2564_v54 = vadd.f32 %v2868_v52, %v2557_v53 }
 0xe0f   : > { %3092 = vmatmul.mubr.msk.f32.vlgmr.msra.gmra.mrb[24].mxu1 %vm749_vm1, %v2564_v54 }
 0xee2   : > { %v2640_v58 = vpop.f32.mrb[24].mxu1 }
 0xee3   : > { %v2641_v59 = vadd.f32 %v2869_v57, %v2640_v58  ;;  %v3093_v61 = vpop.f32.mrb[25].mxu1 }
 0xee5   : > { %v2644_v62 = vmax.f32 %v2641_v59, 0.0 }
 0xee7   : > { %3111 = vmatmul.mubr.msk.f32.vlgmr.msra.gmra.mrb[18].mxu0 %vm2651_vm8, %v2644_v62 }
 0xfba   : > { %v2721_v0 = vpop.f32.mrb[18].mxu0 }
 0xfbb   : > { %v2722_v1 = vadd.f32 %v2871_v63, %v2721_v0  ;;  %v3112_v2 = vpop.f32.mrb[19].mxu0 }
 0xfbd   : > { %v2725_v4 = vadd.f32 %v2722_v1, %v2564_v54 }
 0xfbf   : > { %v2726_v5 = vsel %vm749_vm1, %v2725_v4, 0.0 }
 0xfc0   : > { %2727 = vadd.xlane.f32.xlu0 %v2726_v5 }
0x104d   : > { %v2728_v7 = vpop.xlane.xlu0 %2727 }
0x104e   : > { %v2729_v9 = vmul.f32 0.03125, %v2728_v7 }
0x1050   : > { %v2730_v10 = vsub.f32 %v2725_v4, %v2729_v9 }
0x1052   : > { %v2731_v11 = vmul.f32 %v2730_v10, %v2730_v10 }
0x1054   : > { %v2732_v12 = vsel %vm749_vm1, %v2731_v11, 0.0 }
0x1055   : > { %2733 = vadd.xlane.f32.xlu1 %v2732_v12 }
0x10e2   : > { %v2734_v13 = vpop.xlane.xlu1 %2733 }
0x10e3   : > { %v2735_v14 = vmul.f32 0.03125, %v2734_v13 }
0x10e5   : > { %v2736_v15 = vadd.f32 1e-05, %v2735_v14 }
0x10e7   : > { %3216 = vrsqrt.f32 %v2736_v15 }
0x10f1   : > { %v3217_v16 = vpop.eup %3216 }
0x10f2   : > { %v2738_v18 = vmul.f32 %v3217_v16, %v2730_v10 }
0x10f4   : > { %v2745_v20 = vmul.f32 %v2873_v17, %v2738_v18 }
0x10f6   : > { %v2752_v21 = vadd.f32 %v2874_v19, %v2745_v20 }
0x10f8   : > { %2753 = vst.msk [vmem:[%s695_s23] sm:$0xff] %vm749_vm1, %v2752_v21 }
0x10f9 PF: > { %s32_s3 = sadd.s32 1, %s3224_s3  }
0x10fa   : > { %p29_p4 = scmp.ge.s32.totalorder %s32_s3, 4  }
0x10fc   :  { %31 = sbr.rel (!%p29_p4) target bundleno = 8 (0x8), region = 141 }

// kernel: act_decoder_forward.7
= control target key start
LH: loop header
LB: loop body
LE: loop exit
PB: predicated region body
PF: predicated region fallthrough
CT: control target
= control target key end

     0   :  { %s3621_s27 = smov 0   ;;  %s4008_s0 = inlined_call_operand.vmem [shape: f32[2,8,32], index: 0, kind: input, shape index: {}]   ;;  %s4009_s1 = inlined_call_operand.vmem [shape: f32[2,6,32], index: 1, kind: input, shape index: {}]   ;;  %s4010_s2 = inlined_call_operand.vmem [shape: f32[32,96], index: 2, kind: input, shape index: {}]   ;;  %s4011_s3 = inlined_call_operand.vmem [shape: f32[1,96], index: 3, kind: input, shape index: {}]   ;;  %s4012_s4 = inlined_call_operand.vmem [shape: f32[32,32], index: 4, kind: input, shape index: {}]   ;;  %s4013_s5 = inlined_call_operand.vmem [shape: f32[1,32], index: 5, kind: input, shape index: {}]   ;;  %s4014_s6 = inlined_call_operand.vmem [shape: f32[1,32], index: 6, kind: input, shape index: {}]   ;;  %s4015_s7 = inlined_call_operand.vmem [shape: f32[1,32], index: 7, kind: input, shape index: {}]   ;;  %s4016_s8 = inlined_call_operand.vmem [shape: f32[32,32], index: 8, kind: input, shape index: {}]   ;;  %s4017_s9 = inlined_call_operand.vmem [shape: f32[1,32], index: 9, kind: input, shape index: {}]   ;;  %s4018_s10 = inlined_call_operand.vmem [shape: f32[32,64], index: 10, kind: input, shape index: {}]   ;;  %s4019_s11 = inlined_call_operand.vmem [shape: f32[1,64], index: 11, kind: input, shape index: {}]   ;;  %s4020_s12 = inlined_call_operand.vmem [shape: f32[32,32], index: 12, kind: input, shape index: {}]   ;;  %s4021_s13 = inlined_call_operand.vmem [shape: f32[1,32], index: 13, kind: input, shape index: {}]   ;;  %s4022_s14 = inlined_call_operand.vmem [shape: f32[1,32], index: 14, kind: input, shape index: {}]   ;;  %s4023_s15 = inlined_call_operand.vmem [shape: f32[1,32], index: 15, kind: input, shape index: {}]   ;;  %s4024_s16 = inlined_call_operand.vmem [shape: f32[32,64], index: 16, kind: input, shape index: {}]   ;;  %s4025_s17 = inlined_call_operand.vmem [shape: f32[1,64], index: 17, kind: input, shape index: {}]   ;;  %s4026_s18 = inlined_call_operand.vmem [shape: f32[64,32], index: 18, kind: input, shape index: {}]   ;;  %s4027_s19 = inlined_call_operand.vmem [shape: f32[1,32], index: 19, kind: input, shape index: {}]   ;;  %s4028_s20 = inlined_call_operand.vmem [shape: f32[1,32], index: 20, kind: input, shape index: {}]   ;;  %s4029_s21 = inlined_call_operand.vmem [shape: f32[1,32], index: 21, kind: input, shape index: {}]   ;;  %s4030_s22 = inlined_call_operand.vmem [shape: f32[1,32], index: 22, kind: input, shape index: {}]   ;;  %s4031_s23 = inlined_call_operand.vmem [shape: f32[1,32], index: 23, kind: input, shape index: {}]   ;;  %s4032_s24 = inlined_call_operand.vmem [shape: f32[32,128], index: 24, kind: input, shape index: {}]   ;;  %s4033_s25 = inlined_call_operand.vmem [shape: f32[1,128], index: 25, kind: input, shape index: {}]   ;;  %s4034_s26 = inlined_call_operand.vmem [shape: f32[2,8,128], index: 26, kind: output, shape index: {}]  }
   0x1   :  { %4050 = sst [smem:[#allocation3_spill]] %s4008_s0 }
   0x2   :  { %4051 = sst [smem:[#allocation4_spill]] %s4009_s1 }
   0x3   :  { %4052 = sst [smem:[#allocation5_spill]] %s4010_s2 }
   0x4   :  { %4053 = sst [smem:[#allocation6_spill]] %s4011_s3 }
   0x5   :  { %4054 = sst [smem:[#allocation7_spill]] %s4012_s4 }
   0x6   :  { %4055 = sst [smem:[#allocation8_spill]] %s4013_s5 }
   0x7   :  { %4056 = sst [smem:[#allocation9_spill]] %s4014_s6 }
   0x8   :  { %4057 = sst [smem:[#allocation10_spill]] %s4015_s7 }
   0x9   :  { %4058 = sst [smem:[#allocation11_spill]] %s4016_s8 }
   0xa   :  { %4059 = sst [smem:[#allocation12_spill]] %s4017_s9 }
   0xb   :  { %4060 = sst [smem:[#allocation13_spill]] %s4018_s10 }
   0xc LB: > { %s3040_s3 = sadd.s32 4294967295, %s3473_s27   ;;  %p3044_p0 = scmp.ge.s32.totalorder %s3473_s27, 1  ;;  %s3473_s27 = sphi %s3621_s27, %s36_s27  }
   0xd   : > { %p720_p1 = scmp.lt.s32.totalorder %s3473_s27, 3 }
   0xf   : > { %p721_p2 = pnand %p3044_p0, %p720_p1 }
  0x10   : > { %s4061_s8 = sld [smem:[#allocation5_spill]] (!%p721_p2)  ;;  %v3475_v3 = vmov (!%p721_p2), 0.0|0.0   ;;  %vm3476_vm0 = vmmov (!%p721_p2), 0   ;;  %v3477_v6 = vmov (!%p721_p2), 0.0   ;;  %p792_p3 = scmp.lt.s32.totalorder (!%p721_p2), %s3040_s3, 1  ;;  %vm857_vm1 = vcmask (!%p721_p2), 261120  }
  0x11   : > { %724 = sbr.rel (%p721_p2) target bundleno = 4878 (0x130e), region = 124  ;;  %3354 = vmatprep.subr.bf16.mxu0 (!%p721_p2), %v3475_v3  ;;  %3186 = vmatprep.mubr.msk.f32.mxu0 (!%p721_p2), %vm3476_vm0, %v3477_v6  ;;  %s4062_s1 = sld [smem:[#allocation3_spill]] (!%p721_p2)  ;;  %vm940_vm2 = vcmask (!%p721_p2), 64512   ;;  %vm1600_vm3 = vcmask (!%p721_p2), 130112   ;;  %vm1606_vm4 = vcmask (!%p721_p2), 195712   ;;  %vm1612_vm5 = vcmask (!%p721_p2), 261312  }
  0x12   : > { %3189 = vmatprep.subr.mxu1 (!%p721_p2), %v3477_v6  ;;  %3191 = vmatprep.mubr.msk.f32.mxu1 (!%p721_p2), %vm3476_vm0, %v3477_v6  ;;  %s4063_s4 = sld [smem:[#allocation6_spill]] (!%p721_p2)  ;;  %s4046_s29 = smov (!%p721_p2), 104   ;;  %vm2195_vm6 = vcmask (!%p721_p2), 48128   ;;  %vm2245_vm7 = vcmask (!%p721_p2), 1045504   ;;  %vm2759_vm8 = vcmask (!%p721_p2), 523264  }
  0x13   : > { %s4048_s0 = smov (!%p721_p2), 120   ;;  %s4039_s9 = smov (!%p721_p2), 96  }
  0x14   : > { %s4044_s30 = smov (!%p721_p2), 112   ;;  %s3482_s2 = smov (!%p721_p2), 64  }
  0x15   : > { %s4043_s10 = smov (!%p721_p2), 8   ;;  %s4042_s6 = smov (!%p721_p2), 16  }
  0x16   : > { %v806_v0 = vld [vmem:[%s4061_s8] sm:$0xff] (!%p721_p2)  ;;  %v807_v1 = vld [vmem:[%s4061_s8 + $0x8] sm:$0xff] (!%p721_p2)  ;;  %v808_v2 = vld [vmem:[%s4061_s8 + $0x10] sm:$0xff] (!%p721_p2)  ;;  %s4068_s28 = sld [smem:[#allocation11_spill]] (!%p721_p2) }
  0x17   : > { %v3355_v4 = vpack.c.bf16 (!%p721_p2), %v807_v1, %v806_v0  ;;  %v809_v5 = vld [vmem:[%s4061_s8 + $0x18] sm:$0xff] (!%p721_p2) }
  0x18   : > { %v3358_v7 = vpack.c.bf16 %v809_v5, %v808_v2  ;;  %s4080_s3 = smov (!%p792_p3, %s3040_s3), 1  ;;  %v3048_v9 = vld [vmem:[%s4063_s4] ss:$0 sm:$0xff]  ;;  %s4071_s4 = smov 120  }
  0x19   : > { %3356 = vmatpush3.bf16.msra.mxu0 %v3355_v4  ;;  %s3648_s5 = sshll.u32 %s4080_s3, 3  ;;  %s4065_s3 = sld [smem:[#allocation8_spill]] }
  0x1a   : > { %3357 = vmatprep.subr.bf16.mxu0 %v3475_v3  ;;  %s795_s7 = scalar_lea.vmem %s4062_s1, %s3648_s5  ;;  %s4064_s1 = sld [smem:[#allocation7_spill]] }
  0x1b   : > { %v3654_v8 = vld [vmem:[%s795_s7] sm:$0xff]  ;;  %s4066_s7 = sld [smem:[#allocation13_spill]] }
  0x1d   : > { %3359 = vmatpush3.bf16.msra.mxu0 %v3358_v7 }
  0x1e   : > { %3209 = vmatprep.subr.mxu0 %v3477_v6 }
  0x20   : > { %3187 = vmatmul.mubr.msk.f32.vlgmr.msra.gmra.mrb[0].mxu0 %vm857_vm1, %v3654_v8 }
  0x21   : > { %3211 = vmatprep.mubr.msk.f32.mxu0 %vm3476_vm0, %v3477_v6 }
  0xf3   : > { %v927_v10 = vpop.f32.mrb[0].mxu0 }
  0xf4   : > { %v928_v11 = vadd.f32 %v3048_v9, %v927_v10  ;;  %v3188_v12 = vpop.f32.mrb[1].mxu0 }
  0xf6   : > { %936 = vrot.lane.b32.xlu1 %v928_v11, %s4046_s29  ;;  %932 = vrot.lane.b32.xlu0 %v928_v11, %s4048_s0  ;;  %s4067_s29 = sld [smem:[#allocation4_spill]] }
  0xfa   : > { %938 = vrot.lane.b32.xlu1 %v928_v11, %s4039_s9  ;;  %934 = vrot.lane.b32.xlu0 %v928_v11, %s4044_s30 }
  0xfc   : > { %s799_s0 = scalar_lea.vmem %s4067_s29, %s3648_s5  ;;  %s4070_s29 = sld [smem:[#allocation10_spill]] }
 0x168   : > { %v3668_v13 = vpop.permute.xlu1 %936  ;;  %v933_v14 = vpop.permute.xlu0 %932 }
 0x169   : > { %1015 = vrot.lane.b32.xlu0 %v933_v14, %s4039_s9 }
 0x16c   : > { %v939_v15 = vpop.permute.xlu1 %938  ;;  %v3671_v16 = vpop.permute.xlu0 %934 }
 0x16d   : > { %3190 = vmatpush3.xpose.msk.msra.mxu1 %vm940_vm2, %v939_v15  ;;  %1167 = vrot.lane.b32.xlu0 %v3668_v13, %s4039_s9 }
 0x16e   : > { %1091 = vrot.lane.b32.xlu1 %v3671_v16, %s4039_s9  ;;  %3194 = vmatprep.subr.mxu1 %v3477_v6  ;;  %s4041_s9 = smov 24  }
 0x170   : > { %3192 = vmatmul.mubr.msk.f32.vlgmr.msra.gmra.mrb[0].mxu1 %vm940_vm2, %v928_v11 }
 0x171   : > { %3196 = vmatprep.mubr.msk.f32.mxu1 %vm3476_vm0, %v3477_v6 }
 0x1db   : > { %v1016_v17 = vpop.permute.xlu0 %1015 }
 0x1dc   : > { %3195 = vmatpush3.xpose.msk.msra.mxu1 %vm940_vm2, %v1016_v17  ;;  %v814_v17 = vld [vmem:[%s4064_s1 + $0x18] sm:$0xff] }
 0x1dd   : > { %3199 = vmatprep.subr.mxu1 %v3477_v6 }
 0x1df   : > { %3197 = vmatmul.mubr.msk.f32.vlgmr.msra.gmra.mrb[2].mxu1 %vm940_vm2, %v933_v14  ;;  %v1168_v19 = vpop.permute.xlu0 %1167 }
 0x1e0   : > { %v1092_v18 = vpop.permute.xlu1 %1091  ;;  %3201 = vmatprep.mubr.msk.f32.mxu1 %vm3476_vm0, %v3477_v6 }
 0x1e1   : > { %3200 = vmatpush3.xpose.msk.msra.mxu1 %vm940_vm2, %v1092_v18 }
 0x1e2   : > { %3204 = vmatprep.subr.mxu1 %v3477_v6 }
 0x1e4   : > { %3202 = vmatmul.mubr.msk.f32.vlgmr.msra.gmra.mrb[4].mxu1 %vm940_vm2, %v3671_v16 }
 0x1e5   : > { %3205 = vmatpush3.xpose.msk.msra.mxu1 %vm940_vm2, %v1168_v19  ;;  %3206 = vmatprep.mubr.msk.f32.mxu1 %vm3476_vm0, %v3477_v6 }
 0x1e6   : > { %3214 = vmatprep.subr.mxu1 %v3477_v6 }
 0x1e8   : > { %3207 = vmatmul.mubr.msk.f32.vlgmr.msra.gmra.mrb[6].mxu1 %vm940_vm2, %v3668_v13 }
 0x1e9   : > { %3216 = vmatprep.mubr.msk.f32.mxu1 %vm3476_vm0, %v3477_v6 }
 0x243   : > { %v1011_v20 = vpop.f32.mrb[0].mxu1 }
 0x244   : > { %v1243_v21 = vmul.f32 0.35355338, %v1011_v20  ;;  %v3193_v22 = vpop.f32.mrb[1].mxu1 }
 0x246   : > { %v1247_v23 = vsel %vm940_vm2, %v1243_v21, -inf }
 0x247   : > { %1248 = vmax.xlane.f32.xlu1 %v1247_v23 }
 0x2b2   : > { %v1087_v24 = vpop.f32.mrb[2].mxu1 }
 0x2b3   : > { %v1244_v25 = vmul.f32 0.35355338, %v1087_v24  ;;  %v3198_v26 = vpop.f32.mrb[3].mxu1 }
 0x2b5   : > { %v1250_v27 = vsel %vm940_vm2, %v1244_v25, -inf }
 0x2b6   : > { %1251 = vmax.xlane.f32.xlu0 %v1250_v27 }
 0x2b7   : > { %v1163_v28 = vpop.f32.mrb[4].mxu1 }
 0x2b8   : > { %v1245_v29 = vmul.f32 0.35355338, %v1163_v28  ;;  %v3203_v30 = vpop.f32.mrb[5].mxu1 }
 0x2ba   : > { %v1253_v31 = vsel %vm940_vm2, %v1245_v29, -inf }
 0x2bb   : > { %1254 = vmax.xlane.f32.xlu0 %v1253_v31  ;;  %v1239_v32 = vpop.f32.mrb[6].mxu1 }
 0x2bc   : > { %v1246_v33 = vmul.f32 0.35355338, %v1239_v32  ;;  %v3208_v34 = vpop.f32.mrb[7].mxu1 }
 0x2be   : > { %v1256_v35 = vsel %vm940_vm2, %v1246_v33, -inf }
 0x2bf   : > { %1257 = vmax.xlane.f32.xlu1 %v1256_v35 }
 0x2d0   : > { %1367 = vrot.lane.b32.xlu1 %v933_v14, %s3482_s2  ;;  %v812_v14 = vld [vmem:[%s4064_s1 + $0x8] sm:$0xff] }
 0x2d1   : > { %1291 = vrot.lane.b32.xlu0 %v928_v11, %s3482_s2 }
 0x2d4   : > { %v1249_v36 = vpop.xlane.xlu1 %1248 }
 0x2d5   : > { %v1259_v37 = vsub.f32 %v1243_v21, %v1249_v36 }
 0x2d7   : > { %v1263_v38 = vmul.f32 1.442695, %v1259_v37 }
 0x2d9   : > { %3427 = vpow2.f32 %v1263_v38 }
 0x2e3   : > { %v3428_v39 = vpop.eup %3427 }
 0x2e4   : > { %v1271_v40 = vsel %vm940_vm2, %v3428_v39, 0.0 }
 0x2f0   : > { %1272 = vadd.xlane.f32.xlu0 %v1271_v40  ;;  %v823_v40 = vld [vmem:[%s4066_s7] sm:$0xff] }
 0x343   : > { %v1252_v41 = vpop.xlane.xlu0 %1251 }
 0x344   : > { %v1260_v42 = vsub.f32 %v1244_v25, %v1252_v41  ;;  %v824_v41 = vld [vmem:[%s4066_s7 + $0x8] sm:$0xff] }
 0x346   : > { %v1265_v43 = vmul.f32 1.442695, %v1260_v42  ;;  %v825_v42 = vld [vmem:[%s4066_s7 + $0x10] sm:$0xff] }
 0x348   : > { %3429 = vpow2.f32 %v1265_v43  ;;  %v1255_v44 = vpop.xlane.xlu0 %1254  ;;  %v826_v43 = vld [vmem:[%s4066_s7 + $0x18] sm:$0xff] }
 0x349   : > { %v1261_v45 = vsub.f32 %v1245_v29, %v1255_v44  ;;  %v3062_v29 = vld [vmem:[%s4065_s3] ss:$0 sm:$0xff]  ;;  %v3376_v44 = vpack.c.bf16 %v826_v43, %v825_v42  ;;  %s4077_s3 = smov 16  }
 0x34b   : > { %v1267_v46 = vmul.f32 1.442695, %v1261_v45  ;;  %v805_v45 = vld [vmem:[%s799_s0] sm:$0x3f]  ;;  %s4078_s0 = smov 24  }
 0x34c   : > { %v1258_v47 = vpop.xlane.xlu1 %1257  ;;  %v1292_v48 = vpop.permute.xlu0 %1291 }
 0x34d   : > { %3431 = vpow2.f32 %v1267_v46  ;;  %v1262_v49 = vsub.f32 %v1246_v33, %v1258_v47  ;;  %3210 = vmatpush3.msra.mxu0 %v1292_v48  ;;  %v818_v46 = vld [vmem:[%s4068_s28] sm:$0xff]  ;;  %v819_v47 = vld [vmem:[%s4068_s28 + $0x8] sm:$0xff] }
 0x34e   : > { %3219 = vmatprep.subr.mxu0 %v3477_v6  ;;  %v3367_v48 = vpack.c.bf16 %v819_v47, %v818_v46 }
 0x34f   : > { %v1269_v50 = vmul.f32 1.442695, %v1262_v49  ;;  %v820_v49 = vld [vmem:[%s4068_s28 + $0x10] sm:$0xff] }
 0x350   : > { %v1368_v51 = vpop.permute.xlu1 %1367 }
 0x351   : > { %3433 = vpow2.f32 %v1269_v50  ;;  %3215 = vmatpush3.msra.mxu1 %v1368_v51  ;;  %v821_v50 = vld [vmem:[%s4068_s28 + $0x18] sm:$0xff] }
 0x352   : > { %v3430_v52 = vpop.eup %3429  ;;  %3224 = vmatprep.subr.mxu1 %v3477_v6  ;;  %v3370_v51 = vpack.c.bf16 %v821_v50, %v820_v49 }
 0x353   : > { %v1274_v53 = vsel %vm940_vm2, %v3430_v52, 0.0 }
 0x354   : > { %1275 = vadd.xlane.f32.xlu1 %v1274_v53 }
 0x357   : > { %v3432_v54 = vpop.eup %3431 }
 0x358   : > { %v1277_v55 = vsel %vm940_vm2, %v3432_v54, 0.0 }
 0x359   : > { %1278 = vadd.xlane.f32.xlu0 %v1277_v55 }
 0x35b   : > { %v3434_v56 = vpop.eup %3433 }
 0x35c   : > { %v1280_v57 = vsel %vm940_vm2, %v3434_v56, 0.0 }
 0x35d   : > { %1281 = vadd.xlane.f32.xlu1 %v1280_v57 }
 0x36e   : > { %1443 = vrot.lane.b32.xlu1 %v3671_v16, %s3482_s2  ;;  %v813_v16 = vld [vmem:[%s4064_s1 + $0x10] sm:$0xff] }
 0x36f   : > { %1519 = vrot.lane.b32.xlu0 %v3668_v13, %s3482_s2  ;;  %v811_v13 = vld [vmem:[%s4064_s1] sm:$0xff]  ;;  %v3364_v18 = vpack.c.bf16 %v814_v17, %v813_v16  ;;  %s4072_s2 = smov 104  }
 0x370   : > { %v3361_v15 = vpack.c.bf16 %v812_v14, %v811_v13 }
 0x37d   : > { %v1273_v58 = vpop.xlane.xlu0 %1272 }
 0x37e   : > { %3435 = vrcp.f32 %v1273_v58  ;;  %v3065_v58 = vld [vmem:[%s4070_s29] ss:$0 sm:$0xff]  ;;  %s4075_s29 = smov 96  }
 0x388   : > { %v3436_v59 = vpop.eup %3435 }
 0x389   : > { %v1284_v60 = vmul.f32 %v3436_v59, %v3428_v39 }
 0x38b   : > { %3212 = vmatmul.mubr.msk.f32.vlgmr.msra.gmra.mrb[2].mxu0 %vm940_vm2, %v1284_v60 }
 0x38c   : > { %3221 = vmatprep.mubr.msk.f32.mxu0 %vm3476_vm0, %v3477_v6 }
 0x3e1   : > { %v1276_v61 = vpop.xlane.xlu1 %1275 }
 0x3e2   : > { %3437 = vrcp.f32 %v1276_v61  ;;  %v3068_v61 = vld [vmem:[%s4019_s11] ss:$0 sm:$0xff] }
 0x3e6   : > { %v1279_v62 = vpop.xlane.xlu0 %1278 }
 0x3e7   : > { %3439 = vrcp.f32 %v1279_v62 }
 0x3ea   : > { %v1282_v63 = vpop.xlane.xlu1 %1281  ;;  %v1520_v4 = vpop.permute.xlu0 %1519 }
 0x3eb   : > { %3441 = vrcp.f32 %v1282_v63 }
 0x3ec   : > { %v3438_v0 = vpop.eup %3437 }
 0x3ed   : > { %v1286_v1 = vmul.f32 %v3438_v0, %v3430_v52 }
 0x3ee   : > { %v1444_v2 = vpop.permute.xlu1 %1443 }
 0x3ef   : > { %3220 = vmatpush3.msra.mxu0 %v1444_v2  ;;  %3217 = vmatmul.mubr.msk.f32.vlgmr.msra.gmra.mrb[8].mxu1 %vm940_vm2, %v1286_v1 }
 0x3f0   : > { %3225 = vmatpush3.msra.mxu1 %v1520_v4  ;;  %3226 = vmatprep.mubr.msk.f32.mxu1 %vm3476_vm0, %v3477_v6 }
 0x3f1   : > { %v3440_v5 = vpop.eup %3439  ;;  %3360 = vmatprep.subr.bf16.mxu0 %v3475_v3  ;;  %3366 = vmatprep.subr.bf16.mxu1 %v3475_v3 }
 0x3f2   : > { %v1288_v7 = vmul.f32 %v3440_v5, %v3432_v54 }
 0x3f4   : > { %3222 = vmatmul.mubr.msk.f32.vlgmr.msra.gmra.mrb[4].mxu0 %vm940_vm2, %v1288_v7 }
 0x3f5   : > { %v3442_v9 = vpop.eup %3441  ;;  %3237 = vmatprep.mubr.msk.f32.mxu0 %vm3476_vm0, %v3477_v6  ;;  %3362 = vmatpush3.bf16.msra.mxu0 %v3361_v15 }
 0x3f6   : > { %v1290_v10 = vmul.f32 %v3442_v9, %v3434_v56  ;;  %3363 = vmatprep.subr.bf16.mxu0 %v3475_v3 }
 0x3f8   : > { %3227 = vmatmul.mubr.msk.f32.vlgmr.msra.gmra.mrb[10].mxu1 %vm940_vm2, %v1290_v10 }
 0x3f9   : > { %3248 = vmatprep.mubr.msk.f32.mxu1 %vm3476_vm0, %v3477_v6  ;;  %3365 = vmatpush3.bf16.msra.mxu0 %v3364_v18 }
 0x3fa   : > { %3372 = vmatprep.subr.bf16.mxu0 %v3475_v3  ;;  %3368 = vmatpush3.bf16.msra.mxu1 %v3367_v48 }
 0x3fb   : > { %3369 = vmatprep.subr.bf16.mxu1 %v3475_v3 }
 0x3fe   : > { %3371 = vmatpush3.bf16.msra.mxu1 %v3370_v51 }
 0x3ff   : > { %3262 = vmatprep.subr.mxu1 %v3477_v6 }
 0x45e   : > { %v1363_v11 = vpop.f32.mrb[2].mxu0 }
 0x45f   : > { %1595 = vst.msk [vmem:[#allocation2] sm:$0xff] %vm940_vm2, %v1363_v11  ;;  %v3213_v12 = vpop.f32.mrb[3].mxu0 }
 0x4c2   : > { %v1439_v19 = vpop.f32.mrb[8].mxu1 }
 0x4c3   : > { %1597 = vrot.lane.b32.xlu1 %v1439_v19, %s4043_s10  ;;  %v3218_v20 = vpop.f32.mrb[9].mxu1  ;;  %s4074_s10 = sld [smem:[#allocation12_spill]] }
 0x4c7   : > { %v1515_v21 = vpop.f32.mrb[4].mxu0 }
 0x4c8   : > { %1603 = vrot.lane.b32.xlu0 %v1515_v21, %s4042_s6  ;;  %v3223_v22 = vpop.f32.mrb[5].mxu0  ;;  %s4073_s6 = smov 112  }
 0x4c9   : > { %v3066_v4 = vld [vmem:[%s4074_s10] ss:$0 sm:$0xff] }
 0x4cb   : > { %v1591_v23 = vpop.f32.mrb[10].mxu1 }
 0x4cc   : > { %1609 = vrot.lane.b32.xlu1 %v1591_v23, %s4041_s9  ;;  %v3228_v24 = vpop.f32.mrb[11].mxu1  ;;  %s4069_s9 = sld [smem:[#allocation9_spill]] }
 0x4d2   : > { %v3064_v56 = vld [vmem:[%s4069_s9] ss:$0 sm:$0xff] }
 0x535   : > { %v1598_v25 = vpop.permute.xlu1 %1597 }
 0x536   : > { %1601 = vst.msk [vmem:[#allocation2] sm:$0xff] %vm1600_vm3, %v1598_v25 }
 0x53a   : > { %v1604_v26 = vpop.permute.xlu0 %1603 }
 0x53b   : > { %1607 = vst.msk [vmem:[#allocation2] sm:$0xff] %vm1606_vm4, %v1604_v26 }
 0x53e   : > { %v1610_v27 = vpop.permute.xlu1 %1609 }
 0x53f   : > { %1613 = vst.msk [vmem:[#allocation2] sm:$0xff] %vm1612_vm5, %v1610_v27 }
 0x546   : > { %v1614_v28 = vld [vmem:[#allocation2] sm:$0xff] }
 0x547   : > { %3238 = vmatmul.mubr.msk.f32.vlgmr.msra.gmra.mrb[6].mxu0 %vm857_vm1, %v1614_v28 }
 0x548   : > { %3259 = vmatprep.mubr.msk.f32.mxu0 %vm3476_vm0, %v3477_v6 }
 0x61a   : > { %v1690_v30 = vpop.f32.mrb[6].mxu0 }
 0x61b   : > { %v1691_v31 = vadd.f32 %v3062_v29, %v1690_v30  ;;  %v3239_v32 = vpop.f32.mrb[7].mxu0 }
 0x61d   : > { %v1694_v33 = vadd.f32 %v1691_v31, %v3654_v8  ;;  %v3373_v8 = vpack.c.bf16 %v824_v41, %v823_v40 }
 0x61f   : > { %v1695_v34 = vsel %vm857_vm1, %v1694_v33, 0.0  ;;  %3374 = vmatpush3.bf16.msra.mxu0 %v3373_v8 }
 0x620   : > { %1696 = vadd.xlane.f32.xlu0 %v1695_v34  ;;  %3375 = vmatprep.subr.bf16.mxu0 %v3475_v3 }
 0x623   : > { %3377 = vmatpush3.bf16.msra.mxu0 %v3376_v44 }
 0x624   : > { %3272 = vmatprep.subr.mxu0 %v3477_v6 }
 0x626   : > { %3260 = vmatmul.mubr.msk.f32.vlgmr.msra.gmra.mrb[8].mxu0 %vm857_vm1, %v805_v45 }
 0x627   : > { %3274 = vmatprep.mubr.msk.f32.mxu0 %vm3476_vm0, %v3477_v6 }
 0x6ad   : > { %v1697_v35 = vpop.xlane.xlu0 %1696 }
 0x6ae   : > { %v1699_v36 = vmul.f32 0.03125, %v1697_v35 }
 0x6b0   : > { %v1700_v37 = vsub.f32 %v1694_v33, %v1699_v36 }
 0x6b2   : > { %v1701_v38 = vmul.f32 %v1700_v37, %v1700_v37 }
 0x6b4   : > { %v1702_v39 = vsel %vm857_vm1, %v1701_v38, 0.0 }
 0x6b5   : > { %1703 = vadd.xlane.f32.xlu1 %v1702_v39 }
 0x6f9   : > { %v1877_v62 = vpop.f32.mrb[8].mxu0 }
 0x6fa   : > { %v1878_v63 = vadd.f32 %v3068_v61, %v1877_v62  ;;  %v3261_v0 = vpop.f32.mrb[9].mxu0 }
 0x6fc   : > { %1889 = vrot.lane.b32.xlu0 %v1878_v63, %s4071_s4  ;;  %1893 = vrot.lane.b32.xlu1 %v1878_v63, %s4072_s2 }
 0x700   : > { %1891 = vrot.lane.b32.xlu0 %v1878_v63, %s4073_s6 }
 0x742   : > { %v1704_v52 = vpop.xlane.xlu1 %1703 }
 0x743   : > { %v1705_v53 = vmul.f32 0.03125, %v1704_v52 }
 0x745   : > { %v1706_v54 = vadd.f32 1e-05, %v1705_v53 }
 0x747   : > { %3443 = vrsqrt.f32 %v1706_v54 }
 0x751   : > { %v3444_v55 = vpop.eup %3443 }
 0x752   : > { %v1708_v57 = vmul.f32 %v3444_v55, %v1700_v37 }
 0x754   : > { %v1715_v59 = vmul.f32 %v3064_v56, %v1708_v57 }
 0x756   : > { %v3800_v60 = vadd.f32 %v3065_v58, %v1715_v59 }
 0x758   : > { %3249 = vmatmul.mubr.msk.f32.vlgmr.msra.gmra.mrb[12].mxu1 %vm857_vm1, %v3800_v60 }
 0x759   : > { %3264 = vmatprep.mubr.msk.f32.mxu1 %vm3476_vm0, %v3477_v6  ;;  %3263 = vmatpush3.xpose.msk.msra.mxu1 %vm940_vm2, %v1878_v63 }
 0x75a   : > { %3267 = vmatprep.subr.mxu1 %v3477_v6 }
 0x76e   : > { %v3814_v1 = vpop.permute.xlu0 %1889  ;;  %v3833_v10 = vpop.permute.xlu1 %1893 }
 0x772   : > { %v3816_v2 = vpop.permute.xlu0 %1891 }
 0x773   : > { %3273 = vmatpush3.xpose.msk.msra.mxu0 %vm940_vm2, %v3816_v2 }
 0x774   : > { %3282 = vmatprep.subr.mxu0 %v3477_v6 }
 0x82b   : > { %v1798_v5 = vpop.f32.mrb[12].mxu1 }
 0x82c   : > { %v1799_v7 = vadd.f32 %v3066_v4, %v1798_v5  ;;  %v3250_v9 = vpop.f32.mrb[13].mxu1  ;;  %v828_v5 = vld [vmem:[%s4020_s12] sm:$0xff] }
 0x82e   : > { %1882 = vrot.lane.b32.xlu1 %v1799_v7, %s4071_s4  ;;  %1884 = vrot.lane.b32.xlu0 %v1799_v7, %s4073_s6  ;;  %s803_s4 = scalar_lea.vmem %s4034_s26, %s3648_s5 }
 0x82f   : > { %3265 = vmatmul.mubr.msk.f32.vlgmr.msra.gmra.mrb[14].mxu1 %vm940_vm2, %v1799_v7 }
 0x830   : > { %3268 = vmatpush3.xpose.msk.msra.mxu1 %vm940_vm2, %v3814_v1  ;;  %3269 = vmatprep.mubr.msk.f32.mxu1 %vm3476_vm0, %v3477_v6 }
 0x831   : > { %3277 = vmatprep.subr.mxu1 %v3477_v6 }
 0x832   : > { %1886 = vrot.lane.b32.xlu1 %v1799_v7, %s4072_s2  ;;  %v829_v7 = vld [vmem:[%s4020_s12 + $0x8] sm:$0xff] }
 0x833   : > { %v3379_v9 = vpack.c.bf16 %v829_v7, %v828_v5 }
 0x8a0   : > { %v1883_v11 = vpop.permute.xlu1 %1882  ;;  %v1885_v12 = vpop.permute.xlu0 %1884 }
 0x8a1   : > { %3270 = vmatmul.mubr.msk.f32.vlgmr.msra.gmra.mrb[16].mxu1 %vm940_vm2, %v1883_v11  ;;  %3275 = vmatmul.mubr.msk.f32.vlgmr.msra.gmra.mrb[10].mxu0 %vm940_vm2, %v1885_v12  ;;  %v831_v11 = vld [vmem:[%s4020_s12 + $0x18] sm:$0xff] }
 0x8a2   : > { %3278 = vmatpush3.xpose.msk.msra.mxu1 %vm940_vm2, %v3833_v10  ;;  %3279 = vmatprep.mubr.msk.f32.mxu1 %vm3476_vm0, %v3477_v6 }
 0x8a3   : > { %3284 = vmatprep.mubr.msk.f32.mxu0 %vm3476_vm0, %v3477_v6  ;;  %3287 = vmatprep.subr.mxu1 %v3477_v6 }
 0x8a4   : > { %v1887_v13 = vpop.permute.xlu1 %1886 }
 0x8a5   : > { %3280 = vmatmul.mubr.msk.f32.vlgmr.msra.gmra.mrb[18].mxu1 %vm940_vm2, %v1887_v13 }
 0x8a6   : > { %3289 = vmatprep.mubr.msk.f32.mxu1 %vm3476_vm0, %v3477_v6 }
 0x902   : > { %v1965_v14 = vpop.f32.mrb[14].mxu1 }
 0x903   : > { %v2191_v15 = vmul.f32 0.35355338, %v1965_v14  ;;  %v3266_v16 = vpop.f32.mrb[15].mxu1 }
 0x905   : > { %v2196_v17 = vsel %vm2195_vm6, %v2191_v15, -inf }
 0x906   : > { %2197 = vmax.xlane.f32.xlu0 %v2196_v17 }
 0x974   : > { %v2039_v18 = vpop.f32.mrb[16].mxu1  ;;  %v2113_v19 = vpop.f32.mrb[10].mxu0 }
 0x975   : > { %v2192_v20 = vmul.f32 0.35355338, %v2039_v18  ;;  %v2193_v21 = vmul.f32 0.35355338, %v2113_v19  ;;  %v3271_v22 = vpop.f32.mrb[17].mxu1  ;;  %v3276_v23 = vpop.f32.mrb[11].mxu0 }
 0x976   : > { %v3086_v23 = vld [vmem:[%s4021_s13] ss:$0 sm:$0xff] }
 0x977   : > { %v2199_v24 = vsel %vm2195_vm6, %v2192_v20, -inf  ;;  %v2202_v25 = vsel %vm2195_vm6, %v2193_v21, -inf }
 0x978   : > { %2200 = vmax.xlane.f32.xlu1 %v2199_v24  ;;  %v2187_v26 = vpop.f32.mrb[18].mxu1  ;;  %2203 = vmax.xlane.f32.xlu0 %v2202_v25 }
 0x979   : > { %v2194_v27 = vmul.f32 0.35355338, %v2187_v26  ;;  %v3281_v28 = vpop.f32.mrb[19].mxu1 }
 0x97b   : > { %v2205_v29 = vsel %vm2195_vm6, %v2194_v27, -inf }
 0x97c   : > { %2206 = vmax.xlane.f32.xlu0 %v2205_v29 }
 0x989   : > { %2240 = vrot.lane.b32.xlu1 %v1878_v63, %s4075_s29 }
 0x993   : > { %v2198_v30 = vpop.xlane.xlu0 %2197 }
 0x994   : > { %v2208_v31 = vsub.f32 %v2191_v15, %v2198_v30 }
 0x996   : > { %v2212_v32 = vmul.f32 1.442695, %v2208_v31 }
 0x998   : > { %3445 = vpow2.f32 %v2212_v32 }
 0x9a2   : > { %v3446_v33 = vpop.eup %3445 }
 0x9a3   : > { %v2220_v34 = vsel %vm2195_vm6, %v3446_v33, 0.0 }
 0x9ad   : > { %2221 = vadd.xlane.f32.xlu1 %v2220_v34  ;;  %v835_v34 = vld [vmem:[%s4024_s16] sm:$0xff] }
 0xa05   : > { %v2201_v35 = vpop.xlane.xlu1 %2200  ;;  %v2204_v36 = vpop.xlane.xlu0 %2203 }
 0xa06   : > { %v2209_v37 = vsub.f32 %v2192_v20, %v2201_v35  ;;  %v2210_v38 = vsub.f32 %v2193_v21, %v2204_v36  ;;  %v836_v35 = vld [vmem:[%s4024_s16 + $0x8] sm:$0xff] }
 0xa07   : > { %v3385_v36 = vpack.c.bf16 %v836_v35, %v835_v34 }
 0xa08   : > { %v2214_v39 = vmul.f32 1.442695, %v2209_v37  ;;  %v2216_v40 = vmul.f32 1.442695, %v2210_v38  ;;  %v838_v37 = vld [vmem:[%s4024_s16 + $0x18] sm:$0xff] }
 0xa09   : > { %v2241_v41 = vpop.permute.xlu1 %2240  ;;  %v2207_v8 = vpop.xlane.xlu0 %2206 }
 0xa0a   : > { %3447 = vpow2.f32 %v2214_v39  ;;  %v2211_v42 = vsub.f32 %v2194_v27, %v2207_v8  ;;  %3283 = vmatpush3.msk.msra.mxu0 %vm2245_vm7, %v2241_v41  ;;  %v840_v39 = vld [vmem:[%s4026_s18] sm:$0xff]  ;;  %v842_v41 = vld [vmem:[%s4026_s18 + $0x10] sm:$0xff] }
 0xa0b   : > { %3449 = vpow2.f32 %v2216_v40  ;;  %3292 = vmatprep.subr.mxu0 %v3477_v6  ;;  %v841_v40 = vld [vmem:[%s4026_s18 + $0x8] sm:$0xff] }
 0xa0c   : > { %v2218_v43 = vmul.f32 1.442695, %v2211_v42  ;;  %v3391_v8 = vpack.c.bf16 %v841_v40, %v840_v39  ;;  %v843_v42 = vld [vmem:[%s4026_s18 + $0x18] sm:$0xff]  ;;  %v3097_v39 = vld [vmem:[%s4031_s23] ss:$0 sm:$0xff] }
 0xa0e   : > { %3451 = vpow2.f32 %v2218_v43  ;;  %v3394_v43 = vpack.c.bf16 %v843_v42, %v842_v41 }
 0xa14   : > { %v3448_v44 = vpop.eup %3447 }
 0xa15   : > { %v3450_v45 = vpop.eup %3449  ;;  %v2223_v46 = vsel %vm2195_vm6, %v3448_v44, 0.0 }
 0xa16   : > { %2224 = vadd.xlane.f32.xlu0 %v2223_v46  ;;  %v2226_v47 = vsel %vm2195_vm6, %v3450_v45, 0.0 }
 0xa17   : > { %2227 = vadd.xlane.f32.xlu1 %v2226_v47 }
 0xa18   : > { %v3452_v48 = vpop.eup %3451 }
 0xa19   : > { %v2229_v49 = vsel %vm2195_vm6, %v3452_v48, 0.0 }
 0xa1a   : > { %2230 = vadd.xlane.f32.xlu0 %v2229_v49 }
 0xa28   : > { %2395 = vrot.lane.b32.xlu1 %v3816_v2, %s4075_s29 }
 0xa2c   : > { %2472 = vrot.lane.b32.xlu1 %v3833_v10, %s4075_s29  ;;  %v830_v10 = vld [vmem:[%s4020_s12 + $0x10] sm:$0xff] }
 0xa2d   : > { %v3382_v12 = vpack.c.bf16 %v831_v11, %v830_v10 }
 0xa30   : > { %2318 = vrot.lane.b32.xlu0 %v3814_v1, %s4075_s29  ;;  %s4076_s29 = smov 8  }
 0xa3a   : > { %v2222_v50 = vpop.xlane.xlu1 %2221 }
 0xa3b   : > { %3453 = vrcp.f32 %v2222_v50 }
 0xa45   : > { %v3454_v51 = vpop.eup %3453 }
 0xa46   : > { %v2233_v52 = vmul.f32 %v3454_v51, %v3446_v33  ;;  %v3088_v51 = vld [vmem:[%s4022_s14] ss:$0 sm:$0xff] }
 0xa48   : > { %3285 = vmatmul.mubr.msk.f32.vlgmr.msra.gmra.mrb[12].mxu0 %vm2195_vm6, %v2233_v52 }
 0xa49   : > { %3294 = vmatprep.mubr.msk.f32.mxu0 %vm3476_vm0, %v3477_v6 }
 0xaa3   : > { %v2225_v53 = vpop.xlane.xlu0 %2224 }
 0xaa4   : > { %v2228_v54 = vpop.xlane.xlu1 %2227  ;;  %3455 = vrcp.f32 %v2225_v53  ;;  %v3089_v53 = vld [vmem:[%s4023_s15] ss:$0 sm:$0xff] }
 0xaa5   : > { %3457 = vrcp.f32 %v2228_v54 }
 0xaa7   : > { %v2231_v55 = vpop.xlane.xlu0 %2230 }
 0xaa8   : > { %v2396_v56 = vpop.permute.xlu1 %2395  ;;  %3459 = vrcp.f32 %v2231_v55 }
 0xaa9   : > { %3293 = vmatpush3.msk.msra.mxu0 %vm2245_vm7, %v2396_v56  ;;  %v846_v56 = vld [vmem:[%s4026_s18 + $0x30] sm:$0xff] }
 0xaaa   : > { %3378 = vmatprep.subr.bf16.mxu0 %v3475_v3 }
 0xaab   : > { %v2319_v57 = vpop.permute.xlu0 %2318 }
 0xaac   : > { %3288 = vmatpush3.msk.msra.mxu1 %vm2245_vm7, %v2319_v57  ;;  %v2473_v63 = vpop.permute.xlu1 %2472  ;;  %v847_v57 = vld [vmem:[%s4026_s18 + $0x38] sm:$0xff] }
 0xaad   : > { %3297 = vmatprep.subr.mxu1 %v3477_v6 }
 0xaae   : > { %v3456_v58 = vpop.eup %3455 }
 0xaaf   : > { %v3458_v59 = vpop.eup %3457  ;;  %v2235_v61 = vmul.f32 %v3456_v58, %v3448_v44  ;;  %v844_v44 = vld [vmem:[%s4026_s18 + $0x20] sm:$0xff]  ;;  %v3400_v58 = vpack.c.bf16 %v847_v57, %v846_v56 }
 0xab0   : > { %v2237_v62 = vmul.f32 %v3458_v59, %v3450_v45  ;;  %v845_v45 = vld [vmem:[%s4026_s18 + $0x28] sm:$0xff]  ;;  %v3090_v59 = vld [vmem:[%s4025_s17] ss:$0 sm:$0xff] }
 0xab1   : > { %3290 = vmatmul.mubr.msk.f32.vlgmr.msra.gmra.mrb[20].mxu1 %vm2195_vm6, %v2235_v61  ;;  %v3397_v46 = vpack.c.bf16 %v845_v45, %v844_v44 }
 0xab2   : > { %v3460_v0 = vpop.eup %3459  ;;  %3295 = vmatmul.mubr.msk.f32.vlgmr.msra.gmra.mrb[14].mxu0 %vm2195_vm6, %v2237_v62  ;;  %3298 = vmatpush3.msk.msra.mxu1 %vm2245_vm7, %v2473_v63 }
 0xab3   : > { %v2239_v1 = vmul.f32 %v3460_v0, %v3452_v48  ;;  %3299 = vmatprep.mubr.msk.f32.mxu1 %vm3476_vm0, %v3477_v6  ;;  %3310 = vmatprep.mubr.msk.f32.mxu0 %vm3476_vm0, %v3477_v6 }
 0xab4   : > { %3384 = vmatprep.subr.bf16.mxu1 %v3475_v3  ;;  %3380 = vmatpush3.bf16.msra.mxu0 %v3379_v9 }
 0xab5   : > { %3300 = vmatmul.mubr.msk.f32.vlgmr.msra.gmra.mrb[22].mxu1 %vm2195_vm6, %v2239_v1  ;;  %3381 = vmatprep.subr.bf16.mxu0 %v3475_v3 }
 0xab6   : > { %3321 = vmatprep.mubr.msk.f32.mxu1 %vm3476_vm0, %v3477_v6  ;;  %3386 = vmatpush3.bf16.msra.mxu1 %v3385_v36 }
 0xab7   : > { %3387 = vmatprep.subr.bf16.mxu1 %v3475_v3 }
 0xab8   : > { %3383 = vmatpush3.bf16.msra.mxu0 %v3382_v12 }
 0xab9   : > { %3390 = vmatprep.subr.bf16.mxu0 %v3475_v3 }
 0xb1b   : > { %v2314_v2 = vpop.f32.mrb[12].mxu0 }
 0xb1c   : > { %2549 = vst.msk [vmem:[#allocation2] sm:$0xff] %vm940_vm2, %v2314_v2  ;;  %v3286_v4 = vpop.f32.mrb[13].mxu0 }
 0xb84   : > { %v2391_v13 = vpop.f32.mrb[20].mxu1 }
 0xb85   : > { %v2468_v14 = vpop.f32.mrb[14].mxu0  ;;  %2551 = vrot.lane.b32.xlu0 %v2391_v13, %s4076_s29  ;;  %v3291_v15 = vpop.f32.mrb[21].mxu1 }
 0xb86   : > { %2556 = vrot.lane.b32.xlu1 %v2468_v14, %s4077_s3  ;;  %v3296_v16 = vpop.f32.mrb[15].mxu0 }
 0xb88   : > { %v2545_v17 = vpop.f32.mrb[22].mxu1 }
 0xb89   : > { %2561 = vrot.lane.b32.xlu0 %v2545_v17, %s4078_s0  ;;  %v3301_v18 = vpop.f32.mrb[23].mxu1 }
 0xb8a   : > { %v3094_v18 = vld [vmem:[%s4028_s20] ss:$0 sm:$0xff] }
 0xbf7   : > { %v2552_v19 = vpop.permute.xlu0 %2551 }
 0xbf8   : > { %2554 = vst.msk [vmem:[#allocation2] sm:$0xff] %vm1600_vm3, %v2552_v19  ;;  %v2557_v20 = vpop.permute.xlu1 %2556 }
 0xbf9   : > { %2559 = vst.msk [vmem:[#allocation2] sm:$0xff] %vm1606_vm4, %v2557_v20  ;;  %v3095_v20 = vld [vmem:[%s4029_s21] ss:$0 sm:$0xff] }
 0xbfb   : > { %v2562_v21 = vpop.permute.xlu0 %2561 }
 0xbfc   : > { %2564 = vst.msk [vmem:[#allocation2] sm:$0xff] %vm1612_vm5, %v2562_v21 }
 0xc03   : > { %v2565_v22 = vld [vmem:[#allocation2] sm:$0xff] }
 0xc04   : > { %3311 = vmatmul.mubr.msk.f32.vlgmr.msra.gmra.mrb[16].mxu0 %vm857_vm1, %v2565_v22 }
 0xc05   : > { %3340 = vmatprep.mubr.msk.f32.mxu0 %vm3476_vm0, %v3477_v6  ;;  %3392 = vmatpush3.bf16.msra.mxu0 %v3391_v8  ;;  %v3098_v8 = vld [vmem:[%s4033_s25] ss:$0 sm:$0xff] }
 0xc06   : > { %3393 = vmatprep.subr.bf16.mxu0 %v3475_v3 }
 0xc09   : > { %3395 = vmatpush3.bf16.msra.mxu0 %v3394_v43 }
 0xc0a   : > { %3396 = vmatprep.subr.bf16.mxu0 %v3475_v3 }
 0xc0d   : > { %3398 = vmatpush3.bf16.msra.mxu0 %v3397_v46 }
 0xc0e   : > { %3399 = vmatprep.subr.bf16.mxu0 %v3475_v3 }
 0xc11   : > { %3401 = vmatpush3.bf16.msra.mxu0 %v3400_v58 }
 0xcd7   : > { %v2641_v24 = vpop.f32.mrb[16].mxu0 }
 0xcd8   : > { %v2642_v25 = vadd.f32 %v3086_v23, %v2641_v24  ;;  %v3312_v26 = vpop.f32.mrb[17].mxu0 }
 0xcda   : > { %v2645_v27 = vadd.f32 %v2642_v25, %v3800_v60  ;;  %v837_v60 = vld [vmem:[%s4024_s16 + $0x10] sm:$0xff] }
 0xcdb   : > { %v3388_v38 = vpack.c.bf16 %v838_v37, %v837_v60 }
 0xcdc   : > { %v2646_v28 = vsel %vm857_vm1, %v2645_v27, 0.0 }
 0xcdd   : > { %2647 = vadd.xlane.f32.xlu1 %v2646_v28  ;;  %3389 = vmatpush3.bf16.msra.mxu1 %v3388_v38 }
 0xcde   : > { %3402 = vmatprep.subr.bf16.mxu1 %v3475_v3 }
 0xd6a   : > { %v2648_v29 = vpop.xlane.xlu1 %2647 }
 0xd6b   : > { %v2649_v30 = vmul.f32 0.03125, %v2648_v29  ;;  %v2890_v29 = vld [vmem:[%s4032_s24] sm:$0xff] }
 0xd6d   : > { %v2650_v31 = vsub.f32 %v2645_v27, %v2649_v30  ;;  %v2891_v30 = vld [vmem:[%s4032_s24 + $0x8] sm:$0xff] }
 0xd6f   : > { %v2651_v32 = vmul.f32 %v2650_v31, %v2650_v31 }
 0xd71   : > { %v2652_v33 = vsel %vm857_vm1, %v2651_v32, 0.0  ;;  %v2892_v32 = vld [vmem:[%s4032_s24 + $0x10] sm:$0xff] }
 0xd72   : > { %2653 = vadd.xlane.f32.xlu0 %v2652_v33  ;;  %v2893_v33 = vld [vmem:[%s4032_s24 + $0x18] sm:$0xff] }
 0xd73   : > { %v3406_v34 = vpack.c.bf16 %v2893_v33, %v2892_v32 }
 0xdff   : > { %v2654_v47 = vpop.xlane.xlu0 %2653 }
 0xe00   : > { %v2655_v48 = vmul.f32 0.03125, %v2654_v47 }
 0xe02   : > { %v2656_v49 = vadd.f32 1e-05, %v2655_v48 }
 0xe04   : > { %3461 = vrsqrt.f32 %v2656_v49 }
 0xe0e   : > { %v3462_v50 = vpop.eup %3461 }
 0xe0f   : > { %v2658_v52 = vmul.f32 %v3462_v50, %v2650_v31  ;;  %v3403_v31 = vpack.c.bf16 %v2891_v30, %v2890_v29 }
 0xe11   : > { %v2665_v54 = vmul.f32 %v3088_v51, %v2658_v52 }
 0xe13   : > { %v2672_v55 = vadd.f32 %v3089_v53, %v2665_v54 }
 0xe15   : > { %3322 = vmatmul.mubr.msk.f32.vlgmr.msra.gmra.mrb[24].mxu1 %vm857_vm1, %v2672_v55 }
 0xe16   : > { %3351 = vmatprep.mubr.msk.f32.mxu1 %vm3476_vm0, %v3477_v6  ;;  %v3092_v6 = vld [vmem:[%s4027_s19] ss:$0 sm:$0xff]  ;;  %3404 = vmatpush3.bf16.msra.mxu1 %v3403_v31 }
 0xe17   : > { %3405 = vmatprep.subr.bf16.mxu1 %v3475_v3  ;;  %v3096_v3 = vld [vmem:[%s4030_s22] ss:$0 sm:$0xff] }
 0xe1a   : > { %3407 = vmatpush3.bf16.msra.mxu1 %v3406_v34 }
 0xee8   : > { %v2748_v61 = vpop.f32.mrb[24].mxu1 }
 0xee9   : > { %v2749_v62 = vadd.f32 %v3090_v59, %v2748_v61  ;;  %v3323_v63 = vpop.f32.mrb[25].mxu1 }
 0xeeb   : > { %v2752_v0 = vmax.f32 %v2749_v62, 0.0 }
 0xeed   : > { %3341 = vmatmul.mubr.msk.f32.vlgmr.msra.gmra.mrb[18].mxu0 %vm2759_vm8, %v2752_v0 }
 0xfc0   : > { %v2829_v1 = vpop.f32.mrb[18].mxu0 }
 0xfc1   : > { %v2830_v2 = vadd.f32 %v3092_v6, %v2829_v1  ;;  %v3342_v4 = vpop.f32.mrb[19].mxu0 }
 0xfc3   : > { %v2833_v5 = vadd.f32 %v2830_v2, %v2672_v55 }
 0xfc5   : > { %v2834_v7 = vsel %vm857_vm1, %v2833_v5, 0.0 }
 0xfc6   : > { %2835 = vadd.xlane.f32.xlu0 %v2834_v7 }
0x1053   : > { %v2836_v9 = vpop.xlane.xlu0 %2835 }
0x1054   : > { %v2837_v10 = vmul.f32 0.03125, %v2836_v9 }
0x1056   : > { %v2838_v11 = vsub.f32 %v2833_v5, %v2837_v10 }
0x1058   : > { %v2839_v12 = vmul.f32 %v2838_v11, %v2838_v11 }
0x105a   : > { %v2840_v13 = vsel %vm857_vm1, %v2839_v12, 0.0 }
0x105b   : > { %2841 = vadd.xlane.f32.xlu1 %v2840_v13 }
0x10e8   : > { %v2842_v14 = vpop.xlane.xlu1 %2841 }
0x10e9   : > { %v2843_v15 = vmul.f32 0.03125, %v2842_v14 }
0x10eb   : > { %v2844_v16 = vadd.f32 1e-05, %v2843_v15 }
0x10ed   : > { %3463 = vrsqrt.f32 %v2844_v16 }
0x10f7   : > { %v3464_v17 = vpop.eup %3463 }
0x10f8   : > { %v2846_v19 = vmul.f32 %v3464_v17, %v2838_v11 }
0x10fa   : > { %v2853_v21 = vmul.f32 %v3094_v18, %v2846_v19 }
0x10fc   : > { %v2860_v22 = vadd.f32 %v3095_v20, %v2853_v21 }
0x10fe   : > { %v2863_v23 = vsel %vm857_vm1, %v2860_v22, 0.0 }
0x10ff   : > { %2864 = vadd.xlane.f32.xlu0 %v2863_v23 }
0x118c   : > { %v2865_v24 = vpop.xlane.xlu0 %2864 }
0x118d   : > { %v2866_v25 = vmul.f32 0.03125, %v2865_v24 }
0x118f   : > { %v2867_v26 = vsub.f32 %v2860_v22, %v2866_v25 }
0x1191   : > { %v2868_v27 = vmul.f32 %v2867_v26, %v2867_v26 }
0x1193   : > { %v2869_v28 = vsel %vm857_vm1, %v2868_v27, 0.0 }
0x1194   : > { %2870 = vadd.xlane.f32.xlu1 %v2869_v28 }
0x1221   : > { %v2871_v35 = vpop.xlane.xlu1 %2870 }
0x1222   : > { %v2872_v36 = vmul.f32 0.03125, %v2871_v35 }
0x1224   : > { %v2873_v60 = vadd.f32 1e-05, %v2872_v36 }
0x1226   : > { %3465 = vrsqrt.f32 %v2873_v60 }
0x1230   : > { %v3466_v37 = vpop.eup %3465 }
0x1231   : > { %v2875_v38 = vmul.f32 %v3466_v37, %v2867_v26 }
0x1233   : > { %v2882_v40 = vmul.f32 %v3096_v3, %v2875_v38 }
0x1235   : > { %v2889_v41 = vadd.f32 %v3097_v39, %v2882_v40 }
0x1237   : > { %3352 = vmatmul.mubr.msk.f32.vlgmr.msra.gmra.mrb[26].mxu1 %vm857_vm1, %v2889_v41 }
0x130a   : > { %v2970_v42 = vpop.f32.mrb[26].mxu1 }
0x130b   : > { %v2971_v43 = vadd.f32 %v3098_v8, %v2970_v42  ;;  %v3353_v44 = vpop.f32.mrb[27].mxu1 }
0x130d   : > { %2974 = vst [vmem:[%s803_s4] sm:$0xff] %v2971_v43 }
0x130e PF: > { %s36_s27 = sadd.s32 1, %s3473_s27  }
0x130f   : > { %p33_p4 = scmp.ge.s32.totalorder %s36_s27, 4  }
0x1311   :  { %35 = sbr.rel (!%p33_p4) target bundleno = 12 (0xc), region = 157 }

</bundles_post_ra>
